<compile_context>
chip_gen: v7x
topology: tpu7x:2x2x1
jax: 0.10.0
libtpu: 0.0.40
codegen_flags: <defaults>
</compile_context>

<pallas_src>
import jax
import jax.numpy as jnp
from jax.experimental import pallas as pl
from jax.experimental.pallas import tpu as pltpu

_LANE = 128
_SUBLANE = 8
_VMEM = pl.BlockSpec(memory_space=pltpu.MemorySpace.VMEM)


def _round_up(x, m):
    return (x + m - 1) // m * m


# ---------------------------------------------------------------------------
# Fused Pallas kernel (encoder LSTM -> decoder LSTM -> vocab projection)
# ---------------------------------------------------------------------------
def make_seq2seq_kernel(Bp, T_en, T_ko, Hp):
    def kernel(x_ref, y_ref,
               e_wih_ref, e_whh_ref, e_b_ref,
               d_wih_ref, d_whh_ref, d_b_ref,
               w_out_ref, b_out_ref,
               pred_ref, hs_ref):
        # ---- hoisted, batched input projections: one bf16 MXU matmul per LSTM ----
        gx = (jnp.dot(x_ref[...], e_wih_ref[...],
                      preferred_element_type=jnp.float32) + e_b_ref[...])   # (T_en*Bp, 4Hp)
        gy = (jnp.dot(y_ref[...], d_wih_ref[...],
                      preferred_element_type=jnp.float32) + d_b_ref[...])   # (T_ko*Bp, 4Hp)
        e_whh = e_whh_ref[...]                                              # (Hp, 4Hp) bf16
        d_whh = d_whh_ref[...]                                              # (Hp, 4Hp) bf16

        def cell(g_x, h, c, w_hh):
            # Gate layout (i, f, o, g): sigmoid on one contiguous 3*Hp slice, tanh on the
            # last Hp slice -> 2 EUP pushes per step instead of 4.
            gates = g_x + jnp.dot(h.astype(jnp.bfloat16), w_hh,
                                  preferred_element_type=jnp.float32)
            s = jax.nn.sigmoid(gates[:, 0:3 * Hp])
            i = s[:, 0 * Hp:1 * Hp]
            f = s[:, 1 * Hp:2 * Hp]
            o = s[:, 2 * Hp:3 * Hp]
            g = jnp.tanh(gates[:, 3 * Hp:4 * Hp])
            c_new = f * c + i * g
            h_new = o * jnp.tanh(c_new)
            return h_new, c_new

        # ---- encoder recurrence (fully unrolled; only h @ W_hh on the critical path) ----
        h = jnp.zeros((Bp, Hp), jnp.float32)
        c = jnp.zeros((Bp, Hp), jnp.float32)
        for t in range(T_en):
            h, c = cell(gx[t * Bp:(t + 1) * Bp, :], h, c, e_whh)

        # ---- decoder recurrence; aligned whole-vreg stores into VMEM scratch ----
        for t in range(T_ko):
            h, c = cell(gy[t * Bp:(t + 1) * Bp, :], h, c, d_whh)
            hs_ref[t * Bp:(t + 1) * Bp, :] = h

        # ---- single batched vocab projection + one lane-dense bulk store ----
        pred_ref[...] = (jnp.dot(hs_ref[...].astype(jnp.bfloat16), w_out_ref[...],
                                 preferred_element_type=jnp.float32)
                         + b_out_ref[...])
    return kernel


# ---------------------------------------------------------------------------
# Wrapper: weight padding / gate-reorder / pre-transposition (trace-time JAX)
# ---------------------------------------------------------------------------
_GATE_PERM = (0, 1, 3, 2)   # PyTorch (i, f, g, o) -> kernel (i, f, o, g)


def _pad_lstm_weights(w_ih, w_hh, b, H, Hp):
    """PyTorch (4H,E)/(4H,H)/(1,4H) -> padded, matmul-ready bf16 (E,4Hp)/(Hp,4Hp), f32 (1,4Hp)."""
    G = 4
    E = w_ih.shape[1]
    perm = jnp.array(_GATE_PERM)
    w_ih_g = w_ih.reshape(G, H, E)[perm]
    w_hh_g = w_hh.reshape(G, H, H)[perm]
    b_g = b.reshape(G, H)[perm]
    w_ih_p = jnp.zeros((G, Hp, E), jnp.float32).at[:, :H, :].set(w_ih_g)
    w_hh_p = jnp.zeros((G, Hp, Hp), jnp.float32).at[:, :H, :H].set(w_hh_g)
    b_p = jnp.zeros((G, Hp), jnp.float32).at[:, :H].set(b_g)
    return (w_ih_p.reshape(G * Hp, E).T.astype(jnp.bfloat16),   # (E, 4Hp)
            w_hh_p.reshape(G * Hp, Hp).T.astype(jnp.bfloat16),  # (Hp, 4Hp)
            b_p.reshape(1, G * Hp))                             # (1, 4Hp) f32


def _pad_out_proj(w_out, b_out, H, Hp, V, Vp):
    w_p = jnp.zeros((Vp, Hp), jnp.float32).at[:V, :H].set(w_out)
    b_p = jnp.zeros((1, Vp), jnp.float32).at[:, :V].set(b_out)
    return w_p.T.astype(jnp.bfloat16), b_p                      # (Hp, Vp) bf16, (1, Vp) f32


def _embed_flat(emb_table, tokens, Bp):
    """Embedding gather (plain-JAX glue), time-major, batch-padded, flattened, bf16."""
    B, T = tokens.shape
    x = jnp.transpose(emb_table[tokens], (1, 0, 2))             # (T, B, E)
    x = jnp.pad(x, ((0, 0), (0, Bp - B), (0, 0)))                # zero rows for padded batch
    return x.reshape(T * Bp, -1).astype(jnp.bfloat16)


@jax.jit
def model_forward(params, english, korean):
    """Equivalent of Model.forward(english, korean) -> prediction (B, T_ko, V_ko)."""
    B, T_en = english.shape
    _, T_ko = korean.shape
    H = params["enc_w_hh"].shape[1]
    V = params["dec_w_out"].shape[0]
    Hp = _round_up(H, _LANE)
    Vp = _round_up(V, _LANE)
    Bp = _round_up(B, _SUBLANE)

    x_flat = _embed_flat(params["enc_emb"], english, Bp)         # (T_en*Bp, E)
    y_flat = _embed_flat(params["dec_emb"], korean, Bp)          # (T_ko*Bp, E)

    # NOTE: biases assume b = b_ih + b_hh pre-summed (PyTorch LSTM has two bias vectors).
    e_wih, e_whh, e_b = _pad_lstm_weights(params["enc_w_ih"], params["enc_w_hh"],
                                          params["enc_b"], H, Hp)
    d_wih, d_whh, d_b = _pad_lstm_weights(params["dec_w_ih"], params["dec_w_hh"],
                                          params["dec_b"], H, Hp)
    w_out_t, b_out = _pad_out_proj(params["dec_w_out"], params["dec_b_out"], H, Hp, V, Vp)

    pred_pad = pl.pallas_call(
        make_seq2seq_kernel(Bp, T_en, T_ko, Hp),
        out_shape=jax.ShapeDtypeStruct((T_ko * Bp, Vp), jnp.float32),
        in_specs=[_VMEM] * 10,
        out_specs=_VMEM,
        scratch_shapes=[pltpu.VMEM((T_ko * Bp, Hp), jnp.float32)],  # decoder hidden states
    )(x_flat, y_flat, e_wih, e_whh, e_b, d_wih, d_whh, d_b, w_out_t, b_out)

    pred = pred_pad.reshape(T_ko, Bp, Vp)[:, :B, :V]             # drop batch / vocab padding
    return jnp.transpose(pred, (1, 0, 2))                        # (B, T_ko, V_ko)


# ---------------------------------------------------------------------------
# Pure-JAX f32 reference (for a correctness check)
# ---------------------------------------------------------------------------
def _ref_lstm(x_tm, h, c, w_ih, w_hh, b):
    H = h.shape[-1]
    outs = []
    for t in range(x_tm.shape[0]):
        gates = x_tm[t] @ w_ih.T + h @ w_hh.T + b
        i = jax.nn.sigmoid(gates[:, 0 * H:1 * H])
        f = jax.nn.sigmoid(gates[:, 1 * H:2 * H])
        g = jnp.tanh(gates[:, 2 * H:3 * H])
        o = jax.nn.sigmoid(gates[:, 3 * H:4 * H])
        c = f * c + i * g
        h = o * jnp.tanh(c)
        outs.append(h)
    return jnp.stack(outs), h, c


def model_forward_ref(params, english, korean):
    x_tm = jnp.transpose(params["enc_emb"][english], (1, 0, 2))
    y_tm = jnp.transpose(params["dec_emb"][korean], (1, 0, 2))
    B, H = english.shape[0], params["enc_w_hh"].shape[1]
    h0 = jnp.zeros((B, H), jnp.float32)
    c0 = jnp.zeros((B, H), jnp.float32)
    _, h, c = _ref_lstm(x_tm, h0, c0, params["enc_w_ih"], params["enc_w_hh"],
                        params["enc_b"])
    hs, _, _ = _ref_lstm(y_tm, h, c, params["dec_w_ih"], params["dec_w_hh"],
                         params["dec_b"])
    logits = hs @ params["dec_w_out"].T + params["dec_b_out"]
    return jnp.transpose(logits, (1, 0, 2))


# ---------------------------------------------------------------------------
# Main
# ---------------------------------------------------------------------------
if __name__ == "__main__":
    B, T_EN, T_KO = 2, 8, 10
    E, H = 32, 32
    V_EN, V_KO = 64, 64

    key = jax.random.PRNGKey(0)
    ks = jax.random.split(key, 10)
    scale = 0.1
    params = {
        "enc_emb":   scale * jax.random.normal(ks[0], (V_EN, E), jnp.float32),
        "enc_w_ih":  scale * jax.random.normal(ks[1], (4 * H, E), jnp.float32),
        "enc_w_hh":  scale * jax.random.normal(ks[2], (4 * H, H), jnp.float32),
        "enc_b":     scale * jax.random.normal(ks[3], (1, 4 * H), jnp.float32),
        "dec_emb":   scale * jax.random.normal(ks[4], (V_KO, E), jnp.float32),
        "dec_w_ih":  scale * jax.random.normal(ks[5], (4 * H, E), jnp.float32),
        "dec_w_hh":  scale * jax.random.normal(ks[6], (4 * H, H), jnp.float32),
        "dec_b":     scale * jax.random.normal(ks[7], (1, 4 * H), jnp.float32),
        "dec_w_out": scale * jax.random.normal(ks[8], (V_KO, H), jnp.float32),
        "dec_b_out": scale * jax.random.normal(ks[9], (1, V_KO), jnp.float32),
    }

    english = jax.random.randint(jax.random.PRNGKey(1), (B, T_EN), 0, V_EN, jnp.int32)
    korean = jax.random.randint(jax.random.PRNGKey(2), (B, T_KO), 0, V_KO, jnp.int32)

    pred = jax.block_until_ready(model_forward(params, english, korean))
    ref = jax.block_until_ready(model_forward_ref(params, english, korean))

    assert pred.shape == (B, T_KO, V_KO), pred.shape
    # bf16 MXU operands with f32 accumulation vs an all-f32 reference: loosened tolerance.
    assert jnp.allclose(pred, ref, atol=3e-2, rtol=3e-2), "mismatch vs reference"
    print("KERNEL_OK")
</pallas_src>

<mosaic_0001>
module attributes {stable_mosaic.version = 11 : i64} {
  func.func @kernel(%arg0: memref<64x32xbf16, #tpu.memory_space<vmem>>, %arg1: memref<80x32xbf16, #tpu.memory_space<vmem>>, %arg2: memref<32x512xbf16, #tpu.memory_space<vmem>>, %arg3: memref<128x512xbf16, #tpu.memory_space<vmem>>, %arg4: memref<1x512xf32, #tpu.memory_space<vmem>>, %arg5: memref<32x512xbf16, #tpu.memory_space<vmem>>, %arg6: memref<128x512xbf16, #tpu.memory_space<vmem>>, %arg7: memref<1x512xf32, #tpu.memory_space<vmem>>, %arg8: memref<128x128xbf16, #tpu.memory_space<vmem>>, %arg9: memref<1x128xf32, #tpu.memory_space<vmem>>, %arg10: memref<80x128xf32, #tpu.memory_space<vmem>>, %arg11: memref<80x128xf32, #tpu.memory_space<vmem>>) attributes {dimension_semantics = [], scalar_prefetch = 0 : i64, scratch_operands = 1 : i64, tpu.core_type = #tpu.core_type<tc>} {
    %c0 = arith.constant 0 : index
    %c0_0 = arith.constant 0 : index
    %0 = vector.load %arg0[%c0, %c0_0] : memref<64x32xbf16, #tpu.memory_space<vmem>>, vector<64x32xbf16>
    %c0_1 = arith.constant 0 : index
    %c0_2 = arith.constant 0 : index
    %1 = vector.load %arg2[%c0_1, %c0_2] : memref<32x512xbf16, #tpu.memory_space<vmem>>, vector<32x512xbf16>
    %cst = arith.constant dense<0.000000e+00> : vector<64x512xf32>
    %2 = tpu.matmul %0, %1, %cst {dimension_numbers = #tpu.dot_dimension_numbers<[1], [0], [0], [1], [0, 0, 1, 1], [], []>} : vector<64x32xbf16>, vector<32x512xbf16>, vector<64x512xf32> -> vector<64x512xf32>
    %c0_3 = arith.constant 0 : index
    %c0_4 = arith.constant 0 : index
    %3 = vector.load %arg4[%c0_3, %c0_4] : memref<1x512xf32, #tpu.memory_space<vmem>>, vector<1x512xf32>
    %4 = vector.broadcast %3 : vector<1x512xf32> to vector<64x512xf32>
    %5 = arith.addf %2, %4 : vector<64x512xf32>
    %c0_5 = arith.constant 0 : index
    %c0_6 = arith.constant 0 : index
    %6 = vector.load %arg1[%c0_5, %c0_6] : memref<80x32xbf16, #tpu.memory_space<vmem>>, vector<80x32xbf16>
    %c0_7 = arith.constant 0 : index
    %c0_8 = arith.constant 0 : index
    %7 = vector.load %arg5[%c0_7, %c0_8] : memref<32x512xbf16, #tpu.memory_space<vmem>>, vector<32x512xbf16>
    %cst_9 = arith.constant dense<0.000000e+00> : vector<80x512xf32>
    %8 = tpu.matmul %6, %7, %cst_9 {dimension_numbers = #tpu.dot_dimension_numbers<[1], [0], [0], [1], [0, 0, 1, 1], [], []>} : vector<80x32xbf16>, vector<32x512xbf16>, vector<80x512xf32> -> vector<80x512xf32>
    %c0_10 = arith.constant 0 : index
    %c0_11 = arith.constant 0 : index
    %9 = vector.load %arg7[%c0_10, %c0_11] : memref<1x512xf32, #tpu.memory_space<vmem>>, vector<1x512xf32>
    %10 = vector.broadcast %9 : vector<1x512xf32> to vector<80x512xf32>
    %11 = arith.addf %8, %10 : vector<80x512xf32>
    %c0_12 = arith.constant 0 : index
    %c0_13 = arith.constant 0 : index
    %12 = vector.load %arg3[%c0_12, %c0_13] : memref<128x512xbf16, #tpu.memory_space<vmem>>, vector<128x512xbf16>
    %c0_14 = arith.constant 0 : index
    %c0_15 = arith.constant 0 : index
    %13 = vector.load %arg6[%c0_14, %c0_15] : memref<128x512xbf16, #tpu.memory_space<vmem>>, vector<128x512xbf16>
    %cst_16 = arith.constant 0.000000e+00 : f32
    %14 = vector.broadcast %cst_16 : f32 to vector<8x128xf32>
    %cst_17 = arith.constant 0.000000e+00 : f32
    %15 = vector.broadcast %cst_17 : f32 to vector<8x128xf32>
    %16 = vector.extract_strided_slice %5 {offsets = [0, 0], sizes = [8, 512], strides = [1, 1]} : vector<64x512xf32> to vector<8x512xf32>
    %17 = arith.truncf %14 : vector<8x128xf32> to vector<8x128xbf16>
    %cst_18 = arith.constant dense<0.000000e+00> : vector<8x512xf32>
    %18 = tpu.matmul %17, %12, %cst_18 {dimension_numbers = #tpu.dot_dimension_numbers<[1], [0], [0], [1], [0, 0, 1, 1], [], []>} : vector<8x128xbf16>, vector<128x512xbf16>, vector<8x512xf32> -> vector<8x512xf32>
    %19 = arith.addf %16, %18 : vector<8x512xf32>
    %20 = vector.extract_strided_slice %19 {offsets = [0, 0], sizes = [8, 384], strides = [1, 1]} : vector<8x512xf32> to vector<8x384xf32>
    %21 = arith.negf %20 : vector<8x384xf32>
    %22 = math.exp %21 : vector<8x384xf32>
    %cst_19 = arith.constant 1.000000e+00 : f32
    %23 = vector.broadcast %cst_19 : f32 to vector<8x384xf32>
    %24 = arith.addf %23, %22 : vector<8x384xf32>
    %25 = arith.divf %23, %24 : vector<8x384xf32>
    %26 = vector.extract_strided_slice %25 {offsets = [0, 0], sizes = [8, 128], strides = [1, 1]} : vector<8x384xf32> to vector<8x128xf32>
    %27 = vector.extract_strided_slice %25 {offsets = [0, 128], sizes = [8, 128], strides = [1, 1]} : vector<8x384xf32> to vector<8x128xf32>
    %28 = vector.extract_strided_slice %25 {offsets = [0, 256], sizes = [8, 128], strides = [1, 1]} : vector<8x384xf32> to vector<8x128xf32>
    %29 = vector.extract_strided_slice %19 {offsets = [0, 384], sizes = [8, 128], strides = [1, 1]} : vector<8x512xf32> to vector<8x128xf32>
    %30 = math.tanh %29 : vector<8x128xf32>
    %31 = arith.mulf %27, %15 : vector<8x128xf32>
    %32 = arith.mulf %26, %30 : vector<8x128xf32>
    %33 = arith.addf %31, %32 : vector<8x128xf32>
    %34 = math.tanh %33 : vector<8x128xf32>
    %35 = arith.mulf %28, %34 : vector<8x128xf32>
    %36 = vector.extract_strided_slice %5 {offsets = [8, 0], sizes = [8, 512], strides = [1, 1]} : vector<64x512xf32> to vector<8x512xf32>
    %37 = arith.truncf %35 : vector<8x128xf32> to vector<8x128xbf16>
    %cst_20 = arith.constant dense<0.000000e+00> : vector<8x512xf32>
    %38 = tpu.matmul %37, %12, %cst_20 {dimension_numbers = #tpu.dot_dimension_numbers<[1], [0], [0], [1], [0, 0, 1, 1], [], []>} : vector<8x128xbf16>, vector<128x512xbf16>, vector<8x512xf32> -> vector<8x512xf32>
    %39 = arith.addf %36, %38 : vector<8x512xf32>
    %40 = vector.extract_strided_slice %39 {offsets = [0, 0], sizes = [8, 384], strides = [1, 1]} : vector<8x512xf32> to vector<8x384xf32>
    %41 = arith.negf %40 : vector<8x384xf32>
    %42 = math.exp %41 : vector<8x384xf32>
    %cst_21 = arith.constant 1.000000e+00 : f32
    %43 = vector.broadcast %cst_21 : f32 to vector<8x384xf32>
    %44 = arith.addf %43, %42 : vector<8x384xf32>
    %45 = arith.divf %43, %44 : vector<8x384xf32>
    %46 = vector.extract_strided_slice %45 {offsets = [0, 0], sizes = [8, 128], strides = [1, 1]} : vector<8x384xf32> to vector<8x128xf32>
    %47 = vector.extract_strided_slice %45 {offsets = [0, 128], sizes = [8, 128], strides = [1, 1]} : vector<8x384xf32> to vector<8x128xf32>
    %48 = vector.extract_strided_slice %45 {offsets = [0, 256], sizes = [8, 128], strides = [1, 1]} : vector<8x384xf32> to vector<8x128xf32>
    %49 = vector.extract_strided_slice %39 {offsets = [0, 384], sizes = [8, 128], strides = [1, 1]} : vector<8x512xf32> to vector<8x128xf32>
    %50 = math.tanh %49 : vector<8x128xf32>
    %51 = arith.mulf %47, %33 : vector<8x128xf32>
    %52 = arith.mulf %46, %50 : vector<8x128xf32>
    %53 = arith.addf %51, %52 : vector<8x128xf32>
    %54 = math.tanh %53 : vector<8x128xf32>
    %55 = arith.mulf %48, %54 : vector<8x128xf32>
    %56 = vector.extract_strided_slice %5 {offsets = [16, 0], sizes = [8, 512], strides = [1, 1]} : vector<64x512xf32> to vector<8x512xf32>
    %57 = arith.truncf %55 : vector<8x128xf32> to vector<8x128xbf16>
    %cst_22 = arith.constant dense<0.000000e+00> : vector<8x512xf32>
    %58 = tpu.matmul %57, %12, %cst_22 {dimension_numbers = #tpu.dot_dimension_numbers<[1], [0], [0], [1], [0, 0, 1, 1], [], []>} : vector<8x128xbf16>, vector<128x512xbf16>, vector<8x512xf32> -> vector<8x512xf32>
    %59 = arith.addf %56, %58 : vector<8x512xf32>
    %60 = vector.extract_strided_slice %59 {offsets = [0, 0], sizes = [8, 384], strides = [1, 1]} : vector<8x512xf32> to vector<8x384xf32>
    %61 = arith.negf %60 : vector<8x384xf32>
    %62 = math.exp %61 : vector<8x384xf32>
    %cst_23 = arith.constant 1.000000e+00 : f32
    %63 = vector.broadcast %cst_23 : f32 to vector<8x384xf32>
    %64 = arith.addf %63, %62 : vector<8x384xf32>
    %65 = arith.divf %63, %64 : vector<8x384xf32>
    %66 = vector.extract_strided_slice %65 {offsets = [0, 0], sizes = [8, 128], strides = [1, 1]} : vector<8x384xf32> to vector<8x128xf32>
    %67 = vector.extract_strided_slice %65 {offsets = [0, 128], sizes = [8, 128], strides = [1, 1]} : vector<8x384xf32> to vector<8x128xf32>
    %68 = vector.extract_strided_slice %65 {offsets = [0, 256], sizes = [8, 128], strides = [1, 1]} : vector<8x384xf32> to vector<8x128xf32>
    %69 = vector.extract_strided_slice %59 {offsets = [0, 384], sizes = [8, 128], strides = [1, 1]} : vector<8x512xf32> to vector<8x128xf32>
    %70 = math.tanh %69 : vector<8x128xf32>
    %71 = arith.mulf %67, %53 : vector<8x128xf32>
    %72 = arith.mulf %66, %70 : vector<8x128xf32>
    %73 = arith.addf %71, %72 : vector<8x128xf32>
    %74 = math.tanh %73 : vector<8x128xf32>
    %75 = arith.mulf %68, %74 : vector<8x128xf32>
    %76 = vector.extract_strided_slice %5 {offsets = [24, 0], sizes = [8, 512], strides = [1, 1]} : vector<64x512xf32> to vector<8x512xf32>
    %77 = arith.truncf %75 : vector<8x128xf32> to vector<8x128xbf16>
    %cst_24 = arith.constant dense<0.000000e+00> : vector<8x512xf32>
    %78 = tpu.matmul %77, %12, %cst_24 {dimension_numbers = #tpu.dot_dimension_numbers<[1], [0], [0], [1], [0, 0, 1, 1], [], []>} : vector<8x128xbf16>, vector<128x512xbf16>, vector<8x512xf32> -> vector<8x512xf32>
    %79 = arith.addf %76, %78 : vector<8x512xf32>
    %80 = vector.extract_strided_slice %79 {offsets = [0, 0], sizes = [8, 384], strides = [1, 1]} : vector<8x512xf32> to vector<8x384xf32>
    %81 = arith.negf %80 : vector<8x384xf32>
    %82 = math.exp %81 : vector<8x384xf32>
    %cst_25 = arith.constant 1.000000e+00 : f32
    %83 = vector.broadcast %cst_25 : f32 to vector<8x384xf32>
    %84 = arith.addf %83, %82 : vector<8x384xf32>
    %85 = arith.divf %83, %84 : vector<8x384xf32>
    %86 = vector.extract_strided_slice %85 {offsets = [0, 0], sizes = [8, 128], strides = [1, 1]} : vector<8x384xf32> to vector<8x128xf32>
    %87 = vector.extract_strided_slice %85 {offsets = [0, 128], sizes = [8, 128], strides = [1, 1]} : vector<8x384xf32> to vector<8x128xf32>
    %88 = vector.extract_strided_slice %85 {offsets = [0, 256], sizes = [8, 128], strides = [1, 1]} : vector<8x384xf32> to vector<8x128xf32>
    %89 = vector.extract_strided_slice %79 {offsets = [0, 384], sizes = [8, 128], strides = [1, 1]} : vector<8x512xf32> to vector<8x128xf32>
    %90 = math.tanh %89 : vector<8x128xf32>
    %91 = arith.mulf %87, %73 : vector<8x128xf32>
    %92 = arith.mulf %86, %90 : vector<8x128xf32>
    %93 = arith.addf %91, %92 : vector<8x128xf32>
    %94 = math.tanh %93 : vector<8x128xf32>
    %95 = arith.mulf %88, %94 : vector<8x128xf32>
    %96 = vector.extract_strided_slice %5 {offsets = [32, 0], sizes = [8, 512], strides = [1, 1]} : vector<64x512xf32> to vector<8x512xf32>
    %97 = arith.truncf %95 : vector<8x128xf32> to vector<8x128xbf16>
    %cst_26 = arith.constant dense<0.000000e+00> : vector<8x512xf32>
    %98 = tpu.matmul %97, %12, %cst_26 {dimension_numbers = #tpu.dot_dimension_numbers<[1], [0], [0], [1], [0, 0, 1, 1], [], []>} : vector<8x128xbf16>, vector<128x512xbf16>, vector<8x512xf32> -> vector<8x512xf32>
    %99 = arith.addf %96, %98 : vector<8x512xf32>
    %100 = vector.extract_strided_slice %99 {offsets = [0, 0], sizes = [8, 384], strides = [1, 1]} : vector<8x512xf32> to vector<8x384xf32>
    %101 = arith.negf %100 : vector<8x384xf32>
    %102 = math.exp %101 : vector<8x384xf32>
    %cst_27 = arith.constant 1.000000e+00 : f32
    %103 = vector.broadcast %cst_27 : f32 to vector<8x384xf32>
    %104 = arith.addf %103, %102 : vector<8x384xf32>
    %105 = arith.divf %103, %104 : vector<8x384xf32>
    %106 = vector.extract_strided_slice %105 {offsets = [0, 0], sizes = [8, 128], strides = [1, 1]} : vector<8x384xf32> to vector<8x128xf32>
    %107 = vector.extract_strided_slice %105 {offsets = [0, 128], sizes = [8, 128], strides = [1, 1]} : vector<8x384xf32> to vector<8x128xf32>
    %108 = vector.extract_strided_slice %105 {offsets = [0, 256], sizes = [8, 128], strides = [1, 1]} : vector<8x384xf32> to vector<8x128xf32>
    %109 = vector.extract_strided_slice %99 {offsets = [0, 384], sizes = [8, 128], strides = [1, 1]} : vector<8x512xf32> to vector<8x128xf32>
    %110 = math.tanh %109 : vector<8x128xf32>
    %111 = arith.mulf %107, %93 : vector<8x128xf32>
    %112 = arith.mulf %106, %110 : vector<8x128xf32>
    %113 = arith.addf %111, %112 : vector<8x128xf32>
    %114 = math.tanh %113 : vector<8x128xf32>
    %115 = arith.mulf %108, %114 : vector<8x128xf32>
    %116 = vector.extract_strided_slice %5 {offsets = [40, 0], sizes = [8, 512], strides = [1, 1]} : vector<64x512xf32> to vector<8x512xf32>
    %117 = arith.truncf %115 : vector<8x128xf32> to vector<8x128xbf16>
    %cst_28 = arith.constant dense<0.000000e+00> : vector<8x512xf32>
    %118 = tpu.matmul %117, %12, %cst_28 {dimension_numbers = #tpu.dot_dimension_numbers<[1], [0], [0], [1], [0, 0, 1, 1], [], []>} : vector<8x128xbf16>, vector<128x512xbf16>, vector<8x512xf32> -> vector<8x512xf32>
    %119 = arith.addf %116, %118 : vector<8x512xf32>
    %120 = vector.extract_strided_slice %119 {offsets = [0, 0], sizes = [8, 384], strides = [1, 1]} : vector<8x512xf32> to vector<8x384xf32>
    %121 = arith.negf %120 : vector<8x384xf32>
    %122 = math.exp %121 : vector<8x384xf32>
    %cst_29 = arith.constant 1.000000e+00 : f32
    %123 = vector.broadcast %cst_29 : f32 to vector<8x384xf32>
    %124 = arith.addf %123, %122 : vector<8x384xf32>
    %125 = arith.divf %123, %124 : vector<8x384xf32>
    %126 = vector.extract_strided_slice %125 {offsets = [0, 0], sizes = [8, 128], strides = [1, 1]} : vector<8x384xf32> to vector<8x128xf32>
    %127 = vector.extract_strided_slice %125 {offsets = [0, 128], sizes = [8, 128], strides = [1, 1]} : vector<8x384xf32> to vector<8x128xf32>
    %128 = vector.extract_strided_slice %125 {offsets = [0, 256], sizes = [8, 128], strides = [1, 1]} : vector<8x384xf32> to vector<8x128xf32>
    %129 = vector.extract_strided_slice %119 {offsets = [0, 384], sizes = [8, 128], strides = [1, 1]} : vector<8x512xf32> to vector<8x128xf32>
    %130 = math.tanh %129 : vector<8x128xf32>
    %131 = arith.mulf %127, %113 : vector<8x128xf32>
    %132 = arith.mulf %126, %130 : vector<8x128xf32>
    %133 = arith.addf %131, %132 : vector<8x128xf32>
    %134 = math.tanh %133 : vector<8x128xf32>
    %135 = arith.mulf %128, %134 : vector<8x128xf32>
    %136 = vector.extract_strided_slice %5 {offsets = [48, 0], sizes = [8, 512], strides = [1, 1]} : vector<64x512xf32> to vector<8x512xf32>
    %137 = arith.truncf %135 : vector<8x128xf32> to vector<8x128xbf16>
    %cst_30 = arith.constant dense<0.000000e+00> : vector<8x512xf32>
    %138 = tpu.matmul %137, %12, %cst_30 {dimension_numbers = #tpu.dot_dimension_numbers<[1], [0], [0], [1], [0, 0, 1, 1], [], []>} : vector<8x128xbf16>, vector<128x512xbf16>, vector<8x512xf32> -> vector<8x512xf32>
    %139 = arith.addf %136, %138 : vector<8x512xf32>
    %140 = vector.extract_strided_slice %139 {offsets = [0, 0], sizes = [8, 384], strides = [1, 1]} : vector<8x512xf32> to vector<8x384xf32>
    %141 = arith.negf %140 : vector<8x384xf32>
    %142 = math.exp %141 : vector<8x384xf32>
    %cst_31 = arith.constant 1.000000e+00 : f32
    %143 = vector.broadcast %cst_31 : f32 to vector<8x384xf32>
    %144 = arith.addf %143, %142 : vector<8x384xf32>
    %145 = arith.divf %143, %144 : vector<8x384xf32>
    %146 = vector.extract_strided_slice %145 {offsets = [0, 0], sizes = [8, 128], strides = [1, 1]} : vector<8x384xf32> to vector<8x128xf32>
    %147 = vector.extract_strided_slice %145 {offsets = [0, 128], sizes = [8, 128], strides = [1, 1]} : vector<8x384xf32> to vector<8x128xf32>
    %148 = vector.extract_strided_slice %145 {offsets = [0, 256], sizes = [8, 128], strides = [1, 1]} : vector<8x384xf32> to vector<8x128xf32>
    %149 = vector.extract_strided_slice %139 {offsets = [0, 384], sizes = [8, 128], strides = [1, 1]} : vector<8x512xf32> to vector<8x128xf32>
    %150 = math.tanh %149 : vector<8x128xf32>
    %151 = arith.mulf %147, %133 : vector<8x128xf32>
    %152 = arith.mulf %146, %150 : vector<8x128xf32>
    %153 = arith.addf %151, %152 : vector<8x128xf32>
    %154 = math.tanh %153 : vector<8x128xf32>
    %155 = arith.mulf %148, %154 : vector<8x128xf32>
    %156 = vector.extract_strided_slice %5 {offsets = [56, 0], sizes = [8, 512], strides = [1, 1]} : vector<64x512xf32> to vector<8x512xf32>
    %157 = arith.truncf %155 : vector<8x128xf32> to vector<8x128xbf16>
    %cst_32 = arith.constant dense<0.000000e+00> : vector<8x512xf32>
    %158 = tpu.matmul %157, %12, %cst_32 {dimension_numbers = #tpu.dot_dimension_numbers<[1], [0], [0], [1], [0, 0, 1, 1], [], []>} : vector<8x128xbf16>, vector<128x512xbf16>, vector<8x512xf32> -> vector<8x512xf32>
    %159 = arith.addf %156, %158 : vector<8x512xf32>
    %160 = vector.extract_strided_slice %159 {offsets = [0, 0], sizes = [8, 384], strides = [1, 1]} : vector<8x512xf32> to vector<8x384xf32>
    %161 = arith.negf %160 : vector<8x384xf32>
    %162 = math.exp %161 : vector<8x384xf32>
    %cst_33 = arith.constant 1.000000e+00 : f32
    %163 = vector.broadcast %cst_33 : f32 to vector<8x384xf32>
    %164 = arith.addf %163, %162 : vector<8x384xf32>
    %165 = arith.divf %163, %164 : vector<8x384xf32>
    %166 = vector.extract_strided_slice %165 {offsets = [0, 0], sizes = [8, 128], strides = [1, 1]} : vector<8x384xf32> to vector<8x128xf32>
    %167 = vector.extract_strided_slice %165 {offsets = [0, 128], sizes = [8, 128], strides = [1, 1]} : vector<8x384xf32> to vector<8x128xf32>
    %168 = vector.extract_strided_slice %165 {offsets = [0, 256], sizes = [8, 128], strides = [1, 1]} : vector<8x384xf32> to vector<8x128xf32>
    %169 = vector.extract_strided_slice %159 {offsets = [0, 384], sizes = [8, 128], strides = [1, 1]} : vector<8x512xf32> to vector<8x128xf32>
    %170 = math.tanh %169 : vector<8x128xf32>
    %171 = arith.mulf %167, %153 : vector<8x128xf32>
    %172 = arith.mulf %166, %170 : vector<8x128xf32>
    %173 = arith.addf %171, %172 : vector<8x128xf32>
    %174 = math.tanh %173 : vector<8x128xf32>
    %175 = arith.mulf %168, %174 : vector<8x128xf32>
    %176 = vector.extract_strided_slice %11 {offsets = [0, 0], sizes = [8, 512], strides = [1, 1]} : vector<80x512xf32> to vector<8x512xf32>
    %177 = arith.truncf %175 : vector<8x128xf32> to vector<8x128xbf16>
    %cst_34 = arith.constant dense<0.000000e+00> : vector<8x512xf32>
    %178 = tpu.matmul %177, %13, %cst_34 {dimension_numbers = #tpu.dot_dimension_numbers<[1], [0], [0], [1], [0, 0, 1, 1], [], []>} : vector<8x128xbf16>, vector<128x512xbf16>, vector<8x512xf32> -> vector<8x512xf32>
    %179 = arith.addf %176, %178 : vector<8x512xf32>
    %180 = vector.extract_strided_slice %179 {offsets = [0, 0], sizes = [8, 384], strides = [1, 1]} : vector<8x512xf32> to vector<8x384xf32>
    %181 = arith.negf %180 : vector<8x384xf32>
    %182 = math.exp %181 : vector<8x384xf32>
    %cst_35 = arith.constant 1.000000e+00 : f32
    %183 = vector.broadcast %cst_35 : f32 to vector<8x384xf32>
    %184 = arith.addf %183, %182 : vector<8x384xf32>
    %185 = arith.divf %183, %184 : vector<8x384xf32>
    %186 = vector.extract_strided_slice %185 {offsets = [0, 0], sizes = [8, 128], strides = [1, 1]} : vector<8x384xf32> to vector<8x128xf32>
    %187 = vector.extract_strided_slice %185 {offsets = [0, 128], sizes = [8, 128], strides = [1, 1]} : vector<8x384xf32> to vector<8x128xf32>
    %188 = vector.extract_strided_slice %185 {offsets = [0, 256], sizes = [8, 128], strides = [1, 1]} : vector<8x384xf32> to vector<8x128xf32>
    %189 = vector.extract_strided_slice %179 {offsets = [0, 384], sizes = [8, 128], strides = [1, 1]} : vector<8x512xf32> to vector<8x128xf32>
    %190 = math.tanh %189 : vector<8x128xf32>
    %191 = arith.mulf %187, %173 : vector<8x128xf32>
    %192 = arith.mulf %186, %190 : vector<8x128xf32>
    %193 = arith.addf %191, %192 : vector<8x128xf32>
    %194 = math.tanh %193 : vector<8x128xf32>
    %195 = arith.mulf %188, %194 : vector<8x128xf32>
    %c0_36 = arith.constant 0 : index
    %c0_37 = arith.constant 0 : index
    %196 = vector.load %arg11[%c0_36, %c0_37] : memref<80x128xf32, #tpu.memory_space<vmem>>, vector<8x128xf32>
    tpu.vector_store %arg11[%c0_36, %c0_37], %195 {strides = array<i32>} : memref<80x128xf32, #tpu.memory_space<vmem>>, vector<8x128xf32>,
    %197 = vector.extract_strided_slice %11 {offsets = [8, 0], sizes = [8, 512], strides = [1, 1]} : vector<80x512xf32> to vector<8x512xf32>
    %198 = arith.truncf %195 : vector<8x128xf32> to vector<8x128xbf16>
    %cst_38 = arith.constant dense<0.000000e+00> : vector<8x512xf32>
    %199 = tpu.matmul %198, %13, %cst_38 {dimension_numbers = #tpu.dot_dimension_numbers<[1], [0], [0], [1], [0, 0, 1, 1], [], []>} : vector<8x128xbf16>, vector<128x512xbf16>, vector<8x512xf32> -> vector<8x512xf32>
    %200 = arith.addf %197, %199 : vector<8x512xf32>
    %201 = vector.extract_strided_slice %200 {offsets = [0, 0], sizes = [8, 384], strides = [1, 1]} : vector<8x512xf32> to vector<8x384xf32>
    %202 = arith.negf %201 : vector<8x384xf32>
    %203 = math.exp %202 : vector<8x384xf32>
    %cst_39 = arith.constant 1.000000e+00 : f32
    %204 = vector.broadcast %cst_39 : f32 to vector<8x384xf32>
    %205 = arith.addf %204, %203 : vector<8x384xf32>
    %206 = arith.divf %204, %205 : vector<8x384xf32>
    %207 = vector.extract_strided_slice %206 {offsets = [0, 0], sizes = [8, 128], strides = [1, 1]} : vector<8x384xf32> to vector<8x128xf32>
    %208 = vector.extract_strided_slice %206 {offsets = [0, 128], sizes = [8, 128], strides = [1, 1]} : vector<8x384xf32> to vector<8x128xf32>
    %209 = vector.extract_strided_slice %206 {offsets = [0, 256], sizes = [8, 128], strides = [1, 1]} : vector<8x384xf32> to vector<8x128xf32>
    %210 = vector.extract_strided_slice %200 {offsets = [0, 384], sizes = [8, 128], strides = [1, 1]} : vector<8x512xf32> to vector<8x128xf32>
    %211 = math.tanh %210 : vector<8x128xf32>
    %212 = arith.mulf %208, %193 : vector<8x128xf32>
    %213 = arith.mulf %207, %211 : vector<8x128xf32>
    %214 = arith.addf %212, %213 : vector<8x128xf32>
    %215 = math.tanh %214 : vector<8x128xf32>
    %216 = arith.mulf %209, %215 : vector<8x128xf32>
    %c8 = arith.constant 8 : index
    %c0_40 = arith.constant 0 : index
    %217 = vector.load %arg11[%c8, %c0_40] : memref<80x128xf32, #tpu.memory_space<vmem>>, vector<8x128xf32>
    tpu.vector_store %arg11[%c8, %c0_40], %216 {strides = array<i32>} : memref<80x128xf32, #tpu.memory_space<vmem>>, vector<8x128xf32>,
    %218 = vector.extract_strided_slice %11 {offsets = [16, 0], sizes = [8, 512], strides = [1, 1]} : vector<80x512xf32> to vector<8x512xf32>
    %219 = arith.truncf %216 : vector<8x128xf32> to vector<8x128xbf16>
    %cst_41 = arith.constant dense<0.000000e+00> : vector<8x512xf32>
    %220 = tpu.matmul %219, %13, %cst_41 {dimension_numbers = #tpu.dot_dimension_numbers<[1], [0], [0], [1], [0, 0, 1, 1], [], []>} : vector<8x128xbf16>, vector<128x512xbf16>, vector<8x512xf32> -> vector<8x512xf32>
    %221 = arith.addf %218, %220 : vector<8x512xf32>
    %222 = vector.extract_strided_slice %221 {offsets = [0, 0], sizes = [8, 384], strides = [1, 1]} : vector<8x512xf32> to vector<8x384xf32>
    %223 = arith.negf %222 : vector<8x384xf32>
    %224 = math.exp %223 : vector<8x384xf32>
    %cst_42 = arith.constant 1.000000e+00 : f32
    %225 = vector.broadcast %cst_42 : f32 to vector<8x384xf32>
    %226 = arith.addf %225, %224 : vector<8x384xf32>
    %227 = arith.divf %225, %226 : vector<8x384xf32>
    %228 = vector.extract_strided_slice %227 {offsets = [0, 0], sizes = [8, 128], strides = [1, 1]} : vector<8x384xf32> to vector<8x128xf32>
    %229 = vector.extract_strided_slice %227 {offsets = [0, 128], sizes = [8, 128], strides = [1, 1]} : vector<8x384xf32> to vector<8x128xf32>
    %230 = vector.extract_strided_slice %227 {offsets = [0, 256], sizes = [8, 128], strides = [1, 1]} : vector<8x384xf32> to vector<8x128xf32>
    %231 = vector.extract_strided_slice %221 {offsets = [0, 384], sizes = [8, 128], strides = [1, 1]} : vector<8x512xf32> to vector<8x128xf32>
    %232 = math.tanh %231 : vector<8x128xf32>
    %233 = arith.mulf %229, %214 : vector<8x128xf32>
    %234 = arith.mulf %228, %232 : vector<8x128xf32>
    %235 = arith.addf %233, %234 : vector<8x128xf32>
    %236 = math.tanh %235 : vector<8x128xf32>
    %237 = arith.mulf %230, %236 : vector<8x128xf32>
    %c16 = arith.constant 16 : index
    %c0_43 = arith.constant 0 : index
    %238 = vector.load %arg11[%c16, %c0_43] : memref<80x128xf32, #tpu.memory_space<vmem>>, vector<8x128xf32>
    tpu.vector_store %arg11[%c16, %c0_43], %237 {strides = array<i32>} : memref<80x128xf32, #tpu.memory_space<vmem>>, vector<8x128xf32>,
    %239 = vector.extract_strided_slice %11 {offsets = [24, 0], sizes = [8, 512], strides = [1, 1]} : vector<80x512xf32> to vector<8x512xf32>
    %240 = arith.truncf %237 : vector<8x128xf32> to vector<8x128xbf16>
    %cst_44 = arith.constant dense<0.000000e+00> : vector<8x512xf32>
    %241 = tpu.matmul %240, %13, %cst_44 {dimension_numbers = #tpu.dot_dimension_numbers<[1], [0], [0], [1], [0, 0, 1, 1], [], []>} : vector<8x128xbf16>, vector<128x512xbf16>, vector<8x512xf32> -> vector<8x512xf32>
    %242 = arith.addf %239, %241 : vector<8x512xf32>
    %243 = vector.extract_strided_slice %242 {offsets = [0, 0], sizes = [8, 384], strides = [1, 1]} : vector<8x512xf32> to vector<8x384xf32>
    %244 = arith.negf %243 : vector<8x384xf32>
    %245 = math.exp %244 : vector<8x384xf32>
    %cst_45 = arith.constant 1.000000e+00 : f32
    %246 = vector.broadcast %cst_45 : f32 to vector<8x384xf32>
    %247 = arith.addf %246, %245 : vector<8x384xf32>
    %248 = arith.divf %246, %247 : vector<8x384xf32>
    %249 = vector.extract_strided_slice %248 {offsets = [0, 0], sizes = [8, 128], strides = [1, 1]} : vector<8x384xf32> to vector<8x128xf32>
    %250 = vector.extract_strided_slice %248 {offsets = [0, 128], sizes = [8, 128], strides = [1, 1]} : vector<8x384xf32> to vector<8x128xf32>
    %251 = vector.extract_strided_slice %248 {offsets = [0, 256], sizes = [8, 128], strides = [1, 1]} : vector<8x384xf32> to vector<8x128xf32>
    %252 = vector.extract_strided_slice %242 {offsets = [0, 384], sizes = [8, 128], strides = [1, 1]} : vector<8x512xf32> to vector<8x128xf32>
    %253 = math.tanh %252 : vector<8x128xf32>
    %254 = arith.mulf %250, %235 : vector<8x128xf32>
    %255 = arith.mulf %249, %253 : vector<8x128xf32>
    %256 = arith.addf %254, %255 : vector<8x128xf32>
    %257 = math.tanh %256 : vector<8x128xf32>
    %258 = arith.mulf %251, %257 : vector<8x128xf32>
    %c24 = arith.constant 24 : index
    %c0_46 = arith.constant 0 : index
    %259 = vector.load %arg11[%c24, %c0_46] : memref<80x128xf32, #tpu.memory_space<vmem>>, vector<8x128xf32>
    tpu.vector_store %arg11[%c24, %c0_46], %258 {strides = array<i32>} : memref<80x128xf32, #tpu.memory_space<vmem>>, vector<8x128xf32>,
    %260 = vector.extract_strided_slice %11 {offsets = [32, 0], sizes = [8, 512], strides = [1, 1]} : vector<80x512xf32> to vector<8x512xf32>
    %261 = arith.truncf %258 : vector<8x128xf32> to vector<8x128xbf16>
    %cst_47 = arith.constant dense<0.000000e+00> : vector<8x512xf32>
    %262 = tpu.matmul %261, %13, %cst_47 {dimension_numbers = #tpu.dot_dimension_numbers<[1], [0], [0], [1], [0, 0, 1, 1], [], []>} : vector<8x128xbf16>, vector<128x512xbf16>, vector<8x512xf32> -> vector<8x512xf32>
    %263 = arith.addf %260, %262 : vector<8x512xf32>
    %264 = vector.extract_strided_slice %263 {offsets = [0, 0], sizes = [8, 384], strides = [1, 1]} : vector<8x512xf32> to vector<8x384xf32>
    %265 = arith.negf %264 : vector<8x384xf32>
    %266 = math.exp %265 : vector<8x384xf32>
    %cst_48 = arith.constant 1.000000e+00 : f32
    %267 = vector.broadcast %cst_48 : f32 to vector<8x384xf32>
    %268 = arith.addf %267, %266 : vector<8x384xf32>
    %269 = arith.divf %267, %268 : vector<8x384xf32>
    %270 = vector.extract_strided_slice %269 {offsets = [0, 0], sizes = [8, 128], strides = [1, 1]} : vector<8x384xf32> to vector<8x128xf32>
    %271 = vector.extract_strided_slice %269 {offsets = [0, 128], sizes = [8, 128], strides = [1, 1]} : vector<8x384xf32> to vector<8x128xf32>
    %272 = vector.extract_strided_slice %269 {offsets = [0, 256], sizes = [8, 128], strides = [1, 1]} : vector<8x384xf32> to vector<8x128xf32>
    %273 = vector.extract_strided_slice %263 {offsets = [0, 384], sizes = [8, 128], strides = [1, 1]} : vector<8x512xf32> to vector<8x128xf32>
    %274 = math.tanh %273 : vector<8x128xf32>
    %275 = arith.mulf %271, %256 : vector<8x128xf32>
    %276 = arith.mulf %270, %274 : vector<8x128xf32>
    %277 = arith.addf %275, %276 : vector<8x128xf32>
    %278 = math.tanh %277 : vector<8x128xf32>
    %279 = arith.mulf %272, %278 : vector<8x128xf32>
    %c32 = arith.constant 32 : index
    %c0_49 = arith.constant 0 : index
    %280 = vector.load %arg11[%c32, %c0_49] : memref<80x128xf32, #tpu.memory_space<vmem>>, vector<8x128xf32>
    tpu.vector_store %arg11[%c32, %c0_49], %279 {strides = array<i32>} : memref<80x128xf32, #tpu.memory_space<vmem>>, vector<8x128xf32>,
    %281 = vector.extract_strided_slice %11 {offsets = [40, 0], sizes = [8, 512], strides = [1, 1]} : vector<80x512xf32> to vector<8x512xf32>
    %282 = arith.truncf %279 : vector<8x128xf32> to vector<8x128xbf16>
    %cst_50 = arith.constant dense<0.000000e+00> : vector<8x512xf32>
    %283 = tpu.matmul %282, %13, %cst_50 {dimension_numbers = #tpu.dot_dimension_numbers<[1], [0], [0], [1], [0, 0, 1, 1], [], []>} : vector<8x128xbf16>, vector<128x512xbf16>, vector<8x512xf32> -> vector<8x512xf32>
    %284 = arith.addf %281, %283 : vector<8x512xf32>
    %285 = vector.extract_strided_slice %284 {offsets = [0, 0], sizes = [8, 384], strides = [1, 1]} : vector<8x512xf32> to vector<8x384xf32>
    %286 = arith.negf %285 : vector<8x384xf32>
    %287 = math.exp %286 : vector<8x384xf32>
    %cst_51 = arith.constant 1.000000e+00 : f32
    %288 = vector.broadcast %cst_51 : f32 to vector<8x384xf32>
    %289 = arith.addf %288, %287 : vector<8x384xf32>
    %290 = arith.divf %288, %289 : vector<8x384xf32>
    %291 = vector.extract_strided_slice %290 {offsets = [0, 0], sizes = [8, 128], strides = [1, 1]} : vector<8x384xf32> to vector<8x128xf32>
    %292 = vector.extract_strided_slice %290 {offsets = [0, 128], sizes = [8, 128], strides = [1, 1]} : vector<8x384xf32> to vector<8x128xf32>
    %293 = vector.extract_strided_slice %290 {offsets = [0, 256], sizes = [8, 128], strides = [1, 1]} : vector<8x384xf32> to vector<8x128xf32>
    %294 = vector.extract_strided_slice %284 {offsets = [0, 384], sizes = [8, 128], strides = [1, 1]} : vector<8x512xf32> to vector<8x128xf32>
    %295 = math.tanh %294 : vector<8x128xf32>
    %296 = arith.mulf %292, %277 : vector<8x128xf32>
    %297 = arith.mulf %291, %295 : vector<8x128xf32>
    %298 = arith.addf %296, %297 : vector<8x128xf32>
    %299 = math.tanh %298 : vector<8x128xf32>
    %300 = arith.mulf %293, %299 : vector<8x128xf32>
    %c40 = arith.constant 40 : index
    %c0_52 = arith.constant 0 : index
    %301 = vector.load %arg11[%c40, %c0_52] : memref<80x128xf32, #tpu.memory_space<vmem>>, vector<8x128xf32>
    tpu.vector_store %arg11[%c40, %c0_52], %300 {strides = array<i32>} : memref<80x128xf32, #tpu.memory_space<vmem>>, vector<8x128xf32>,
    %302 = vector.extract_strided_slice %11 {offsets = [48, 0], sizes = [8, 512], strides = [1, 1]} : vector<80x512xf32> to vector<8x512xf32>
    %303 = arith.truncf %300 : vector<8x128xf32> to vector<8x128xbf16>
    %cst_53 = arith.constant dense<0.000000e+00> : vector<8x512xf32>
    %304 = tpu.matmul %303, %13, %cst_53 {dimension_numbers = #tpu.dot_dimension_numbers<[1], [0], [0], [1], [0, 0, 1, 1], [], []>} : vector<8x128xbf16>, vector<128x512xbf16>, vector<8x512xf32> -> vector<8x512xf32>
    %305 = arith.addf %302, %304 : vector<8x512xf32>
    %306 = vector.extract_strided_slice %305 {offsets = [0, 0], sizes = [8, 384], strides = [1, 1]} : vector<8x512xf32> to vector<8x384xf32>
    %307 = arith.negf %306 : vector<8x384xf32>
    %308 = math.exp %307 : vector<8x384xf32>
    %cst_54 = arith.constant 1.000000e+00 : f32
    %309 = vector.broadcast %cst_54 : f32 to vector<8x384xf32>
    %310 = arith.addf %309, %308 : vector<8x384xf32>
    %311 = arith.divf %309, %310 : vector<8x384xf32>
    %312 = vector.extract_strided_slice %311 {offsets = [0, 0], sizes = [8, 128], strides = [1, 1]} : vector<8x384xf32> to vector<8x128xf32>
    %313 = vector.extract_strided_slice %311 {offsets = [0, 128], sizes = [8, 128], strides = [1, 1]} : vector<8x384xf32> to vector<8x128xf32>
    %314 = vector.extract_strided_slice %311 {offsets = [0, 256], sizes = [8, 128], strides = [1, 1]} : vector<8x384xf32> to vector<8x128xf32>
    %315 = vector.extract_strided_slice %305 {offsets = [0, 384], sizes = [8, 128], strides = [1, 1]} : vector<8x512xf32> to vector<8x128xf32>
    %316 = math.tanh %315 : vector<8x128xf32>
    %317 = arith.mulf %313, %298 : vector<8x128xf32>
    %318 = arith.mulf %312, %316 : vector<8x128xf32>
    %319 = arith.addf %317, %318 : vector<8x128xf32>
    %320 = math.tanh %319 : vector<8x128xf32>
    %321 = arith.mulf %314, %320 : vector<8x128xf32>
    %c48 = arith.constant 48 : index
    %c0_55 = arith.constant 0 : index
    %322 = vector.load %arg11[%c48, %c0_55] : memref<80x128xf32, #tpu.memory_space<vmem>>, vector<8x128xf32>
    tpu.vector_store %arg11[%c48, %c0_55], %321 {strides = array<i32>} : memref<80x128xf32, #tpu.memory_space<vmem>>, vector<8x128xf32>,
    %323 = vector.extract_strided_slice %11 {offsets = [56, 0], sizes = [8, 512], strides = [1, 1]} : vector<80x512xf32> to vector<8x512xf32>
    %324 = arith.truncf %321 : vector<8x128xf32> to vector<8x128xbf16>
    %cst_56 = arith.constant dense<0.000000e+00> : vector<8x512xf32>
    %325 = tpu.matmul %324, %13, %cst_56 {dimension_numbers = #tpu.dot_dimension_numbers<[1], [0], [0], [1], [0, 0, 1, 1], [], []>} : vector<8x128xbf16>, vector<128x512xbf16>, vector<8x512xf32> -> vector<8x512xf32>
    %326 = arith.addf %323, %325 : vector<8x512xf32>
    %327 = vector.extract_strided_slice %326 {offsets = [0, 0], sizes = [8, 384], strides = [1, 1]} : vector<8x512xf32> to vector<8x384xf32>
    %328 = arith.negf %327 : vector<8x384xf32>
    %329 = math.exp %328 : vector<8x384xf32>
    %cst_57 = arith.constant 1.000000e+00 : f32
    %330 = vector.broadcast %cst_57 : f32 to vector<8x384xf32>
    %331 = arith.addf %330, %329 : vector<8x384xf32>
    %332 = arith.divf %330, %331 : vector<8x384xf32>
    %333 = vector.extract_strided_slice %332 {offsets = [0, 0], sizes = [8, 128], strides = [1, 1]} : vector<8x384xf32> to vector<8x128xf32>
    %334 = vector.extract_strided_slice %332 {offsets = [0, 128], sizes = [8, 128], strides = [1, 1]} : vector<8x384xf32> to vector<8x128xf32>
    %335 = vector.extract_strided_slice %332 {offsets = [0, 256], sizes = [8, 128], strides = [1, 1]} : vector<8x384xf32> to vector<8x128xf32>
    %336 = vector.extract_strided_slice %326 {offsets = [0, 384], sizes = [8, 128], strides = [1, 1]} : vector<8x512xf32> to vector<8x128xf32>
    %337 = math.tanh %336 : vector<8x128xf32>
    %338 = arith.mulf %334, %319 : vector<8x128xf32>
    %339 = arith.mulf %333, %337 : vector<8x128xf32>
    %340 = arith.addf %338, %339 : vector<8x128xf32>
    %341 = math.tanh %340 : vector<8x128xf32>
    %342 = arith.mulf %335, %341 : vector<8x128xf32>
    %c56 = arith.constant 56 : index
    %c0_58 = arith.constant 0 : index
    %343 = vector.load %arg11[%c56, %c0_58] : memref<80x128xf32, #tpu.memory_space<vmem>>, vector<8x128xf32>
    tpu.vector_store %arg11[%c56, %c0_58], %342 {strides = array<i32>} : memref<80x128xf32, #tpu.memory_space<vmem>>, vector<8x128xf32>,
    %344 = vector.extract_strided_slice %11 {offsets = [64, 0], sizes = [8, 512], strides = [1, 1]} : vector<80x512xf32> to vector<8x512xf32>
    %345 = arith.truncf %342 : vector<8x128xf32> to vector<8x128xbf16>
    %cst_59 = arith.constant dense<0.000000e+00> : vector<8x512xf32>
    %346 = tpu.matmul %345, %13, %cst_59 {dimension_numbers = #tpu.dot_dimension_numbers<[1], [0], [0], [1], [0, 0, 1, 1], [], []>} : vector<8x128xbf16>, vector<128x512xbf16>, vector<8x512xf32> -> vector<8x512xf32>
    %347 = arith.addf %344, %346 : vector<8x512xf32>
    %348 = vector.extract_strided_slice %347 {offsets = [0, 0], sizes = [8, 384], strides = [1, 1]} : vector<8x512xf32> to vector<8x384xf32>
    %349 = arith.negf %348 : vector<8x384xf32>
    %350 = math.exp %349 : vector<8x384xf32>
    %cst_60 = arith.constant 1.000000e+00 : f32
    %351 = vector.broadcast %cst_60 : f32 to vector<8x384xf32>
    %352 = arith.addf %351, %350 : vector<8x384xf32>
    %353 = arith.divf %351, %352 : vector<8x384xf32>
    %354 = vector.extract_strided_slice %353 {offsets = [0, 0], sizes = [8, 128], strides = [1, 1]} : vector<8x384xf32> to vector<8x128xf32>
    %355 = vector.extract_strided_slice %353 {offsets = [0, 128], sizes = [8, 128], strides = [1, 1]} : vector<8x384xf32> to vector<8x128xf32>
    %356 = vector.extract_strided_slice %353 {offsets = [0, 256], sizes = [8, 128], strides = [1, 1]} : vector<8x384xf32> to vector<8x128xf32>
    %357 = vector.extract_strided_slice %347 {offsets = [0, 384], sizes = [8, 128], strides = [1, 1]} : vector<8x512xf32> to vector<8x128xf32>
    %358 = math.tanh %357 : vector<8x128xf32>
    %359 = arith.mulf %355, %340 : vector<8x128xf32>
    %360 = arith.mulf %354, %358 : vector<8x128xf32>
    %361 = arith.addf %359, %360 : vector<8x128xf32>
    %362 = math.tanh %361 : vector<8x128xf32>
    %363 = arith.mulf %356, %362 : vector<8x128xf32>
    %c64 = arith.constant 64 : index
    %c0_61 = arith.constant 0 : index
    %364 = vector.load %arg11[%c64, %c0_61] : memref<80x128xf32, #tpu.memory_space<vmem>>, vector<8x128xf32>
    tpu.vector_store %arg11[%c64, %c0_61], %363 {strides = array<i32>} : memref<80x128xf32, #tpu.memory_space<vmem>>, vector<8x128xf32>,
    %365 = vector.extract_strided_slice %11 {offsets = [72, 0], sizes = [8, 512], strides = [1, 1]} : vector<80x512xf32> to vector<8x512xf32>
    %366 = arith.truncf %363 : vector<8x128xf32> to vector<8x128xbf16>
    %cst_62 = arith.constant dense<0.000000e+00> : vector<8x512xf32>
    %367 = tpu.matmul %366, %13, %cst_62 {dimension_numbers = #tpu.dot_dimension_numbers<[1], [0], [0], [1], [0, 0, 1, 1], [], []>} : vector<8x128xbf16>, vector<128x512xbf16>, vector<8x512xf32> -> vector<8x512xf32>
    %368 = arith.addf %365, %367 : vector<8x512xf32>
    %369 = vector.extract_strided_slice %368 {offsets = [0, 0], sizes = [8, 384], strides = [1, 1]} : vector<8x512xf32> to vector<8x384xf32>
    %370 = arith.negf %369 : vector<8x384xf32>
    %371 = math.exp %370 : vector<8x384xf32>
    %cst_63 = arith.constant 1.000000e+00 : f32
    %372 = vector.broadcast %cst_63 : f32 to vector<8x384xf32>
    %373 = arith.addf %372, %371 : vector<8x384xf32>
    %374 = arith.divf %372, %373 : vector<8x384xf32>
    %375 = vector.extract_strided_slice %374 {offsets = [0, 0], sizes = [8, 128], strides = [1, 1]} : vector<8x384xf32> to vector<8x128xf32>
    %376 = vector.extract_strided_slice %374 {offsets = [0, 128], sizes = [8, 128], strides = [1, 1]} : vector<8x384xf32> to vector<8x128xf32>
    %377 = vector.extract_strided_slice %374 {offsets = [0, 256], sizes = [8, 128], strides = [1, 1]} : vector<8x384xf32> to vector<8x128xf32>
    %378 = vector.extract_strided_slice %368 {offsets = [0, 384], sizes = [8, 128], strides = [1, 1]} : vector<8x512xf32> to vector<8x128xf32>
    %379 = math.tanh %378 : vector<8x128xf32>
    %380 = arith.mulf %376, %361 : vector<8x128xf32>
    %381 = arith.mulf %375, %379 : vector<8x128xf32>
    %382 = arith.addf %380, %381 : vector<8x128xf32>
    %383 = math.tanh %382 : vector<8x128xf32>
    %384 = arith.mulf %377, %383 : vector<8x128xf32>
    %c72 = arith.constant 72 : index
    %c0_64 = arith.constant 0 : index
    %385 = vector.load %arg11[%c72, %c0_64] : memref<80x128xf32, #tpu.memory_space<vmem>>, vector<8x128xf32>
    tpu.vector_store %arg11[%c72, %c0_64], %384 {strides = array<i32>} : memref<80x128xf32, #tpu.memory_space<vmem>>, vector<8x128xf32>,
    %c0_65 = arith.constant 0 : index
    %c0_66 = arith.constant 0 : index
    %386 = vector.load %arg11[%c0_65, %c0_66] : memref<80x128xf32, #tpu.memory_space<vmem>>, vector<80x128xf32>
    %387 = arith.truncf %386 : vector<80x128xf32> to vector<80x128xbf16>
    %c0_67 = arith.constant 0 : index
    %c0_68 = arith.constant 0 : index
    %388 = vector.load %arg8[%c0_67, %c0_68] : memref<128x128xbf16, #tpu.memory_space<vmem>>, vector<128x128xbf16>
    %cst_69 = arith.constant dense<0.000000e+00> : vector<80x128xf32>
    %389 = tpu.matmul %387, %388, %cst_69 {dimension_numbers = #tpu.dot_dimension_numbers<[1], [0], [0], [1], [0, 0, 1, 1], [], []>} : vector<80x128xbf16>, vector<128x128xbf16>, vector<80x128xf32> -> vector<80x128xf32>
    %c0_70 = arith.constant 0 : index
    %c0_71 = arith.constant 0 : index
    %390 = vector.load %arg9[%c0_70, %c0_71] : memref<1x128xf32, #tpu.memory_space<vmem>>, vector<1x128xf32>
    %391 = vector.broadcast %390 : vector<1x128xf32> to vector<80x128xf32>
    %392 = arith.addf %389, %391 : vector<80x128xf32>
    %c0_72 = arith.constant 0 : index
    %c0_73 = arith.constant 0 : index
    %393 = vector.load %arg10[%c0_72, %c0_73] : memref<80x128xf32, #tpu.memory_space<vmem>>, vector<80x128xf32>
    tpu.vector_store %arg10[%c0_72, %c0_73], %392 {strides = array<i32>} : memref<80x128xf32, #tpu.memory_space<vmem>>, vector<80x128xf32>,
    return
  }
}

</mosaic_0001>

<bundles_post_ra>
// kernel: model_forward.1
= control target key start
LH: loop header
LB: loop body
LE: loop exit
PB: predicated region body
PF: predicated region fallthrough
CT: control target
= control target key end

     0   :  { %v5808_v1 = vmov 0   ;;  %vm134_vm0 = vcmask 261120   ;;  %v54_v58 = vlaneseq  ;;  %vm3856_vm1 = vmmov 0   ;;  %s5797_s2 = inlined_call_operand.vmem [shape: bf16[32,512], index: 2, kind: input, shape index: {}]   ;;  %s5798_s5 = inlined_call_operand.vmem [shape: bf16[32,512], index: 5, kind: input, shape index: {}]   ;;  %s5799_s0 = inlined_call_operand.vmem [shape: bf16[64,32], index: 0, kind: input, shape index: {}]   ;;  %s5800_s1 = inlined_call_operand.vmem [shape: bf16[80,32], index: 1, kind: input, shape index: {}]   ;;  %s5801_s3 = inlined_call_operand.vmem [shape: bf16[128,512], index: 3, kind: input, shape index: {}]   ;;  %s5802_s7 = inlined_call_operand.vmem [shape: f32[1,512], index: 7, kind: input, shape index: {}]   ;;  %s5803_s4 = inlined_call_operand.vmem [shape: f32[1,512], index: 4, kind: input, shape index: {}]   ;;  %s5804_s6 = inlined_call_operand.vmem [shape: bf16[128,512], index: 6, kind: input, shape index: {}]   ;;  %s5805_s8 = inlined_call_operand.vmem [shape: bf16[128,128], index: 8, kind: input, shape index: {}]   ;;  %s5806_s9 = inlined_call_operand.vmem [shape: f32[1,128], index: 9, kind: input, shape index: {}]   ;;  %s5807_s10 = inlined_call_operand.vmem [shape: f32[80,128], index: 10, kind: output, shape index: {}]  }
   0x1   :  { %v3365_v0 = vld [vmem:[%s5797_s2 + $0x4] ss:$16 sps:$4 sm:$0xff]   ;;  %179 = vmatprep.mubr.bf16.mxu1 %v5808_v1  ;;  %445 = vmatprep.mubr.bf16.mxu0 %v5808_v1  ;;  %v3369_v3 = vld [vmem:[%s5797_s2] ss:$16 sps:$4 sm:$0xff]   ;;  %v3378_v10 = vld [vmem:[%s5797_s2 + $0x8] ss:$16 sps:$4 sm:$0xff]  }
   0x2   :  { %v3367_v2 = vld [vmem:[%s5798_s5 + $0x4] ss:$16 sps:$4 sm:$0xff]   ;;  %147 = vmatprep.subr.bf16.mxu1 %v3365_v0  ;;  %v3370_v4 = vld [vmem:[%s5798_s5] ss:$16 sps:$4 sm:$0xff]   ;;  %v3380_v11 = vld [vmem:[%s5797_s2 + $0xc] ss:$16 sps:$4 sm:$0xff]  }
   0x3   :  { %413 = vmatprep.subr.bf16.mxu0 %v3367_v2  ;;  %v3371_v5 = vld [vmem:[%s5797_s2 + $0x24] ss:$16 sps:$4 sm:$0xff]   ;;  %148 = vmatpush1.bf16.msra.mxu1 %v3369_v3  ;;  %v3375_v7 = vld [vmem:[%s5797_s2 + $0x20] ss:$16 sps:$4 sm:$0xff]   ;;  %v3978_v16 = vld [vmem:[%s5799_s0 + $0x8] sm:$0xff]   ;;  %v4283_v59 = vshrl.u32 %v54_v58, 7 }
   0x4   :  { %414 = vmatpush1.bf16.msra.mxu0 %v3370_v4  ;;  %v3373_v6 = vld [vmem:[%s5798_s5 + $0x24] ss:$16 sps:$4 sm:$0xff]   ;;  %149 = vmatprep.subr.bf16.mxu1 %v3371_v5  ;;  %v3376_v8 = vld [vmem:[%s5798_s5 + $0x20] ss:$16 sps:$4 sm:$0xff]   ;;  %v3983_v17 = vld [vmem:[%s5800_s1 + $0x8] sm:$0xff]  }
   0x5   :  { %415 = vmatprep.subr.bf16.mxu0 %v3373_v6  ;;  %v3941_v9 = vld [vmem:[%s5799_s0] sm:$0xff]   ;;  %v3391_v19 = vld [vmem:[%s5797_s2 + $0x28] ss:$16 sps:$4 sm:$0xff]   ;;  %v3393_v20 = vld [vmem:[%s5797_s2 + $0x2c] ss:$16 sps:$4 sm:$0xff]   ;;  %v56_v61 = vsub.s32 0, %v4283_v59 }
   0x6   :  { %v3952_v12 = vld [vmem:[%s5800_s1] sm:$0xff]   ;;  %v3390_v25 = vld [vmem:[%s5799_s0 + $0x10] sm:$0xff]   ;;  %v3412_v29 = vld [vmem:[%s5798_s5 + $0xc] ss:$16 sps:$4 sm:$0xff]   ;;  %v60_v62 = vsub.s32 1, %v4283_v59 }
   0x7   :  { %150 = vmatpush1.bf16.msra.mxu1 %v3375_v7  ;;  %v3961_v13 = vld [vmem:[%s5801_s3 + $0x4] ss:$16 sps:$4 sm:$0xff]   ;;  %v3966_v14 = vld [vmem:[%s5801_s3] ss:$16 sps:$4 sm:$0xff]   ;;  %v3401_v32 = vld [vmem:[%s5799_s0 + $0x18] sm:$0xff]  }
   0x8   :  { %416 = vmatpush1.bf16.msra.mxu0 %v3376_v8  ;;  %220 = vmatprep.subr.bf16.mxu1 %v3380_v11  ;;  %v3972_v15 = vld [vmem:[%s5801_s3 + $0x24] ss:$16 sps:$4 sm:$0xff]   ;;  %v3990_v18 = vld [vmem:[%s5801_s3 + $0x20] ss:$16 sps:$4 sm:$0xff]   ;;  %v4074_v33 = vld [vmem:[%s5800_s1 + $0x18] sm:$0xff]  }
   0x9   :  { %803 = vmatprep.subr.bf16.mxu0 %v3961_v13  ;;  %v4002_v21 = vld [vmem:[%s5801_s3 + $0x44] ss:$16 sps:$4 sm:$0xff]   ;;  %v4008_v22 = vld [vmem:[%s5801_s3 + $0x40] ss:$16 sps:$4 sm:$0xff]   ;;  %v3410_v39 = vld [vmem:[%s5798_s5 + $0x8] ss:$16 sps:$4 sm:$0xff]  }
   0xa   :  { %3155 = vmatmul.mubr.msk.bf16.vlgmr.msra.gmra.mrb[0].mxu1 %vm134_vm0, %v3941_v9  ;;  %v4017_v23 = vld [vmem:[%s5801_s3 + $0x64] ss:$16 sps:$4 sm:$0xff]   ;;  %v4026_v24 = vld [vmem:[%s5801_s3 + $0x60] ss:$16 sps:$4 sm:$0xff]   ;;  %v3421_v40 = vld [vmem:[%s5798_s5 + $0x2c] ss:$16 sps:$4 sm:$0xff]  }
   0xb   :  { %3176 = vmatmul.mubr.msk.bf16.vlgmr.msra.gmra.mrb[0].mxu0 %vm134_vm0, %v3952_v12  ;;  %221 = vmatpush1.bf16.msra.mxu1 %v3378_v10  ;;  %v4034_v26 = vld [vmem:[%s5800_s1 + $0x10] sm:$0xff]   ;;  %v4108_v38 = vld [vmem:[%s5800_s1 + $0x20] sm:$0xff]   ;;  %v3419_v41 = vld [vmem:[%s5798_s5 + $0x28] ss:$16 sps:$4 sm:$0xff]  }
   0xc   :  { %189 = vmatprep.mubr.bf16.mxu1 %v5808_v1  ;;  %455 = vmatprep.mubr.bf16.mxu0 %v5808_v1  ;;  %v4040_v27 = vld [vmem:[%s5801_s3 + $0x84] ss:$16 sps:$4 sm:$0xff]   ;;  %v4045_v28 = vld [vmem:[%s5801_s3 + $0x80] ss:$16 sps:$4 sm:$0xff]   ;;  %v4130_v42 = vld [vmem:[%s5801_s3 + $0xc] ss:$16 sps:$4 sm:$0xff]  }
   0xd   :  { %804 = vmatpush1.bf16.msra.mxu0 %v3966_v14  ;;  %222 = vmatprep.subr.bf16.mxu1 %v3393_v20  ;;  %v4057_v30 = vld [vmem:[%s5801_s3 + $0xa4] ss:$16 sps:$4 sm:$0xff]   ;;  %v4066_v31 = vld [vmem:[%s5801_s3 + $0xa0] ss:$16 sps:$4 sm:$0xff]   ;;  %v4156_v43 = vld [vmem:[%s5801_s3 + $0x8] ss:$16 sps:$4 sm:$0xff]  }
   0xe   :  { %805 = vmatprep.subr.bf16.mxu0 %v3972_v15  ;;  %v4080_v34 = vld [vmem:[%s5801_s3 + $0xc4] ss:$16 sps:$4 sm:$0xff]   ;;  %v4086_v35 = vld [vmem:[%s5801_s3 + $0xc0] ss:$16 sps:$4 sm:$0xff]   ;;  %v4162_v44 = vld [vmem:[%s5801_s3 + $0x2c] ss:$16 sps:$4 sm:$0xff]  }
   0xf   :  { %223 = vmatpush1.bf16.msra.mxu1 %v3391_v19  ;;  %v4094_v36 = vld [vmem:[%s5801_s3 + $0xe4] ss:$16 sps:$4 sm:$0xff]   ;;  %v4103_v37 = vld [vmem:[%s5801_s3 + $0xe0] ss:$16 sps:$4 sm:$0xff]   ;;  %v4171_v45 = vld [vmem:[%s5801_s3 + $0x28] ss:$16 sps:$4 sm:$0xff]  }
  0x10   :  { %496 = vmatprep.subr.bf16.mxu1 %v3412_v29  ;;  %v4178_v46 = vld [vmem:[%s5801_s3 + $0x4c] ss:$16 sps:$4 sm:$0xff]   ;;  %v4186_v47 = vld [vmem:[%s5801_s3 + $0x48] ss:$16 sps:$4 sm:$0xff]   ;;  %v4288_v60 = vld [vmem:[%s5802_s7] sm:$0xf] }
  0x11   :  { %806 = vmatpush1.bf16.msra.mxu0 %v3990_v18  ;;  %v4192_v48 = vld [vmem:[%s5801_s3 + $0x6c] ss:$16 sps:$4 sm:$0xff]   ;;  %v4203_v49 = vld [vmem:[%s5801_s3 + $0x68] ss:$16 sps:$4 sm:$0xff]   ;;  %v4293_v63 = vrot.slane %v4288_v60, %v56_v61  ;;  %v4298_v0 = vld [vmem:[%s5803_s4] sm:$0xf]  ;;  %v4301_v2 = vrot.slane %v4288_v60, %v60_v62 }
  0x12   :  { %3156 = vmatmul.mubr.msk.bf16.gmra.mrb[4].mxu1 %vm134_vm0, %v3978_v16  ;;  %807 = vmatprep.subr.bf16.mxu0 %v4002_v21  ;;  %v4209_v50 = vld [vmem:[%s5801_s3 + $0x8c] ss:$16 sps:$4 sm:$0xff]   ;;  %v4215_v51 = vld [vmem:[%s5801_s3 + $0x88] ss:$16 sps:$4 sm:$0xff]   ;;  %v4306_v5 = vrot.slane %v4298_v0, %v56_v61 }
  0x13   :  { %3177 = vmatmul.mubr.msk.bf16.gmra.mrb[4].mxu0 %vm134_vm0, %v3983_v17  ;;  %199 = vmatprep.mubr.bf16.mxu1 %v5808_v1  ;;  %v4221_v52 = vld [vmem:[%s5801_s3 + $0xac] ss:$16 sps:$4 sm:$0xff]   ;;  %v4230_v53 = vld [vmem:[%s5801_s3 + $0xa8] ss:$16 sps:$4 sm:$0xff]  }
  0x14   :  { %465 = vmatprep.mubr.bf16.mxu0 %v5808_v1  ;;  %v4236_v54 = vld [vmem:[%s5801_s3 + $0xcc] ss:$16 sps:$4 sm:$0xff]   ;;  %v4242_v55 = vld [vmem:[%s5801_s3 + $0xc8] ss:$16 sps:$4 sm:$0xff]  }
  0x15   :  { %808 = vmatpush1.bf16.msra.mxu0 %v4008_v22  ;;  %v4248_v56 = vld [vmem:[%s5801_s3 + $0xec] ss:$16 sps:$4 sm:$0xff]   ;;  %v4257_v57 = vld [vmem:[%s5801_s3 + $0xe8] ss:$16 sps:$4 sm:$0xff]  }
  0x16   :  { %809 = vmatprep.subr.bf16.mxu0 %v4017_v23 }
  0x19   :  { %810 = vmatpush1.bf16.msra.mxu0 %v4026_v24 }
  0x1a   :  { %3157 = vmatmul.mubr.msk.bf16.gmra.mrb[8].mxu1 %vm134_vm0, %v3390_v25  ;;  %811 = vmatprep.subr.bf16.mxu0 %v4040_v27 }
  0x1b   :  { %3178 = vmatmul.mubr.msk.bf16.gmra.mrb[8].mxu0 %vm134_vm0, %v4034_v26  ;;  %209 = vmatprep.mubr.bf16.mxu1 %v5808_v1 }
  0x1c   :  { %475 = vmatprep.mubr.bf16.mxu0 %v5808_v1 }
  0x1d   :  { %812 = vmatpush1.bf16.msra.mxu0 %v4045_v28 }
  0x1e   :  { %813 = vmatprep.subr.bf16.mxu0 %v4057_v30 }
  0x21   :  { %814 = vmatpush1.bf16.msra.mxu0 %v4066_v31 }
  0x22   :  { %3158 = vmatmul.mubr.msk.bf16.gmra.mrb[12].mxu1 %vm134_vm0, %v3401_v32  ;;  %815 = vmatprep.subr.bf16.mxu0 %v4080_v34 }
  0x23   :  { %3179 = vmatmul.mubr.msk.bf16.gmra.mrb[12].mxu0 %vm134_vm0, %v4074_v33  ;;  %252 = vmatprep.mubr.bf16.mxu1 %v5808_v1 }
  0x24   :  { %485 = vmatprep.mubr.bf16.mxu0 %v5808_v1 }
  0x25   :  { %816 = vmatpush1.bf16.msra.mxu0 %v4086_v35 }
  0x26   :  { %817 = vmatprep.subr.bf16.mxu0 %v4094_v36 }
  0x29   :  { %818 = vmatpush1.bf16.msra.mxu0 %v4103_v37 }
  0x2a   :  { %3159 = vmatmul.mubr.msk.bf16.vlgmr.msra.gmra.mrb[16].mxu1 %vm134_vm0, %v3941_v9  ;;  %914 = vmatprep.subr.bf16.mxu0 %v3961_v13  ;;  %v4314_v9 = vrot.slane %v4298_v0, %v60_v62 }
  0x2b   :  { %3180 = vmatmul.mubr.msk.bf16.gmra.mrb[16].mxu0 %vm134_vm0, %v4108_v38  ;;  %497 = vmatpush1.bf16.msra.mxu1 %v3410_v39 }
  0x2c   :  { %262 = vmatprep.mubr.bf16.mxu1 %v5808_v1  ;;  %835 = vmatprep.mubr.bf16.mxu0 %v5808_v1 }
  0x2d   :  { %498 = vmatprep.subr.bf16.mxu1 %v3421_v40 }
  0x2f   :  { %499 = vmatpush1.bf16.msra.mxu1 %v3419_v41 }
  0x30   :  { %844 = vmatprep.subr.bf16.mxu1 %v4130_v42 }
  0x32   :  { %3160 = vmatmul.mubr.msk.bf16.gmra.mrb[20].mxu1 %vm134_vm0, %v3978_v16 }
  0x33   :  { %836 = vmatmul.mubr.bf16.vlgmr.msra.gmra.mrb[20].mxu0 %v5808_v1  ;;  %272 = vmatprep.mubr.bf16.mxu1 %v5808_v1 }
  0x34   :  { %915 = vmatpush1.bf16.msra.mxu0 %v3966_v14  ;;  %946 = vmatprep.mubr.bf16.mxu0 %v5808_v1 }
  0x35   :  { %916 = vmatprep.subr.bf16.mxu0 %v3972_v15 }
  0x38   :  { %917 = vmatpush1.bf16.msra.mxu0 %v3990_v18 }
  0x39   :  { %918 = vmatprep.subr.bf16.mxu0 %v4002_v21 }
  0x3a   :  { %3161 = vmatmul.mubr.msk.bf16.gmra.mrb[24].mxu1 %vm134_vm0, %v3390_v25 }
  0x3b   :  { %282 = vmatprep.mubr.bf16.mxu1 %v5808_v1 }
  0x3c   :  { %919 = vmatpush1.bf16.msra.mxu0 %v4008_v22 }
  0x3d   :  { %920 = vmatprep.subr.bf16.mxu0 %v4017_v23 }
  0x40   :  { %921 = vmatpush1.bf16.msra.mxu0 %v4026_v24 }
  0x41   :  { %922 = vmatprep.subr.bf16.mxu0 %v4040_v27 }
  0x42   :  { %3162 = vmatmul.mubr.msk.bf16.gmra.mrb[28].mxu1 %vm134_vm0, %v3401_v32 }
  0x43   :  { %528 = vmatprep.mubr.bf16.mxu1 %v5808_v1 }
  0x44   :  { %923 = vmatpush1.bf16.msra.mxu0 %v4045_v28 }
  0x45   :  { %924 = vmatprep.subr.bf16.mxu0 %v4057_v30 }
  0x48   :  { %925 = vmatpush1.bf16.msra.mxu0 %v4066_v31 }
  0x49   :  { %926 = vmatprep.subr.bf16.mxu0 %v4080_v34 }
  0x4a   :  { %3181 = vmatmul.mubr.msk.bf16.vlgmr.msra.gmra.mrb[32].mxu1 %vm134_vm0, %v3952_v12 }
  0x4b   :  { %845 = vmatpush1.bf16.msra.mxu1 %v4156_v43  ;;  %538 = vmatprep.mubr.bf16.mxu1 %v5808_v1 }
  0x4c   :  { %846 = vmatprep.subr.bf16.mxu1 %v4162_v44  ;;  %927 = vmatpush1.bf16.msra.mxu0 %v4086_v35 }
  0x4d   :  { %928 = vmatprep.subr.bf16.mxu0 %v4094_v36 }
  0x4f   :  { %847 = vmatpush1.bf16.msra.mxu1 %v4171_v45 }
  0x50   :  { %848 = vmatprep.subr.bf16.mxu1 %v4178_v46  ;;  %929 = vmatpush1.bf16.msra.mxu0 %v4103_v37 }
  0x51   :  { %1025 = vmatprep.subr.bf16.mxu0 %v3961_v13 }
  0x52   :  { %3182 = vmatmul.mubr.msk.bf16.gmra.mrb[36].mxu1 %vm134_vm0, %v3983_v17 }
  0x53   :  { %849 = vmatpush1.bf16.msra.mxu1 %v4186_v47  ;;  %548 = vmatprep.mubr.bf16.mxu1 %v5808_v1 }
  0x54   :  { %850 = vmatprep.subr.bf16.mxu1 %v4192_v48 }
  0x57   :  { %851 = vmatpush1.bf16.msra.mxu1 %v4203_v49 }
  0x58   :  { %852 = vmatprep.subr.bf16.mxu1 %v4209_v50 }
  0x5a   :  { %3183 = vmatmul.mubr.msk.bf16.gmra.mrb[40].mxu1 %vm134_vm0, %v4034_v26 }
  0x5b   :  { %853 = vmatpush1.bf16.msra.mxu1 %v4215_v51  ;;  %558 = vmatprep.mubr.bf16.mxu1 %v5808_v1 }
  0x5c   :  { %854 = vmatprep.subr.bf16.mxu1 %v4221_v52 }
  0x5f   :  { %855 = vmatpush1.bf16.msra.mxu1 %v4230_v53 }
  0x60   :  { %856 = vmatprep.subr.bf16.mxu1 %v4236_v54 }
  0x62   :  { %3184 = vmatmul.mubr.msk.bf16.gmra.mrb[44].mxu1 %vm134_vm0, %v4074_v33 }
  0x63   :  { %568 = vmatprep.mubr.bf16.mxu1 %v5808_v1  ;;  %857 = vmatpush1.bf16.msra.mxu1 %v4242_v55 }
  0x64   :  { %858 = vmatprep.subr.bf16.mxu1 %v4248_v56 }
  0x67   :  { %859 = vmatpush1.bf16.msra.mxu1 %v4257_v57 }
  0x68   :  { %955 = vmatprep.subr.bf16.mxu1 %v4130_v42 }
  0x6a   :  { %3185 = vmatmul.mubr.msk.bf16.gmra.mrb[48].mxu1 %vm134_vm0, %v4108_v38 }
  0x6b   :  { %876 = vmatprep.mubr.bf16.mxu1 %v5808_v1 }
  0x72   :  { %877 = vmatmul.mubr.bf16.vlgmr.msra.gmra.mrb[52].mxu1 %v5808_v1 }
  0x73   :  { %956 = vmatpush1.bf16.msra.mxu1 %v4156_v43  ;;  %987 = vmatprep.mubr.bf16.mxu1 %v5808_v1 }
  0x74   :  { %957 = vmatprep.subr.bf16.mxu1 %v4162_v44 }
  0x77   :  { %958 = vmatpush1.bf16.msra.mxu1 %v4171_v45 }
  0x78   :  { %959 = vmatprep.subr.bf16.mxu1 %v4178_v46 }
  0x7b   :  { %960 = vmatpush1.bf16.msra.mxu1 %v4186_v47 }
  0x7c   :  { %961 = vmatprep.subr.bf16.mxu1 %v4192_v48 }
  0x7f   :  { %962 = vmatpush1.bf16.msra.mxu1 %v4203_v49 }
  0x80   :  { %963 = vmatprep.subr.bf16.mxu1 %v4209_v50 }
  0x83   :  { %964 = vmatpush1.bf16.msra.mxu1 %v4215_v51 }
  0x84   :  { %965 = vmatprep.subr.bf16.mxu1 %v4221_v52 }
  0x87   :  { %966 = vmatpush1.bf16.msra.mxu1 %v4230_v53 }
  0x88   :  { %967 = vmatprep.subr.bf16.mxu1 %v4236_v54 }
  0x8b   :  { %968 = vmatpush1.bf16.msra.mxu1 %v4242_v55 }
  0x8c   :  { %969 = vmatprep.subr.bf16.mxu1 %v4248_v56 }
  0x8f   :  { %970 = vmatpush1.bf16.msra.mxu1 %v4257_v57 }
  0x90   :  { %1066 = vmatprep.subr.bf16.mxu1 %v4130_v42 }
  0xdd   :  { %v4303_v3 = vpop.f32.mrb[0].mxu1 }
  0xde   :  { %v447_v4 = vpop.f32.mrb[0].mxu0  ;;  %v4308_v6 = vpop.f32.mrb[1].mxu1 }
  0xdf   :  { %v4311_v7 = vadd.f32 %v447_v4, %v4293_v63  ;;  %v449_v8 = vpop.f32.mrb[1].mxu0  ;;  %v185_v10 = vpop.f32.mrb[2].mxu1 }
  0xe0   :  { %v4317_v11 = vadd.f32 %v449_v8, %v4301_v2  ;;  %v451_v12 = vpop.f32.mrb[2].mxu0  ;;  %v4320_v16 = vadd.f32 %v185_v10, %v4306_v5  ;;  %v187_v17 = vpop.f32.mrb[3].mxu1 }
  0xe1   :  { %5810 = vst [vmem:[#allocation3_spill] sm:$0xff] %v4311_v7  ;;  %v4323_v19 = vadd.f32 %v451_v12, %v4293_v63  ;;  %v453_v20 = vpop.f32.mrb[3].mxu0  ;;  %v4326_v25 = vadd.f32 %v187_v17, %v4314_v9 }
  0xe2   :  { %5811 = vst [vmem:[#allocation4_spill] sm:$0xff] %v4317_v11  ;;  %v4329_v26 = vadd.f32 %v453_v20, %v4301_v2 }
  0xe3   :  { %5812 = vst [vmem:[#allocation5_spill] sm:$0xff] %v4323_v19 }
  0xe4   :  { %5813 = vst [vmem:[#allocation6_spill] sm:$0xff] %v4329_v26 }
  0xe5   :  { %v191_v29 = vpop.f32.mrb[4].mxu1 }
  0xe6   :  { %v457_v32 = vpop.f32.mrb[4].mxu0  ;;  %v4332_v33 = vadd.f32 %v191_v29, %v4306_v5  ;;  %v193_v38 = vpop.f32.mrb[5].mxu1 }
  0xe7   :  { %v4335_v39 = vadd.f32 %v457_v32, %v4293_v63  ;;  %v459_v40 = vpop.f32.mrb[5].mxu0  ;;  %v4338_v41 = vadd.f32 %v193_v38, %v4314_v9  ;;  %v195_v58 = vpop.f32.mrb[6].mxu1 }
  0xe8   :  { %v4341_v61 = vadd.f32 %v459_v40, %v4301_v2  ;;  %v461_v62 = vpop.f32.mrb[6].mxu0  ;;  %v4344_v4 = vadd.f32 %v195_v58, %v4306_v5  ;;  %v197_v8 = vpop.f32.mrb[7].mxu1 }
  0xe9   :  { %5814 = vst [vmem:[#allocation7_spill] sm:$0xff] %v4335_v39  ;;  %v4347_v10 = vadd.f32 %v461_v62, %v4293_v63  ;;  %v463_v12 = vpop.f32.mrb[7].mxu0  ;;  %v4350_v17 = vadd.f32 %v197_v8, %v4314_v9 }
  0xea   :  { %5815 = vst [vmem:[#allocation8_spill] sm:$0xff] %v4341_v61  ;;  %v4353_v20 = vadd.f32 %v463_v12, %v4301_v2 }
  0xeb   :  { %5816 = vst [vmem:[#allocation9_spill] sm:$0xff] %v4347_v10  ;;  %5817 = vst [vmem:[#allocation10_spill] sm:$0xff] %v4350_v17 }
  0xec   :  { %5818 = vst [vmem:[#allocation11_spill] sm:$0xff] %v4353_v20 }
  0xed   :  { %v201_v29 = vpop.f32.mrb[8].mxu1 }
  0xee   :  { %v467_v32 = vpop.f32.mrb[8].mxu0  ;;  %v4356_v38 = vadd.f32 %v201_v29, %v4306_v5  ;;  %v203_v40 = vpop.f32.mrb[9].mxu1 }
  0xef   :  { %v4359_v58 = vadd.f32 %v467_v32, %v4293_v63  ;;  %v469_v1 = vpop.f32.mrb[9].mxu0  ;;  %v4362_v62 = vadd.f32 %v203_v40, %v4314_v9  ;;  %v205_v10 = vpop.f32.mrb[10].mxu1 }
  0xf0   :  { %5819 = vst [vmem:[#allocation12_spill] sm:$0xff] %v4356_v38  ;;  %v4365_v8 = vadd.f32 %v469_v1, %v4301_v2  ;;  %v471_v61 = vpop.f32.mrb[10].mxu0  ;;  %v4368_v12 = vadd.f32 %v205_v10, %v4306_v5  ;;  %v207_v20 = vpop.f32.mrb[11].mxu1 }
  0xf1   :  { %5820 = vst [vmem:[#allocation13_spill] sm:$0xff] %v4359_v58  ;;  %5821 = vst [vmem:[#allocation14_spill] sm:$0xff] %v4362_v62  ;;  %v4371_v29 = vadd.f32 %v471_v61, %v4293_v63  ;;  %v473_v39 = vpop.f32.mrb[11].mxu0  ;;  %v4374_v32 = vadd.f32 %v207_v20, %v4314_v9 }
  0xf2   :  { %5822 = vst [vmem:[#allocation15_spill] sm:$0xff] %v4365_v8  ;;  %5823 = vst [vmem:[#allocation16_spill] sm:$0xff] %v4368_v12  ;;  %v4377_v58 = vadd.f32 %v473_v39, %v4301_v2 }
  0xf3   :  { %5824 = vst [vmem:[#allocation17_spill] sm:$0xff] %v4371_v29  ;;  %5825 = vst [vmem:[#allocation18_spill] sm:$0xff] %v4374_v32 }
  0xf4   :  { %5826 = vst [vmem:[#allocation19_spill] sm:$0xff] %v4377_v58 }
  0xf5   :  { %v211_v40 = vpop.f32.mrb[12].mxu1 }
  0xf6   :  { %v477_v26 = vpop.f32.mrb[12].mxu0  ;;  %v4380_v1 = vadd.f32 %v211_v40, %v4306_v5  ;;  %v213_v8 = vpop.f32.mrb[13].mxu1 }
  0xf7   :  { %v4383_v10 = vadd.f32 %v477_v26, %v4293_v63  ;;  %v479_v19 = vpop.f32.mrb[13].mxu0  ;;  %v4386_v61 = vadd.f32 %v213_v8, %v4314_v9  ;;  %v215_v29 = vpop.f32.mrb[14].mxu1  ;;  %v64_v8 = vsub.s32 2, %v4283_v59 }
  0xf8   :  { %5827 = vst [vmem:[#allocation20_spill] sm:$0xff] %v4380_v1  ;;  %v4389_v20 = vadd.f32 %v479_v19, %v4301_v2  ;;  %v481_v11 = vpop.f32.mrb[14].mxu0  ;;  %v4392_v39 = vadd.f32 %v215_v29, %v4306_v5  ;;  %v217_v58 = vpop.f32.mrb[15].mxu1  ;;  %v68_v19 = vsub.s32 3, %v4283_v59 }
  0xf9   :  { %5828 = vst [vmem:[#allocation21_spill] sm:$0xff] %v4383_v10  ;;  %5829 = vst [vmem:[#allocation22_spill] sm:$0xff] %v4386_v61  ;;  %v4395_v40 = vadd.f32 %v481_v11, %v4293_v63  ;;  %v483_v7 = vpop.f32.mrb[15].mxu0  ;;  %v4398_v26 = vadd.f32 %v217_v58, %v4314_v9  ;;  %v4408_v29 = vrot.slane %v4298_v0, %v64_v8 }
  0xfa   :  { %5830 = vst [vmem:[#allocation23_spill] sm:$0xff] %v4389_v20  ;;  %5831 = vst [vmem:[#allocation24_spill] sm:$0xff] %v4392_v39  ;;  %v4401_v10 = vadd.f32 %v483_v7, %v4301_v2 }
  0xfb   :  { %5832 = vst [vmem:[#allocation25_spill] sm:$0xff] %v4395_v40  ;;  %5833 = vst [vmem:[#allocation26_spill] sm:$0xff] %v4398_v26  ;;  %v4416_v40 = vrot.slane %v4298_v0, %v68_v19  ;;  %v182_v0 = vadd.f32 %v4303_v3, %v4306_v5 }
  0xfc   :  { %5834 = vst [vmem:[#allocation27_spill] sm:$0xff] %v4401_v10 }
  0xfd   :  { %v4405_v20 = vpop.f32.mrb[16].mxu1 }
  0xfe   :  { %v487_v61 = vpop.f32.mrb[16].mxu0  ;;  %v4410_v39 = vpop.f32.mrb[17].mxu1 }
  0xff   :  { %v4413_v11 = vadd.f32 %v487_v61, %v4293_v63  ;;  %v489_v58 = vpop.f32.mrb[17].mxu0  ;;  %v258_v7 = vpop.f32.mrb[18].mxu1 }
 0x100   :  { %v4419_v10 = vadd.f32 %v489_v58, %v4301_v2  ;;  %v491_v59 = vpop.f32.mrb[18].mxu0  ;;  %v4422_v26 = vadd.f32 %v258_v7, %v4408_v29  ;;  %v260_v1 = vpop.f32.mrb[19].mxu1  ;;  %v184_v58 = vadd.f32 %v4308_v6, %v4314_v9 }
 0x101   :  { %5835 = vst [vmem:[#allocation28_spill] sm:$0xff] %v4413_v11  ;;  %v4425_v32 = vadd.f32 %v491_v59, %v4293_v63  ;;  %v493_v12 = vpop.f32.mrb[19].mxu0  ;;  %v4428_v61 = vadd.f32 %v260_v1, %v4416_v40 }
 0x102   :  { %5836 = vst [vmem:[#allocation29_spill] sm:$0xff] %v4419_v10  ;;  %v4431_v11 = vadd.f32 %v493_v12, %v4301_v2 }
 0x103   :  { %5837 = vst [vmem:[#allocation30_spill] sm:$0xff] %v4425_v32 }
 0x104   :  { %5838 = vst [vmem:[#allocation31_spill] sm:$0xff] %v4431_v11 }
 0x105   :  { %v264_v10 = vpop.f32.mrb[20].mxu1 }
 0x106   :  { %v837_v7 = vpop.f32.mrb[20].mxu0  ;;  %v4438_v62 = vadd.f32 %v264_v10, %v4408_v29  ;;  %v266_v59 = vpop.f32.mrb[21].mxu1 }
 0x107   :  { %v885_v63 = vadd.f32 %v837_v7, %v182_v0  ;;  %v839_v32 = vpop.f32.mrb[21].mxu0  ;;  %v4441_v1 = vadd.f32 %v266_v59, %v4416_v40  ;;  %v268_v2 = vpop.f32.mrb[22].mxu1 }
 0x108   :  { %v886_v38 = vadd.f32 %v839_v32, %v184_v58  ;;  %v841_v12 = vpop.f32.mrb[22].mxu0  ;;  %v4444_v11 = vadd.f32 %v268_v2, %v4408_v29  ;;  %v270_v3 = vpop.f32.mrb[23].mxu1 }
 0x109   :  { %v842_v5 = vpop.f32.mrb[23].mxu0  ;;  %v4447_v6 = vadd.f32 %v270_v3, %v4416_v40 }
 0x10a   :  { %5839 = vst [vmem:[#allocation32_spill] sm:$0xff] %v4444_v11 }
 0x10b   :  { %5840 = vst [vmem:[#allocation33_spill] sm:$0xff] %v4447_v6 }
 0x10d   :  { %v274_v9 = vpop.f32.mrb[24].mxu1 }
 0x10e   :  { %v4450_v10 = vadd.f32 %v274_v9, %v4408_v29  ;;  %v276_v0 = vpop.f32.mrb[25].mxu1 }
 0x10f   :  { %v4453_v7 = vadd.f32 %v276_v0, %v4416_v40  ;;  %v278_v59 = vpop.f32.mrb[26].mxu1 }
 0x110   :  { %5841 = vst [vmem:[#allocation34_spill] sm:$0xff] %v4450_v10  ;;  %v4456_v32 = vadd.f32 %v278_v59, %v4408_v29  ;;  %v280_v58 = vpop.f32.mrb[27].mxu1 }
 0x111   :  { %5842 = vst [vmem:[#allocation35_spill] sm:$0xff] %v4453_v7  ;;  %v4459_v2 = vadd.f32 %v280_v58, %v4416_v40  ;;  %v328_v58 = vrot.slane %v4288_v60, %v68_v19 }
 0x112   :  { %5843 = vst [vmem:[#allocation36_spill] sm:$0xff] %v4456_v32  ;;  %v324_v32 = vrot.slane %v4288_v60, %v64_v8 }
 0x113   :  { %5844 = vst [vmem:[#allocation37_spill] sm:$0xff] %v4459_v2 }
 0x115   :  { %v284_v12 = vpop.f32.mrb[28].mxu1 }
 0x116   :  { %v4462_v3 = vadd.f32 %v284_v12, %v4408_v29  ;;  %v286_v5 = vpop.f32.mrb[29].mxu1 }
 0x117   :  { %v4465_v9 = vadd.f32 %v286_v5, %v4416_v40  ;;  %v288_v10 = vpop.f32.mrb[30].mxu1 }
 0x118   :  { %5845 = vst [vmem:[#allocation38_spill] sm:$0xff] %v4462_v3  ;;  %v4468_v0 = vadd.f32 %v288_v10, %v4408_v29  ;;  %v290_v7 = vpop.f32.mrb[31].mxu1 }
 0x119   :  { %5846 = vst [vmem:[#allocation39_spill] sm:$0xff] %v4465_v9  ;;  %v4471_v59 = vadd.f32 %v290_v7, %v4416_v40 }
 0x11a   :  { %5847 = vst [vmem:[#allocation40_spill] sm:$0xff] %v4468_v0 }
 0x11b   :  { %5848 = vst [vmem:[#allocation41_spill] sm:$0xff] %v4471_v59 }
 0x11d   :  { %v530_v2 = vpop.f32.mrb[32].mxu1 }
 0x11e   :  { %v4475_v6 = vadd.f32 %v530_v2, %v324_v32  ;;  %v532_v12 = vpop.f32.mrb[33].mxu1 }
 0x11f   :  { %v4477_v3 = vadd.f32 %v532_v12, %v328_v58  ;;  %v534_v5 = vpop.f32.mrb[34].mxu1 }
 0x120   :  { %5849 = vst [vmem:[#allocation42_spill] sm:$0xff] %v4475_v6  ;;  %v4479_v9 = vadd.f32 %v534_v5, %v324_v32  ;;  %v536_v17 = vpop.f32.mrb[35].mxu1 }
 0x121   :  { %5850 = vst [vmem:[#allocation43_spill] sm:$0xff] %v4477_v3  ;;  %v4481_v10 = vadd.f32 %v536_v17, %v328_v58 }
 0x122   :  { %5851 = vst [vmem:[#allocation44_spill] sm:$0xff] %v4479_v9 }
 0x123   :  { %5852 = vst [vmem:[#allocation45_spill] sm:$0xff] %v4481_v10 }
 0x125   :  { %v540_v0 = vpop.f32.mrb[36].mxu1 }
 0x126   :  { %v4483_v11 = vadd.f32 %v540_v0, %v324_v32  ;;  %v542_v7 = vpop.f32.mrb[37].mxu1 }
 0x127   :  { %v4485_v59 = vadd.f32 %v542_v7, %v328_v58  ;;  %v544_v8 = vpop.f32.mrb[38].mxu1  ;;  %v3219_v7 = vmul.f32 -1.442695, %v886_v38 }
 0x128   :  { %5853 = vst [vmem:[#allocation46_spill] sm:$0xff] %v4483_v11  ;;  %v4487_v60 = vadd.f32 %v544_v8, %v324_v32  ;;  %v546_v19 = vpop.f32.mrb[39].mxu1 }
 0x129   :  { %5854 = vst [vmem:[#allocation47_spill] sm:$0xff] %v4485_v59  ;;  %v4489_v2 = vadd.f32 %v546_v19, %v328_v58  ;;  %v3218_v59 = vmul.f32 -1.442695, %v885_v63  ;;  %3502 = vpow2.f32 %v3219_v7 }
 0x12b   :  { %5855 = vst [vmem:[#allocation48_spill] sm:$0xff] %v4489_v2  ;;  %3504 = vpow2.f32 %v3218_v59 }
 0x12d   :  { %v550_v12 = vpop.f32.mrb[40].mxu1 }
 0x12e   :  { %v4491_v3 = vadd.f32 %v550_v12, %v324_v32  ;;  %v552_v5 = vpop.f32.mrb[41].mxu1 }
 0x12f   :  { %v4493_v9 = vadd.f32 %v552_v5, %v328_v58  ;;  %v554_v17 = vpop.f32.mrb[42].mxu1 }
 0x130   :  { %5856 = vst [vmem:[#allocation49_spill] sm:$0xff] %v4491_v3  ;;  %v4495_v10 = vadd.f32 %v554_v17, %v324_v32  ;;  %v556_v0 = vpop.f32.mrb[43].mxu1 }
 0x131   :  { %5857 = vst [vmem:[#allocation50_spill] sm:$0xff] %v4493_v9  ;;  %v4497_v11 = vadd.f32 %v556_v0, %v328_v58 }
 0x132   :  { %5858 = vst [vmem:[#allocation51_spill] sm:$0xff] %v4495_v10 }
 0x133   :  { %v3503_v7 = vpop.eup %3502 }
 0x135   :  { %v560_v6 = vpop.f32.mrb[44].mxu1  ;;  %v3505_v59 = vpop.eup %3504 }
 0x136   :  { %v4499_v8 = vadd.f32 %v560_v6, %v324_v32  ;;  %v562_v19 = vpop.f32.mrb[45].mxu1 }
 0x137   :  { %v4501_v2 = vadd.f32 %v562_v19, %v328_v58  ;;  %v564_v12 = vpop.f32.mrb[46].mxu1 }
 0x138   :  { %5859 = vst [vmem:[#allocation52_spill] sm:$0xff] %v4499_v8  ;;  %v4503_v3 = vadd.f32 %v564_v12, %v324_v32  ;;  %v566_v5 = vpop.f32.mrb[47].mxu1  ;;  %v255_v12 = vadd.f32 %v4405_v20, %v4408_v29 }
 0x139   :  { %5860 = vst [vmem:[#allocation53_spill] sm:$0xff] %v4501_v2  ;;  %v4505_v9 = vadd.f32 %v566_v5, %v328_v58  ;;  %v899_v2 = vadd.f32 1.0, %v3503_v7  ;;  %v898_v5 = vadd.f32 1.0, %v3505_v59 }
 0x13a   :  { %5861 = vst [vmem:[#allocation54_spill] sm:$0xff] %v4503_v3 }
 0x13b   :  { %5862 = vst [vmem:[#allocation55_spill] sm:$0xff] %v4505_v9  ;;  %3506 = vrcp.f32 %v899_v2 }
 0x13c   :  { %3508 = vrcp.f32 %v898_v5 }
 0x13d   :  { %v570_v17 = vpop.f32.mrb[48].mxu1 }
 0x13e   :  { %v4507_v10 = vadd.f32 %v570_v17, %v324_v32  ;;  %v572_v0 = vpop.f32.mrb[49].mxu1  ;;  %v257_v17 = vadd.f32 %v4410_v39, %v4416_v40 }
 0x13f   :  { %v4509_v38 = vadd.f32 %v572_v0, %v328_v58  ;;  %v574_v63 = vpop.f32.mrb[50].mxu1 }
 0x140   :  { %5863 = vst [vmem:[#allocation56_spill] sm:$0xff] %v4507_v10  ;;  %v4511_v6 = vadd.f32 %v574_v63, %v324_v32  ;;  %v576_v8 = vpop.f32.mrb[51].mxu1 }
 0x141   :  { %5864 = vst [vmem:[#allocation57_spill] sm:$0xff] %v4509_v38  ;;  %v4513_v19 = vadd.f32 %v576_v8, %v328_v58 }
 0x142   :  { %5865 = vst [vmem:[#allocation58_spill] sm:$0xff] %v4511_v6 }
 0x143   :  { %5866 = vst [vmem:[#allocation59_spill] sm:$0xff] %v4513_v19 }
 0x145   :  { %v878_v10 = vpop.f32.mrb[52].mxu1  ;;  %v3507_v58 = vpop.eup %3506 }
 0x146   :  { %v887_v9 = vadd.f32 %v878_v10, %v255_v12  ;;  %v880_v0 = vpop.f32.mrb[53].mxu1  ;;  %v3509_v8 = vpop.eup %3508  ;;  %v908_v20 = vmul.f32 0.0, %v3507_v58 }
 0x147   :  { %v888_v38 = vadd.f32 %v880_v0, %v257_v17  ;;  %v882_v3 = vpop.f32.mrb[54].mxu1 }
 0x148   :  { %v3220_v32 = vmul.f32 -1.442695, %v887_v9  ;;  %v883_v63 = vpop.f32.mrb[55].mxu1  ;;  %v5867_v9 = vmov 0  }
 0x149   :  { %3510 = vtanh.f32 %v888_v38 }
 0x14a   :  { %3512 = vpow2.f32 %v3220_v32 }
 0x153   :  { %v3511_v7 = vpop.eup %3510 }
 0x154   :  { %v3513_v19 = vpop.eup %3512  ;;  %v909_v29 = vmul.f32 %v3511_v7, %v3509_v8 }
 0x155   :  { %v900_v59 = vadd.f32 1.0, %v3513_v19 }
 0x156   :  { %v4519_v6 = vadd.f32 %v909_v29, %v908_v20 }
 0x157   :  { %3514 = vrcp.f32 %v900_v59 }
 0x158   :  { %3516 = vtanh.f32 %v4519_v6 }
 0x161   :  { %v3515_v39 = vpop.eup %3514 }
 0x162   :  { %v3517_v40 = vpop.eup %3516 }
 0x163   :  { %v912_v3 = vmul.f32 %v3517_v40, %v3515_v39 }
 0x165   :  { %v913_v10 = vpack.c.bf16 %v912_v3, %v912_v3 }
 0x167   :  { %947 = vmatmul.mubr.bf16.vlgmr.msra.gmra.mrb[24].mxu0 %v913_v10  ;;  %988 = vmatmul.mubr.bf16.vlgmr.msra.gmra.mrb[56].mxu1 %v913_v10 }
 0x168   :  { %1026 = vmatpush1.bf16.msra.mxu0 %v3966_v14  ;;  %1067 = vmatpush1.bf16.msra.mxu1 %v4156_v43 }
 0x169   :  { %1027 = vmatprep.subr.bf16.mxu0 %v3972_v15  ;;  %1068 = vmatprep.subr.bf16.mxu1 %v4162_v44 }
 0x16a   :  { %1057 = vmatprep.mubr.bf16.mxu0 %v5867_v9  ;;  %1098 = vmatprep.mubr.bf16.mxu1 %v5867_v9 }
 0x16c   :  { %1028 = vmatpush1.bf16.msra.mxu0 %v3990_v18  ;;  %1069 = vmatpush1.bf16.msra.mxu1 %v4171_v45 }
 0x16d   :  { %1029 = vmatprep.subr.bf16.mxu0 %v4002_v21  ;;  %1070 = vmatprep.subr.bf16.mxu1 %v4178_v46 }
 0x170   :  { %1030 = vmatpush1.bf16.msra.mxu0 %v4008_v22  ;;  %1071 = vmatpush1.bf16.msra.mxu1 %v4186_v47 }
 0x171   :  { %1031 = vmatprep.subr.bf16.mxu0 %v4017_v23  ;;  %1072 = vmatprep.subr.bf16.mxu1 %v4192_v48 }
 0x174   :  { %1032 = vmatpush1.bf16.msra.mxu0 %v4026_v24  ;;  %1073 = vmatpush1.bf16.msra.mxu1 %v4203_v49 }
 0x175   :  { %1033 = vmatprep.subr.bf16.mxu0 %v4040_v27  ;;  %1074 = vmatprep.subr.bf16.mxu1 %v4209_v50 }
 0x178   :  { %1034 = vmatpush1.bf16.msra.mxu0 %v4045_v28  ;;  %1075 = vmatpush1.bf16.msra.mxu1 %v4215_v51 }
 0x179   :  { %1035 = vmatprep.subr.bf16.mxu0 %v4057_v30  ;;  %1076 = vmatprep.subr.bf16.mxu1 %v4221_v52 }
 0x17c   :  { %1036 = vmatpush1.bf16.msra.mxu0 %v4066_v31  ;;  %1077 = vmatpush1.bf16.msra.mxu1 %v4230_v53 }
 0x17d   :  { %1037 = vmatprep.subr.bf16.mxu0 %v4080_v34  ;;  %1078 = vmatprep.subr.bf16.mxu1 %v4236_v54 }
 0x180   :  { %1038 = vmatpush1.bf16.msra.mxu0 %v4086_v35  ;;  %1079 = vmatpush1.bf16.msra.mxu1 %v4242_v55 }
 0x181   :  { %1039 = vmatprep.subr.bf16.mxu0 %v4094_v36  ;;  %1080 = vmatprep.subr.bf16.mxu1 %v4248_v56 }
 0x184   :  { %1040 = vmatpush1.bf16.msra.mxu0 %v4103_v37  ;;  %1081 = vmatpush1.bf16.msra.mxu1 %v4257_v57 }
 0x185   :  { %1136 = vmatprep.subr.bf16.mxu0 %v3961_v13  ;;  %1177 = vmatprep.subr.bf16.mxu1 %v4130_v42 }
 0x23a   :  { %v948_v2 = vpop.f32.mrb[24].mxu0  ;;  %v989_v38 = vpop.f32.mrb[56].mxu1 }
 0x23b   :  { %v996_v19 = vadd.f32 %v948_v2, %v4320_v16  ;;  %v998_v12 = vadd.f32 %v989_v38, %v4422_v26  ;;  %v950_v5 = vpop.f32.mrb[25].mxu0  ;;  %v991_v17 = vpop.f32.mrb[57].mxu1 }
 0x23c   :  { %v997_v0 = vadd.f32 %v950_v5, %v4326_v25  ;;  %v999_v32 = vadd.f32 %v991_v17, %v4428_v61  ;;  %v952_v63 = vpop.f32.mrb[26].mxu0  ;;  %v993_v58 = vpop.f32.mrb[58].mxu1 }
 0x23d   :  { %v3221_v8 = vmul.f32 -1.442695, %v996_v19  ;;  %v953_v7 = vpop.f32.mrb[27].mxu0  ;;  %v994_v20 = vpop.f32.mrb[59].mxu1  ;;  %v3223_v29 = vmul.f32 -1.442695, %v998_v12 }
 0x23e   :  { %v3222_v13 = vmul.f32 -1.442695, %v997_v0 }
 0x23f   :  { %3518 = vpow2.f32 %v3221_v8 }
 0x240   :  { %3520 = vpow2.f32 %v3222_v13 }
 0x241   :  { %3522 = vtanh.f32 %v999_v32 }
 0x242   :  { %3524 = vpow2.f32 %v3223_v29 }
 0x249   :  { %v3519_v59 = vpop.eup %3518 }
 0x24a   :  { %v1009_v39 = vadd.f32 1.0, %v3519_v59  ;;  %v3521_v16 = vpop.eup %3520 }
 0x24b   :  { %v1010_v26 = vadd.f32 1.0, %v3521_v16  ;;  %v3523_v25 = vpop.eup %3522 }
 0x24c   :  { %3526 = vrcp.f32 %v1009_v39  ;;  %v3525_v40 = vpop.eup %3524 }
 0x24d   :  { %3528 = vrcp.f32 %v1010_v26  ;;  %v1011_v2 = vadd.f32 1.0, %v3525_v40 }
 0x24f   :  { %3530 = vrcp.f32 %v1011_v2  ;;  %v4614_v2 = vld [vmem:[%s5801_s3] ss:$16 sps:$4 sm:$0xff]  }
 0x256   :  { %v3527_v61 = vpop.eup %3526 }
 0x257   :  { %v1020_v3 = vmul.f32 %v3527_v61, %v3523_v25  ;;  %v3529_v10 = vpop.eup %3528 }
 0x258   :  { %v1019_v38 = vmul.f32 %v3529_v10, %v4519_v6 }
 0x259   :  { %v3531_v12 = vpop.eup %3530 }
 0x25a   :  { %v4561_v19 = vadd.f32 %v1020_v3, %v1019_v38  ;;  %v4621_v38 = vld [vmem:[%s5801_s3 + $0x24] ss:$16 sps:$4 sm:$0xff]  }
 0x25c   :  { %3532 = vtanh.f32 %v4561_v19 }
 0x266   :  { %v3533_v5 = vpop.eup %3532 }
 0x267   :  { %v1023_v17 = vmul.f32 %v3533_v5, %v3531_v12  ;;  %v4637_v12 = vld [vmem:[%s5801_s3 + $0x44] ss:$16 sps:$4 sm:$0xff]   ;;  %v4644_v5 = vld [vmem:[%s5801_s3 + $0x40] ss:$16 sps:$4 sm:$0xff]  }
 0x269   :  { %v1024_v0 = vpack.c.bf16 %v1023_v17, %v1023_v17  ;;  %v4651_v17 = vld [vmem:[%s5801_s3 + $0x64] ss:$16 sps:$4 sm:$0xff]  }
 0x26b   :  { %1058 = vmatmul.mubr.bf16.vlgmr.msra.gmra.mrb[28].mxu0 %v1024_v0  ;;  %1099 = vmatmul.mubr.bf16.vlgmr.msra.gmra.mrb[60].mxu1 %v1024_v0  ;;  %v4658_v0 = vld [vmem:[%s5801_s3 + $0x60] ss:$16 sps:$4 sm:$0xff]  }
 0x26c   :  { %1137 = vmatpush1.bf16.msra.mxu0 %v3966_v14  ;;  %1178 = vmatpush1.bf16.msra.mxu1 %v4156_v43  ;;  %v4599_v14 = vld [vmem:[%s5801_s3 + $0x4] ss:$16 sps:$4 sm:$0xff]  }
 0x26d   :  { %1138 = vmatprep.subr.bf16.mxu0 %v3972_v15  ;;  %1179 = vmatprep.subr.bf16.mxu1 %v4162_v44 }
 0x26e   :  { %1168 = vmatprep.mubr.bf16.mxu0 %v5867_v9  ;;  %1209 = vmatprep.mubr.bf16.mxu1 %v5867_v9 }
 0x270   :  { %1139 = vmatpush1.bf16.msra.mxu0 %v3990_v18  ;;  %1180 = vmatpush1.bf16.msra.mxu1 %v4171_v45 }
 0x271   :  { %1140 = vmatprep.subr.bf16.mxu0 %v4002_v21  ;;  %1181 = vmatprep.subr.bf16.mxu1 %v4178_v46 }
 0x274   :  { %1141 = vmatpush1.bf16.msra.mxu0 %v4008_v22  ;;  %1182 = vmatpush1.bf16.msra.mxu1 %v4186_v47 }
 0x275   :  { %1142 = vmatprep.subr.bf16.mxu0 %v4017_v23  ;;  %1183 = vmatprep.subr.bf16.mxu1 %v4192_v48 }
 0x278   :  { %1143 = vmatpush1.bf16.msra.mxu0 %v4026_v24  ;;  %1184 = vmatpush1.bf16.msra.mxu1 %v4203_v49 }
 0x279   :  { %1144 = vmatprep.subr.bf16.mxu0 %v4040_v27  ;;  %1185 = vmatprep.subr.bf16.mxu1 %v4209_v50 }
 0x27c   :  { %1145 = vmatpush1.bf16.msra.mxu0 %v4045_v28  ;;  %1186 = vmatpush1.bf16.msra.mxu1 %v4215_v51 }
 0x27d   :  { %1146 = vmatprep.subr.bf16.mxu0 %v4057_v30  ;;  %1187 = vmatprep.subr.bf16.mxu1 %v4221_v52 }
 0x280   :  { %1147 = vmatpush1.bf16.msra.mxu0 %v4066_v31  ;;  %1188 = vmatpush1.bf16.msra.mxu1 %v4230_v53 }
 0x281   :  { %1148 = vmatprep.subr.bf16.mxu0 %v4080_v34  ;;  %1189 = vmatprep.subr.bf16.mxu1 %v4236_v54 }
 0x284   :  { %1149 = vmatpush1.bf16.msra.mxu0 %v4086_v35  ;;  %1190 = vmatpush1.bf16.msra.mxu1 %v4242_v55 }
 0x285   :  { %1150 = vmatprep.subr.bf16.mxu0 %v4094_v36  ;;  %1191 = vmatprep.subr.bf16.mxu1 %v4248_v56 }
 0x288   :  { %1151 = vmatpush1.bf16.msra.mxu0 %v4103_v37  ;;  %1192 = vmatpush1.bf16.msra.mxu1 %v4257_v57 }
 0x289   :  { %1247 = vmatprep.subr.bf16.mxu0 %v4599_v14  ;;  %1288 = vmatprep.subr.bf16.mxu1 %v4130_v42 }
 0x33e   :  { %v1059_v15 = vpop.f32.mrb[28].mxu0  ;;  %v1100_v18 = vpop.f32.mrb[60].mxu1 }
 0x33f   :  { %v1107_v21 = vadd.f32 %v1059_v15, %v4332_v33  ;;  %v1109_v22 = vadd.f32 %v1100_v18, %v4438_v62  ;;  %v1061_v23 = vpop.f32.mrb[29].mxu0  ;;  %v1102_v24 = vpop.f32.mrb[61].mxu1  ;;  %v4665_v15 = vld [vmem:[%s5801_s3 + $0x84] ss:$16 sps:$4 sm:$0xff]   ;;  %v4672_v18 = vld [vmem:[%s5801_s3 + $0x80] ss:$16 sps:$4 sm:$0xff]  }
 0x340   :  { %v1108_v27 = vadd.f32 %v1061_v23, %v4338_v41  ;;  %v1110_v28 = vadd.f32 %v1102_v24, %v4441_v1  ;;  %v1063_v30 = vpop.f32.mrb[30].mxu0  ;;  %v1104_v6 = vpop.f32.mrb[62].mxu1  ;;  %v5868_v23 = vld [vmem:[#allocation32_spill] sm:$0xff] }
 0x341   :  { %v3224_v32 = vmul.f32 -1.442695, %v1107_v21  ;;  %v1064_v63 = vpop.f32.mrb[31].mxu0  ;;  %v1105_v58 = vpop.f32.mrb[63].mxu1  ;;  %v3226_v7 = vmul.f32 -1.442695, %v1109_v22 }
 0x342   :  { %v3225_v8 = vmul.f32 -1.442695, %v1108_v27  ;;  %v4679_v21 = vld [vmem:[%s5801_s3 + $0xa4] ss:$16 sps:$4 sm:$0xff]  }
 0x343   :  { %3534 = vpow2.f32 %v3224_v32  ;;  %v5870_v30 = vld [vmem:[#allocation33_spill] sm:$0xff] }
 0x344   :  { %3536 = vpow2.f32 %v3225_v8 }
 0x345   :  { %3538 = vtanh.f32 %v1110_v28  ;;  %v5869_v28 = vld [vmem:[#allocation10_spill] sm:$0xff] }
 0x346   :  { %3540 = vpow2.f32 %v3226_v7 }
 0x34d   :  { %v3535_v20 = vpop.eup %3534 }
 0x34e   :  { %v1120_v13 = vadd.f32 1.0, %v3535_v20  ;;  %v3537_v33 = vpop.eup %3536 }
 0x34f   :  { %v1121_v62 = vadd.f32 1.0, %v3537_v33  ;;  %v3539_v41 = vpop.eup %3538 }
 0x350   :  { %3542 = vrcp.f32 %v1120_v13  ;;  %v3541_v29 = vpop.eup %3540 }
 0x351   :  { %3544 = vrcp.f32 %v1121_v62  ;;  %v1122_v16 = vadd.f32 1.0, %v3541_v29 }
 0x353   :  { %3546 = vrcp.f32 %v1122_v16 }
 0x35a   :  { %v3543_v1 = vpop.eup %3542 }
 0x35b   :  { %v1131_v59 = vmul.f32 %v3543_v1, %v3539_v41  ;;  %v3545_v39 = vpop.eup %3544 }
 0x35c   :  { %v1130_v26 = vmul.f32 %v3545_v39, %v4561_v19  ;;  %v4630_v19 = vld [vmem:[%s5801_s3 + $0x20] ss:$16 sps:$4 sm:$0xff]  }
 0x35d   :  { %v3547_v40 = vpop.eup %3546 }
 0x35e   :  { %v4608_v25 = vadd.f32 %v1131_v59, %v1130_v26 }
 0x360   :  { %3548 = vtanh.f32 %v4608_v25 }
 0x36a   :  { %v3549_v61 = vpop.eup %3548 }
 0x36b   :  { %v1134_v3 = vmul.f32 %v3549_v61, %v3547_v40 }
 0x36d   :  { %v1135_v10 = vpack.c.bf16 %v1134_v3, %v1134_v3 }
 0x36f   :  { %1169 = vmatmul.mubr.bf16.vlgmr.msra.gmra.mrb[32].mxu0 %v1135_v10  ;;  %1210 = vmatmul.mubr.bf16.vlgmr.msra.gmra.mrb[64].mxu1 %v1135_v10 }
 0x370   :  { %1248 = vmatpush1.bf16.msra.mxu0 %v4614_v2  ;;  %1289 = vmatpush1.bf16.msra.mxu1 %v4156_v43 }
 0x371   :  { %1249 = vmatprep.subr.bf16.mxu0 %v4621_v38  ;;  %1290 = vmatprep.subr.bf16.mxu1 %v4162_v44 }
 0x372   :  { %1279 = vmatprep.mubr.bf16.mxu0 %v5867_v9  ;;  %1320 = vmatprep.mubr.bf16.mxu1 %v5867_v9 }
 0x374   :  { %1250 = vmatpush1.bf16.msra.mxu0 %v4630_v19  ;;  %1291 = vmatpush1.bf16.msra.mxu1 %v4171_v45 }
 0x375   :  { %1251 = vmatprep.subr.bf16.mxu0 %v4637_v12  ;;  %1292 = vmatprep.subr.bf16.mxu1 %v4178_v46 }
 0x378   :  { %1252 = vmatpush1.bf16.msra.mxu0 %v4644_v5  ;;  %1293 = vmatpush1.bf16.msra.mxu1 %v4186_v47 }
 0x379   :  { %1253 = vmatprep.subr.bf16.mxu0 %v4651_v17  ;;  %1294 = vmatprep.subr.bf16.mxu1 %v4192_v48 }
 0x37c   :  { %1254 = vmatpush1.bf16.msra.mxu0 %v4658_v0  ;;  %1295 = vmatpush1.bf16.msra.mxu1 %v4203_v49 }
 0x37d   :  { %1255 = vmatprep.subr.bf16.mxu0 %v4665_v15  ;;  %1296 = vmatprep.subr.bf16.mxu1 %v4209_v50 }
 0x380   :  { %1256 = vmatpush1.bf16.msra.mxu0 %v4672_v18  ;;  %1297 = vmatpush1.bf16.msra.mxu1 %v4215_v51 }
 0x381   :  { %1257 = vmatprep.subr.bf16.mxu0 %v4679_v21  ;;  %1298 = vmatprep.subr.bf16.mxu1 %v4221_v52 }
 0x384   :  { %1258 = vmatpush1.bf16.msra.mxu0 %v4066_v31  ;;  %1299 = vmatpush1.bf16.msra.mxu1 %v4230_v53 }
 0x385   :  { %1259 = vmatprep.subr.bf16.mxu0 %v4080_v34  ;;  %1300 = vmatprep.subr.bf16.mxu1 %v4236_v54 }
 0x388   :  { %1260 = vmatpush1.bf16.msra.mxu0 %v4086_v35  ;;  %1301 = vmatpush1.bf16.msra.mxu1 %v4242_v55 }
 0x389   :  { %1261 = vmatprep.subr.bf16.mxu0 %v4094_v36  ;;  %1302 = vmatprep.subr.bf16.mxu1 %v4248_v56 }
 0x38c   :  { %1262 = vmatpush1.bf16.msra.mxu0 %v4103_v37  ;;  %1303 = vmatpush1.bf16.msra.mxu1 %v4257_v57 }
 0x38d   :  { %1358 = vmatprep.subr.bf16.mxu0 %v4599_v14  ;;  %1399 = vmatprep.subr.bf16.mxu1 %v4130_v42 }
 0x442   :  { %v1170_v31 = vpop.f32.mrb[32].mxu0  ;;  %v1211_v34 = vpop.f32.mrb[64].mxu1 }
 0x443   :  { %v1218_v22 = vadd.f32 %v1170_v31, %v4344_v4  ;;  %v1220_v35 = vadd.f32 %v1211_v34, %v5868_v23  ;;  %v1172_v24 = vpop.f32.mrb[33].mxu0  ;;  %v1213_v27 = vpop.f32.mrb[65].mxu1 }
 0x444   :  { %v1219_v36 = vadd.f32 %v1172_v24, %v5869_v28  ;;  %v1221_v6 = vadd.f32 %v1213_v27, %v5870_v30  ;;  %v1174_v32 = vpop.f32.mrb[34].mxu0  ;;  %v1215_v37 = vpop.f32.mrb[66].mxu1 }
 0x445   :  { %v3227_v63 = vmul.f32 -1.442695, %v1218_v22  ;;  %v1175_v58 = vpop.f32.mrb[35].mxu0  ;;  %v1216_v8 = vpop.f32.mrb[67].mxu1  ;;  %v3229_v42 = vmul.f32 -1.442695, %v1220_v35 }
 0x446   :  { %v3228_v7 = vmul.f32 -1.442695, %v1219_v36 }
 0x447   :  { %3550 = vpow2.f32 %v3227_v63 }
 0x448   :  { %3552 = vpow2.f32 %v3228_v7 }
 0x449   :  { %3554 = vtanh.f32 %v1221_v6 }
 0x44a   :  { %3556 = vpow2.f32 %v3229_v42 }
 0x451   :  { %v3551_v20 = vpop.eup %3550 }
 0x452   :  { %v1231_v13 = vadd.f32 1.0, %v3551_v20  ;;  %v3553_v4 = vpop.eup %3552 }
 0x453   :  { %v1232_v33 = vadd.f32 1.0, %v3553_v4  ;;  %v3555_v62 = vpop.eup %3554 }
 0x454   :  { %3558 = vrcp.f32 %v1231_v13  ;;  %v3557_v41 = vpop.eup %3556 }
 0x455   :  { %3560 = vrcp.f32 %v1232_v33  ;;  %v1233_v39 = vadd.f32 1.0, %v3557_v41 }
 0x457   :  { %3562 = vrcp.f32 %v1233_v39  ;;  %v4795_v39 = vld [vmem:[%s5801_s3 + $0x28] ss:$16 sps:$4 sm:$0xff]  }
 0x45e   :  { %v3559_v29 = vpop.eup %3558 }
 0x45f   :  { %v1242_v1 = vmul.f32 %v3559_v29, %v3555_v62  ;;  %v3561_v59 = vpop.eup %3560 }
 0x460   :  { %v1241_v16 = vmul.f32 %v3561_v59, %v4608_v25  ;;  %v5873_v25 = vld [vmem:[#allocation14_spill] sm:$0xff] }
 0x461   :  { %v3563_v40 = vpop.eup %3562  ;;  %v4786_v59 = vld [vmem:[%s5801_s3 + $0x2c] ss:$16 sps:$4 sm:$0xff]  }
 0x462   :  { %v4700_v26 = vadd.f32 %v1242_v1, %v1241_v16  ;;  %v4779_v1 = vld [vmem:[%s5801_s3 + $0x8] ss:$16 sps:$4 sm:$0xff]   ;;  %v4802_v16 = vld [vmem:[%s5801_s3 + $0x4c] ss:$16 sps:$4 sm:$0xff]  }
 0x464   :  { %3564 = vtanh.f32 %v4700_v26 }
 0x46e   :  { %v3565_v61 = vpop.eup %3564 }
 0x46f   :  { %v1245_v3 = vmul.f32 %v3565_v61, %v3563_v40  ;;  %v4816_v40 = vld [vmem:[%s5801_s3 + $0x6c] ss:$16 sps:$4 sm:$0xff]   ;;  %v4823_v61 = vld [vmem:[%s5801_s3 + $0x68] ss:$16 sps:$4 sm:$0xff]  }
 0x471   :  { %v1246_v10 = vpack.c.bf16 %v1245_v3, %v1245_v3  ;;  %v4830_v3 = vld [vmem:[%s5801_s3 + $0x8c] ss:$16 sps:$4 sm:$0xff]  }
 0x473   :  { %1280 = vmatmul.mubr.bf16.vlgmr.msra.gmra.mrb[36].mxu0 %v1246_v10  ;;  %1321 = vmatmul.mubr.bf16.vlgmr.msra.gmra.mrb[68].mxu1 %v1246_v10  ;;  %v4837_v10 = vld [vmem:[%s5801_s3 + $0x88] ss:$16 sps:$4 sm:$0xff]  }
 0x474   :  { %1359 = vmatpush1.bf16.msra.mxu0 %v4614_v2  ;;  %1400 = vmatpush1.bf16.msra.mxu1 %v4156_v43  ;;  %v4728_v43 = vld [vmem:[%s5801_s3 + $0xa0] ss:$16 sps:$4 sm:$0xff]  }
 0x475   :  { %1360 = vmatprep.subr.bf16.mxu0 %v4621_v38  ;;  %1401 = vmatprep.subr.bf16.mxu1 %v4162_v44  ;;  %v4735_v44 = vld [vmem:[%s5801_s3 + $0xc4] ss:$16 sps:$4 sm:$0xff]  }
 0x476   :  { %1390 = vmatprep.mubr.bf16.mxu0 %v5867_v9  ;;  %1431 = vmatprep.mubr.bf16.mxu1 %v5867_v9 }
 0x478   :  { %1361 = vmatpush1.bf16.msra.mxu0 %v4630_v19  ;;  %1402 = vmatpush1.bf16.msra.mxu1 %v4171_v45  ;;  %v4742_v45 = vld [vmem:[%s5801_s3 + $0xc0] ss:$16 sps:$4 sm:$0xff]  }
 0x479   :  { %1362 = vmatprep.subr.bf16.mxu0 %v4637_v12  ;;  %1403 = vmatprep.subr.bf16.mxu1 %v4178_v46  ;;  %v4749_v46 = vld [vmem:[%s5801_s3 + $0xe4] ss:$16 sps:$4 sm:$0xff]  }
 0x47c   :  { %1363 = vmatpush1.bf16.msra.mxu0 %v4644_v5  ;;  %1404 = vmatpush1.bf16.msra.mxu1 %v4186_v47  ;;  %v4756_v47 = vld [vmem:[%s5801_s3 + $0xe0] ss:$16 sps:$4 sm:$0xff]  }
 0x47d   :  { %1364 = vmatprep.subr.bf16.mxu0 %v4651_v17  ;;  %1405 = vmatprep.subr.bf16.mxu1 %v4192_v48  ;;  %v4764_v48 = vld [vmem:[%s5801_s3 + $0xc] ss:$16 sps:$4 sm:$0xff]  }
 0x480   :  { %1365 = vmatpush1.bf16.msra.mxu0 %v4658_v0  ;;  %1406 = vmatpush1.bf16.msra.mxu1 %v4203_v49 }
 0x481   :  { %1366 = vmatprep.subr.bf16.mxu0 %v4665_v15  ;;  %1407 = vmatprep.subr.bf16.mxu1 %v4209_v50 }
 0x484   :  { %1367 = vmatpush1.bf16.msra.mxu0 %v4672_v18  ;;  %1408 = vmatpush1.bf16.msra.mxu1 %v4215_v51  ;;  %v5871_v51 = vld [vmem:[#allocation12_spill] sm:$0xff] }
 0x485   :  { %1368 = vmatprep.subr.bf16.mxu0 %v4679_v21  ;;  %1409 = vmatprep.subr.bf16.mxu1 %v4221_v52 }
 0x488   :  { %1369 = vmatpush1.bf16.msra.mxu0 %v4728_v43  ;;  %1410 = vmatpush1.bf16.msra.mxu1 %v4230_v53  ;;  %v5872_v53 = vld [vmem:[#allocation34_spill] sm:$0xff] }
 0x489   :  { %1370 = vmatprep.subr.bf16.mxu0 %v4735_v44  ;;  %1411 = vmatprep.subr.bf16.mxu1 %v4236_v54 }
 0x48c   :  { %1371 = vmatpush1.bf16.msra.mxu0 %v4742_v45  ;;  %1412 = vmatpush1.bf16.msra.mxu1 %v4242_v55 }
 0x48d   :  { %1372 = vmatprep.subr.bf16.mxu0 %v4749_v46  ;;  %1413 = vmatprep.subr.bf16.mxu1 %v4248_v56 }
 0x490   :  { %1373 = vmatpush1.bf16.msra.mxu0 %v4756_v47  ;;  %1414 = vmatpush1.bf16.msra.mxu1 %v4257_v57  ;;  %v5874_v57 = vld [vmem:[#allocation35_spill] sm:$0xff] }
 0x491   :  { %1469 = vmatprep.subr.bf16.mxu0 %v4599_v14  ;;  %1510 = vmatprep.subr.bf16.mxu1 %v4764_v48 }
 0x546   :  { %v1281_v49 = vpop.f32.mrb[36].mxu0  ;;  %v1322_v50 = vpop.f32.mrb[68].mxu1 }
 0x547   :  { %v1329_v52 = vadd.f32 %v1281_v49, %v5871_v51  ;;  %v1331_v54 = vadd.f32 %v1322_v50, %v5872_v53  ;;  %v1283_v55 = vpop.f32.mrb[37].mxu0  ;;  %v1324_v56 = vpop.f32.mrb[69].mxu1  ;;  %v4844_v49 = vld [vmem:[%s5801_s3 + $0xac] ss:$16 sps:$4 sm:$0xff]   ;;  %v4851_v50 = vld [vmem:[%s5801_s3 + $0xa8] ss:$16 sps:$4 sm:$0xff]  }
 0x548   :  { %v1330_v31 = vadd.f32 %v1283_v55, %v5873_v25  ;;  %v1332_v34 = vadd.f32 %v1324_v56, %v5874_v57  ;;  %v1285_v22 = vpop.f32.mrb[38].mxu0  ;;  %v1326_v23 = vpop.f32.mrb[70].mxu1  ;;  %v4858_v51 = vld [vmem:[%s5801_s3 + $0xcc] ss:$16 sps:$4 sm:$0xff]  }
 0x549   :  { %v3230_v35 = vmul.f32 -1.442695, %v1329_v52  ;;  %v1286_v24 = vpop.f32.mrb[39].mxu0  ;;  %v1327_v27 = vpop.f32.mrb[71].mxu1  ;;  %v3232_v36 = vmul.f32 -1.442695, %v1331_v54 }
 0x54a   :  { %v3231_v28 = vmul.f32 -1.442695, %v1330_v31  ;;  %v4865_v52 = vld [vmem:[%s5801_s3 + $0xc8] ss:$16 sps:$4 sm:$0xff]   ;;  %v4872_v53 = vld [vmem:[%s5801_s3 + $0xec] ss:$16 sps:$4 sm:$0xff]  }
 0x54b   :  { %3566 = vpow2.f32 %v3230_v35  ;;  %v4879_v54 = vld [vmem:[%s5801_s3 + $0xe8] ss:$16 sps:$4 sm:$0xff]   ;;  %v5878_v27 = vld [vmem:[#allocation37_spill] sm:$0xff] }
 0x54c   :  { %3568 = vpow2.f32 %v3231_v28  ;;  %v5875_v25 = vld [vmem:[#allocation16_spill] sm:$0xff]  ;;  %v5877_v35 = vld [vmem:[#allocation18_spill] sm:$0xff] }
 0x54d   :  { %3570 = vtanh.f32 %v1332_v34  ;;  %v5876_v57 = vld [vmem:[#allocation36_spill] sm:$0xff] }
 0x54e   :  { %3572 = vpow2.f32 %v3232_v36 }
 0x555   :  { %v3567_v30 = vpop.eup %3566 }
 0x556   :  { %v1342_v6 = vadd.f32 1.0, %v3567_v30  ;;  %v3569_v32 = vpop.eup %3568 }
 0x557   :  { %v1343_v37 = vadd.f32 1.0, %v3569_v32  ;;  %v3571_v63 = vpop.eup %3570 }
 0x558   :  { %3574 = vrcp.f32 %v1342_v6  ;;  %v3573_v58 = vpop.eup %3572 }
 0x559   :  { %3576 = vrcp.f32 %v1343_v37  ;;  %v1344_v20 = vadd.f32 1.0, %v3573_v58 }
 0x55b   :  { %3578 = vrcp.f32 %v1344_v20 }
 0x562   :  { %v3575_v8 = vpop.eup %3574 }
 0x563   :  { %v1353_v7 = vmul.f32 %v3575_v8, %v3571_v63  ;;  %v3577_v42 = vpop.eup %3576 }
 0x564   :  { %v1352_v13 = vmul.f32 %v3577_v42, %v4700_v26  ;;  %v4809_v26 = vld [vmem:[%s5801_s3 + $0x48] ss:$16 sps:$4 sm:$0xff]  }
 0x565   :  { %v3579_v33 = vpop.eup %3578 }
 0x566   :  { %v4772_v4 = vadd.f32 %v1353_v7, %v1352_v13 }
 0x568   :  { %3580 = vtanh.f32 %v4772_v4 }
 0x572   :  { %v3581_v62 = vpop.eup %3580 }
 0x573   :  { %v1356_v41 = vmul.f32 %v3581_v62, %v3579_v33 }
 0x575   :  { %v1357_v29 = vpack.c.bf16 %v1356_v41, %v1356_v41 }
 0x577   :  { %1391 = vmatmul.mubr.bf16.vlgmr.msra.gmra.mrb[40].mxu0 %v1357_v29  ;;  %1432 = vmatmul.mubr.bf16.vlgmr.msra.gmra.mrb[72].mxu1 %v1357_v29 }
 0x578   :  { %1470 = vmatpush1.bf16.msra.mxu0 %v4614_v2  ;;  %1511 = vmatpush1.bf16.msra.mxu1 %v4779_v1 }
 0x579   :  { %1471 = vmatprep.subr.bf16.mxu0 %v4621_v38  ;;  %1512 = vmatprep.subr.bf16.mxu1 %v4786_v59 }
 0x57a   :  { %1501 = vmatprep.mubr.bf16.mxu0 %v5867_v9  ;;  %1542 = vmatprep.mubr.bf16.mxu1 %v5867_v9 }
 0x57c   :  { %1472 = vmatpush1.bf16.msra.mxu0 %v4630_v19  ;;  %1513 = vmatpush1.bf16.msra.mxu1 %v4795_v39 }
 0x57d   :  { %1473 = vmatprep.subr.bf16.mxu0 %v4637_v12  ;;  %1514 = vmatprep.subr.bf16.mxu1 %v4802_v16 }
 0x580   :  { %1474 = vmatpush1.bf16.msra.mxu0 %v4644_v5  ;;  %1515 = vmatpush1.bf16.msra.mxu1 %v4809_v26 }
 0x581   :  { %1475 = vmatprep.subr.bf16.mxu0 %v4651_v17  ;;  %1516 = vmatprep.subr.bf16.mxu1 %v4816_v40 }
 0x584   :  { %1476 = vmatpush1.bf16.msra.mxu0 %v4658_v0  ;;  %1517 = vmatpush1.bf16.msra.mxu1 %v4823_v61 }
 0x585   :  { %1477 = vmatprep.subr.bf16.mxu0 %v4665_v15  ;;  %1518 = vmatprep.subr.bf16.mxu1 %v4830_v3 }
 0x588   :  { %1478 = vmatpush1.bf16.msra.mxu0 %v4672_v18  ;;  %1519 = vmatpush1.bf16.msra.mxu1 %v4837_v10 }
 0x589   :  { %1479 = vmatprep.subr.bf16.mxu0 %v4679_v21  ;;  %1520 = vmatprep.subr.bf16.mxu1 %v4844_v49 }
 0x58c   :  { %1480 = vmatpush1.bf16.msra.mxu0 %v4728_v43  ;;  %1521 = vmatpush1.bf16.msra.mxu1 %v4851_v50 }
 0x58d   :  { %1481 = vmatprep.subr.bf16.mxu0 %v4735_v44  ;;  %1522 = vmatprep.subr.bf16.mxu1 %v4858_v51 }
 0x590   :  { %1482 = vmatpush1.bf16.msra.mxu0 %v4742_v45  ;;  %1523 = vmatpush1.bf16.msra.mxu1 %v4865_v52 }
 0x591   :  { %1483 = vmatprep.subr.bf16.mxu0 %v4749_v46  ;;  %1524 = vmatprep.subr.bf16.mxu1 %v4872_v53 }
 0x594   :  { %1484 = vmatpush1.bf16.msra.mxu0 %v4756_v47  ;;  %1525 = vmatpush1.bf16.msra.mxu1 %v4879_v54 }
 0x595   :  { %1580 = vmatprep.subr.bf16.mxu0 %v4599_v14  ;;  %1621 = vmatprep.subr.bf16.mxu1 %v4764_v48 }
 0x64a   :  { %v1392_v55 = vpop.f32.mrb[40].mxu0  ;;  %v1433_v56 = vpop.f32.mrb[72].mxu1 }
 0x64b   :  { %v1440_v31 = vadd.f32 %v1392_v55, %v5875_v25  ;;  %v1442_v34 = vadd.f32 %v1433_v56, %v5876_v57  ;;  %v1394_v22 = vpop.f32.mrb[41].mxu0  ;;  %v1435_v23 = vpop.f32.mrb[73].mxu1 }
 0x64c   :  { %v1441_v24 = vadd.f32 %v1394_v22, %v5877_v35  ;;  %v1443_v28 = vadd.f32 %v1435_v23, %v5878_v27  ;;  %v1396_v36 = vpop.f32.mrb[42].mxu0  ;;  %v1437_v30 = vpop.f32.mrb[74].mxu1  ;;  %v4942_v27 = vld [vmem:[%s5804_s6 + $0xc] ss:$16 sps:$4 sm:$0xff]  }
 0x64d   :  { %v3233_v6 = vmul.f32 -1.442695, %v1440_v31  ;;  %v1397_v32 = vpop.f32.mrb[43].mxu0  ;;  %v1438_v37 = vpop.f32.mrb[75].mxu1  ;;  %v3235_v48 = vmul.f32 -1.442695, %v1442_v34 }
 0x64e   :  { %v3234_v14 = vmul.f32 -1.442695, %v1441_v24  ;;  %v4937_v24 = vld [vmem:[%s5804_s6 + $0x4] ss:$16 sps:$4 sm:$0xff]   ;;  %v4953_v36 = vld [vmem:[%s5804_s6 + $0x8] ss:$16 sps:$4 sm:$0xff]  }
 0x64f   :  { %3582 = vpow2.f32 %v3233_v6  ;;  %v4961_v30 = vld [vmem:[%s5804_s6 + $0x24] ss:$16 sps:$4 sm:$0xff]   ;;  %v4966_v6 = vld [vmem:[%s5804_s6 + $0x2c] ss:$16 sps:$4 sm:$0xff]   ;;  %v4971_v32 = vld [vmem:[%s5804_s6 + $0x20] ss:$16 sps:$4 sm:$0xff]  }
 0x650   :  { %3584 = vpow2.f32 %v3234_v14  ;;  %v4976_v37 = vld [vmem:[%s5804_s6 + $0x28] ss:$16 sps:$4 sm:$0xff]   ;;  %v4985_v14 = vld [vmem:[%s5804_s6 + $0x44] ss:$16 sps:$4 sm:$0xff]  }
 0x651   :  { %3586 = vtanh.f32 %v1443_v28  ;;  %v4948_v28 = vld [vmem:[%s5804_s6] ss:$16 sps:$4 sm:$0xff]  }
 0x652   :  { %3588 = vpow2.f32 %v3235_v48  ;;  %v4990_v48 = vld [vmem:[%s5804_s6 + $0x4c] ss:$16 sps:$4 sm:$0xff]  }
 0x659   :  { %v3583_v63 = vpop.eup %3582 }
 0x65a   :  { %v1453_v58 = vadd.f32 1.0, %v3583_v63  ;;  %v3585_v8 = vpop.eup %3584  ;;  %v4995_v63 = vld [vmem:[%s5804_s6 + $0x40] ss:$16 sps:$4 sm:$0xff]  }
 0x65b   :  { %v1454_v7 = vadd.f32 1.0, %v3585_v8  ;;  %v3587_v42 = vpop.eup %3586  ;;  %v5009_v8 = vld [vmem:[%s5804_s6 + $0x64] ss:$16 sps:$4 sm:$0xff]  }
 0x65c   :  { %3590 = vrcp.f32 %v1453_v58  ;;  %v3589_v20 = vpop.eup %3588  ;;  %v5000_v58 = vld [vmem:[%s5804_s6 + $0x48] ss:$16 sps:$4 sm:$0xff]  }
 0x65d   :  { %3592 = vrcp.f32 %v1454_v7  ;;  %v1455_v41 = vadd.f32 1.0, %v3589_v20  ;;  %v5014_v7 = vld [vmem:[%s5804_s6 + $0x6c] ss:$16 sps:$4 sm:$0xff]   ;;  %v5024_v20 = vld [vmem:[%s5804_s6 + $0x68] ss:$16 sps:$4 sm:$0xff]  }
 0x65f   :  { %3594 = vrcp.f32 %v1455_v41  ;;  %v5048_v41 = vld [vmem:[%s5804_s6 + $0x88] ss:$16 sps:$4 sm:$0xff]  }
 0x666   :  { %v3591_v13 = vpop.eup %3590 }
 0x667   :  { %v1464_v33 = vmul.f32 %v3591_v13, %v3587_v42  ;;  %v3593_v62 = vpop.eup %3592  ;;  %v5019_v42 = vld [vmem:[%s5804_s6 + $0x60] ss:$16 sps:$4 sm:$0xff]   ;;  %v5033_v13 = vld [vmem:[%s5804_s6 + $0x84] ss:$16 sps:$4 sm:$0xff]  }
 0x668   :  { %v1463_v29 = vmul.f32 %v3593_v62, %v4772_v4  ;;  %v5043_v62 = vld [vmem:[%s5804_s6 + $0x80] ss:$16 sps:$4 sm:$0xff]  }
 0x669   :  { %v3595_v56 = vpop.eup %3594 }
 0x66a   :  { %v4889_v55 = vadd.f32 %v1464_v33, %v1463_v29  ;;  %v5038_v33 = vld [vmem:[%s5804_s6 + $0x8c] ss:$16 sps:$4 sm:$0xff]   ;;  %v5055_v29 = vld [vmem:[%s5804_s6 + $0xa4] ss:$16 sps:$4 sm:$0xff]  }
 0x66c   :  { %3596 = vtanh.f32 %v4889_v55 }
 0x676   :  { %v3597_v25 = vpop.eup %3596 }
 0x677   :  { %v1467_v31 = vmul.f32 %v3597_v25, %v3595_v56  ;;  %v5067_v56 = vld [vmem:[%s5804_s6 + $0xa0] ss:$16 sps:$4 sm:$0xff]   ;;  %v5072_v25 = vld [vmem:[%s5804_s6 + $0xa8] ss:$16 sps:$4 sm:$0xff]  }
 0x679   :  { %v1468_v57 = vpack.c.bf16 %v1467_v31, %v1467_v31  ;;  %v5079_v31 = vld [vmem:[%s5804_s6 + $0xc4] ss:$16 sps:$4 sm:$0xff]  }
 0x67b   :  { %1502 = vmatmul.mubr.bf16.vlgmr.msra.gmra.mrb[44].mxu0 %v1468_v57  ;;  %1543 = vmatmul.mubr.bf16.vlgmr.msra.gmra.mrb[76].mxu1 %v1468_v57  ;;  %v5084_v57 = vld [vmem:[%s5804_s6 + $0xcc] ss:$16 sps:$4 sm:$0xff]  }
 0x67c   :  { %1581 = vmatpush1.bf16.msra.mxu0 %v4614_v2  ;;  %1622 = vmatpush1.bf16.msra.mxu1 %v4779_v1 }
 0x67d   :  { %1582 = vmatprep.subr.bf16.mxu0 %v4621_v38  ;;  %1623 = vmatprep.subr.bf16.mxu1 %v4786_v59 }
 0x67e   :  { %1612 = vmatprep.mubr.bf16.mxu0 %v5867_v9  ;;  %1653 = vmatprep.mubr.bf16.mxu1 %v5867_v9 }
 0x680   :  { %1583 = vmatpush1.bf16.msra.mxu0 %v4630_v19  ;;  %1624 = vmatpush1.bf16.msra.mxu1 %v4795_v39  ;;  %v5879_v19 = vld [vmem:[#allocation20_spill] sm:$0xff] }
 0x681   :  { %1584 = vmatprep.subr.bf16.mxu0 %v4637_v12  ;;  %1625 = vmatprep.subr.bf16.mxu1 %v4802_v16 }
 0x684   :  { %1585 = vmatpush1.bf16.msra.mxu0 %v4644_v5  ;;  %1626 = vmatpush1.bf16.msra.mxu1 %v4809_v26  ;;  %v5880_v5 = vld [vmem:[#allocation38_spill] sm:$0xff] }
 0x685   :  { %1586 = vmatprep.subr.bf16.mxu0 %v4651_v17  ;;  %1627 = vmatprep.subr.bf16.mxu1 %v4816_v40 }
 0x688   :  { %1587 = vmatpush1.bf16.msra.mxu0 %v4658_v0  ;;  %1628 = vmatpush1.bf16.msra.mxu1 %v4823_v61 }
 0x689   :  { %1588 = vmatprep.subr.bf16.mxu0 %v4665_v15  ;;  %1629 = vmatprep.subr.bf16.mxu1 %v4830_v3 }
 0x68c   :  { %1589 = vmatpush1.bf16.msra.mxu0 %v4672_v18  ;;  %1630 = vmatpush1.bf16.msra.mxu1 %v4837_v10  ;;  %v5881_v18 = vld [vmem:[#allocation22_spill] sm:$0xff] }
 0x68d   :  { %1590 = vmatprep.subr.bf16.mxu0 %v4679_v21  ;;  %1631 = vmatprep.subr.bf16.mxu1 %v4844_v49 }
 0x690   :  { %1591 = vmatpush1.bf16.msra.mxu0 %v4728_v43  ;;  %1632 = vmatpush1.bf16.msra.mxu1 %v4851_v50  ;;  %v5882_v43 = vld [vmem:[#allocation39_spill] sm:$0xff] }
 0x691   :  { %1592 = vmatprep.subr.bf16.mxu0 %v4735_v44  ;;  %1633 = vmatprep.subr.bf16.mxu1 %v4858_v51 }
 0x694   :  { %1593 = vmatpush1.bf16.msra.mxu0 %v4742_v45  ;;  %1634 = vmatpush1.bf16.msra.mxu1 %v4865_v52 }
 0x695   :  { %1594 = vmatprep.subr.bf16.mxu0 %v4749_v46  ;;  %1635 = vmatprep.subr.bf16.mxu1 %v4872_v53 }
 0x698   :  { %1595 = vmatpush1.bf16.msra.mxu0 %v4756_v47  ;;  %1636 = vmatpush1.bf16.msra.mxu1 %v4879_v54 }
 0x699   :  { %1851 = vmatprep.subr.bf16.mxu0 %v4937_v24  ;;  %1892 = vmatprep.subr.bf16.mxu1 %v4942_v27 }
 0x74e   :  { %v1503_v2 = vpop.f32.mrb[44].mxu0  ;;  %v1544_v38 = vpop.f32.mrb[76].mxu1 }
 0x74f   :  { %v1551_v12 = vadd.f32 %v1503_v2, %v5879_v19  ;;  %v1553_v17 = vadd.f32 %v1544_v38, %v5880_v5  ;;  %v1505_v0 = vpop.f32.mrb[45].mxu0  ;;  %v1546_v15 = vpop.f32.mrb[77].mxu1  ;;  %v5091_v2 = vld [vmem:[%s5804_s6 + $0xc0] ss:$16 sps:$4 sm:$0xff]   ;;  %v5096_v38 = vld [vmem:[%s5804_s6 + $0xc8] ss:$16 sps:$4 sm:$0xff]  }
 0x750   :  { %v1552_v21 = vadd.f32 %v1505_v0, %v5881_v18  ;;  %v1554_v44 = vadd.f32 %v1546_v15, %v5882_v43  ;;  %v1507_v45 = vpop.f32.mrb[46].mxu0  ;;  %v1548_v46 = vpop.f32.mrb[78].mxu1  ;;  %v5103_v19 = vld [vmem:[%s5804_s6 + $0xe4] ss:$16 sps:$4 sm:$0xff]   ;;  %v5115_v5 = vld [vmem:[%s5804_s6 + $0xe0] ss:$16 sps:$4 sm:$0xff]  }
 0x751   :  { %v3236_v4 = vmul.f32 -1.442695, %v1551_v12  ;;  %v1508_v1 = vpop.f32.mrb[47].mxu0  ;;  %v1549_v59 = vpop.f32.mrb[79].mxu1  ;;  %v3238_v39 = vmul.f32 -1.442695, %v1553_v17 }
 0x752   :  { %v3237_v47 = vmul.f32 -1.442695, %v1552_v21  ;;  %v5108_v12 = vld [vmem:[%s5804_s6 + $0xec] ss:$16 sps:$4 sm:$0xff]   ;;  %v5120_v17 = vld [vmem:[%s5804_s6 + $0xe8] ss:$16 sps:$4 sm:$0xff]  }
 0x753   :  { %3598 = vpow2.f32 %v3236_v4  ;;  %v5883_v18 = vld [vmem:[#allocation24_spill] sm:$0xff]  ;;  %v5885_v4 = vld [vmem:[#allocation26_spill] sm:$0xff]  ;;  %v5886_v59 = vld [vmem:[#allocation41_spill] sm:$0xff] }
 0x754   :  { %3600 = vpow2.f32 %v3237_v47  ;;  %v5884_v43 = vld [vmem:[#allocation40_spill] sm:$0xff] }
 0x755   :  { %3602 = vtanh.f32 %v1554_v44 }
 0x756   :  { %3604 = vpow2.f32 %v3238_v39 }
 0x75d   :  { %v3599_v16 = vpop.eup %3598 }
 0x75e   :  { %v1564_v26 = vadd.f32 1.0, %v3599_v16  ;;  %v3601_v40 = vpop.eup %3600 }
 0x75f   :  { %v1565_v61 = vadd.f32 1.0, %v3601_v40  ;;  %v3603_v3 = vpop.eup %3602 }
 0x760   :  { %3606 = vrcp.f32 %v1564_v26  ;;  %v3605_v10 = vpop.eup %3604 }
 0x761   :  { %3608 = vrcp.f32 %v1565_v61  ;;  %v1566_v52 = vadd.f32 1.0, %v3605_v10 }
 0x763   :  { %3610 = vrcp.f32 %v1566_v52 }
 0x76a   :  { %v3607_v49 = vpop.eup %3606 }
 0x76b   :  { %v1575_v50 = vmul.f32 %v3607_v49, %v3603_v3  ;;  %v3609_v51 = vpop.eup %3608 }
 0x76c   :  { %v1574_v53 = vmul.f32 %v3609_v51, %v4889_v55  ;;  %v5060_v55 = vld [vmem:[%s5804_s6 + $0xac] ss:$16 sps:$4 sm:$0xff]  }
 0x76d   :  { %v3611_v34 = vpop.eup %3610 }
 0x76e   :  { %v4929_v54 = vadd.f32 %v1575_v50, %v1574_v53 }
 0x770   :  { %3612 = vtanh.f32 %v4929_v54 }
 0x77a   :  { %v3613_v22 = vpop.eup %3612 }
 0x77b   :  { %v1578_v23 = vmul.f32 %v3613_v22, %v3611_v34 }
 0x77d   :  { %v1579_v35 = vpack.c.bf16 %v1578_v23, %v1578_v23 }
 0x77f   :  { %1613 = vmatmul.mubr.bf16.vlgmr.msra.gmra.mrb[48].mxu0 %v1579_v35  ;;  %1654 = vmatmul.mubr.bf16.vlgmr.msra.gmra.mrb[80].mxu1 %v1579_v35 }
 0x780   :  { %1883 = vmatprep.mubr.bf16.mxu0 %v5867_v9  ;;  %1924 = vmatprep.mubr.bf16.mxu1 %v5867_v9 }
 0x781   :  { %1852 = vmatpush1.bf16.msra.mxu0 %v4948_v28  ;;  %1893 = vmatpush1.bf16.msra.mxu1 %v4953_v36 }
 0x782   :  { %1853 = vmatprep.subr.bf16.mxu0 %v4961_v30  ;;  %1894 = vmatprep.subr.bf16.mxu1 %v4966_v6 }
 0x785   :  { %1854 = vmatpush1.bf16.msra.mxu0 %v4971_v32  ;;  %1895 = vmatpush1.bf16.msra.mxu1 %v4976_v37 }
 0x786   :  { %1855 = vmatprep.subr.bf16.mxu0 %v4985_v14  ;;  %1896 = vmatprep.subr.bf16.mxu1 %v4990_v48 }
 0x789   :  { %1856 = vmatpush1.bf16.msra.mxu0 %v4995_v63  ;;  %1897 = vmatpush1.bf16.msra.mxu1 %v5000_v58 }
 0x78a   :  { %1857 = vmatprep.subr.bf16.mxu0 %v5009_v8  ;;  %1898 = vmatprep.subr.bf16.mxu1 %v5014_v7 }
 0x78d   :  { %1858 = vmatpush1.bf16.msra.mxu0 %v5019_v42  ;;  %1899 = vmatpush1.bf16.msra.mxu1 %v5024_v20 }
 0x78e   :  { %1859 = vmatprep.subr.bf16.mxu0 %v5033_v13  ;;  %1900 = vmatprep.subr.bf16.mxu1 %v5038_v33 }
 0x791   :  { %1860 = vmatpush1.bf16.msra.mxu0 %v5043_v62  ;;  %1901 = vmatpush1.bf16.msra.mxu1 %v5048_v41 }
 0x792   :  { %1861 = vmatprep.subr.bf16.mxu0 %v5055_v29  ;;  %1902 = vmatprep.subr.bf16.mxu1 %v5060_v55 }
 0x795   :  { %1862 = vmatpush1.bf16.msra.mxu0 %v5067_v56  ;;  %1903 = vmatpush1.bf16.msra.mxu1 %v5072_v25 }
 0x796   :  { %1863 = vmatprep.subr.bf16.mxu0 %v5079_v31  ;;  %1904 = vmatprep.subr.bf16.mxu1 %v5084_v57 }
 0x799   :  { %1864 = vmatpush1.bf16.msra.mxu0 %v5091_v2  ;;  %1905 = vmatpush1.bf16.msra.mxu1 %v5096_v38 }
 0x79a   :  { %1865 = vmatprep.subr.bf16.mxu0 %v5103_v19  ;;  %1906 = vmatprep.subr.bf16.mxu1 %v5108_v12 }
 0x79d   :  { %1866 = vmatpush1.bf16.msra.mxu0 %v5115_v5  ;;  %1907 = vmatpush1.bf16.msra.mxu1 %v5120_v17 }
 0x79e   :  { %1963 = vmatprep.subr.bf16.mxu0 %v4937_v24  ;;  %2004 = vmatprep.subr.bf16.mxu1 %v4942_v27 }
 0x852   :  { %v1614_v0 = vpop.f32.mrb[48].mxu0  ;;  %v1655_v15 = vpop.f32.mrb[80].mxu1 }
 0x853   :  { %v1662_v21 = vadd.f32 %v1614_v0, %v5883_v18  ;;  %v1664_v44 = vadd.f32 %v1655_v15, %v5884_v43  ;;  %v1616_v45 = vpop.f32.mrb[49].mxu0  ;;  %v1657_v46 = vpop.f32.mrb[81].mxu1 }
 0x854   :  { %v1663_v1 = vadd.f32 %v1616_v45, %v5885_v4  ;;  %v1665_v47 = vadd.f32 %v1657_v46, %v5886_v59  ;;  %v1618_v39 = vpop.f32.mrb[50].mxu0  ;;  %v1659_v16 = vpop.f32.mrb[82].mxu1  ;;  %v5887_v4 = vld [vmem:[#allocation3_spill] sm:$0xff]  ;;  %v5888_v59 = vld [vmem:[#allocation42_spill] sm:$0xff] }
 0x855   :  { %v3239_v26 = vmul.f32 -1.442695, %v1662_v21  ;;  %v1619_v40 = vpop.f32.mrb[51].mxu0  ;;  %v1660_v61 = vpop.f32.mrb[83].mxu1  ;;  %v3241_v10 = vmul.f32 -1.442695, %v1664_v44 }
 0x856   :  { %v3240_v3 = vmul.f32 -1.442695, %v1663_v1  ;;  %v5890_v61 = vld [vmem:[#allocation43_spill] sm:$0xff] }
 0x857   :  { %3614 = vpow2.f32 %v3239_v26  ;;  %v5889_v26 = vld [vmem:[#allocation4_spill] sm:$0xff] }
 0x858   :  { %3616 = vpow2.f32 %v3240_v3 }
 0x859   :  { %3618 = vtanh.f32 %v1665_v47 }
 0x85a   :  { %3620 = vpow2.f32 %v3241_v10 }
 0x861   :  { %v3615_v49 = vpop.eup %3614 }
 0x862   :  { %v1675_v50 = vadd.f32 1.0, %v3615_v49  ;;  %v3617_v51 = vpop.eup %3616 }
 0x863   :  { %v1676_v52 = vadd.f32 1.0, %v3617_v51  ;;  %v3619_v53 = vpop.eup %3618 }
 0x864   :  { %3622 = vrcp.f32 %v1675_v50  ;;  %v3621_v34 = vpop.eup %3620 }
 0x865   :  { %3624 = vrcp.f32 %v1676_v52  ;;  %v1677_v0 = vadd.f32 1.0, %v3621_v34 }
 0x867   :  { %3626 = vrcp.f32 %v1677_v0 }
 0x86e   :  { %v3623_v22 = vpop.eup %3622 }
 0x86f   :  { %v1686_v23 = vmul.f32 %v3623_v22, %v3619_v53  ;;  %v3625_v35 = vpop.eup %3624 }
 0x870   :  { %v1685_v15 = vmul.f32 %v3625_v35, %v4929_v54 }
 0x871   :  { %v3627_v21 = vpop.eup %3626 }
 0x872   :  { %v5133_v18 = vadd.f32 %v1686_v23, %v1685_v15 }
 0x874   :  { %3628 = vtanh.f32 %v5133_v18 }
 0x87e   :  { %v3629_v43 = vpop.eup %3628 }
 0x87f   :  { %v1689_v44 = vmul.f32 %v3629_v43, %v3627_v21 }
 0x881   :  { %v1690_v45 = vpack.c.bf16 %v1689_v44, %v1689_v44 }
 0x883   :  { %1884 = vmatmul.mubr.bf16.vlgmr.msra.gmra.mrb[52].mxu0 %v1690_v45  ;;  %1925 = vmatmul.mubr.bf16.vlgmr.msra.gmra.mrb[84].mxu1 %v1690_v45 }
 0x884   :  { %1964 = vmatpush1.bf16.msra.mxu0 %v4948_v28  ;;  %2005 = vmatpush1.bf16.msra.mxu1 %v4953_v36 }
 0x885   :  { %1965 = vmatprep.subr.bf16.mxu0 %v4961_v30  ;;  %2006 = vmatprep.subr.bf16.mxu1 %v4966_v6 }
 0x886   :  { %1995 = vmatprep.mubr.bf16.mxu0 %v5867_v9  ;;  %2036 = vmatprep.mubr.bf16.mxu1 %v5867_v9 }
 0x888   :  { %1966 = vmatpush1.bf16.msra.mxu0 %v4971_v32  ;;  %2007 = vmatpush1.bf16.msra.mxu1 %v4976_v37 }
 0x889   :  { %1967 = vmatprep.subr.bf16.mxu0 %v4985_v14  ;;  %2008 = vmatprep.subr.bf16.mxu1 %v4990_v48 }
 0x88c   :  { %1968 = vmatpush1.bf16.msra.mxu0 %v4995_v63  ;;  %2009 = vmatpush1.bf16.msra.mxu1 %v5000_v58 }
 0x88d   :  { %1969 = vmatprep.subr.bf16.mxu0 %v5009_v8  ;;  %2010 = vmatprep.subr.bf16.mxu1 %v5014_v7 }
 0x890   :  { %1970 = vmatpush1.bf16.msra.mxu0 %v5019_v42  ;;  %2011 = vmatpush1.bf16.msra.mxu1 %v5024_v20 }
 0x891   :  { %1971 = vmatprep.subr.bf16.mxu0 %v5033_v13  ;;  %2012 = vmatprep.subr.bf16.mxu1 %v5038_v33 }
 0x894   :  { %1972 = vmatpush1.bf16.msra.mxu0 %v5043_v62  ;;  %2013 = vmatpush1.bf16.msra.mxu1 %v5048_v41 }
 0x895   :  { %1973 = vmatprep.subr.bf16.mxu0 %v5055_v29  ;;  %2014 = vmatprep.subr.bf16.mxu1 %v5060_v55 }
 0x898   :  { %1974 = vmatpush1.bf16.msra.mxu0 %v5067_v56  ;;  %2015 = vmatpush1.bf16.msra.mxu1 %v5072_v25 }
 0x899   :  { %1975 = vmatprep.subr.bf16.mxu0 %v5079_v31  ;;  %2016 = vmatprep.subr.bf16.mxu1 %v5084_v57 }
 0x89c   :  { %1976 = vmatpush1.bf16.msra.mxu0 %v5091_v2  ;;  %2017 = vmatpush1.bf16.msra.mxu1 %v5096_v38 }
 0x89d   :  { %1977 = vmatprep.subr.bf16.mxu0 %v5103_v19  ;;  %2018 = vmatprep.subr.bf16.mxu1 %v5108_v12 }
 0x8a0   :  { %1978 = vmatpush1.bf16.msra.mxu0 %v5115_v5  ;;  %2019 = vmatpush1.bf16.msra.mxu1 %v5120_v17 }
 0x8a1   :  { %2075 = vmatprep.subr.bf16.mxu0 %v4937_v24  ;;  %2116 = vmatprep.subr.bf16.mxu1 %v4942_v27 }
 0x956   :  { %v1885_v54 = vpop.f32.mrb[52].mxu0  ;;  %v1926_v46 = vpop.f32.mrb[84].mxu1 }
 0x957   :  { %v1933_v1 = vadd.f32 %v1885_v54, %v5887_v4  ;;  %v1935_v47 = vadd.f32 %v1926_v46, %v5888_v59  ;;  %v1887_v39 = vpop.f32.mrb[53].mxu0  ;;  %v1928_v16 = vpop.f32.mrb[85].mxu1 }
 0x958   :  { %v1934_v40 = vadd.f32 %v1887_v39, %v5889_v26  ;;  %v1936_v3 = vadd.f32 %v1928_v16, %v5890_v61  ;;  %v1889_v10 = vpop.f32.mrb[54].mxu0  ;;  %v1930_v49 = vpop.f32.mrb[86].mxu1  ;;  %v5891_v26 = vld [vmem:[#allocation5_spill] sm:$0xff]  ;;  %v5892_v61 = vld [vmem:[#allocation44_spill] sm:$0xff] }
 0x959   :  { %v3274_v50 = vmul.f32 -1.442695, %v1933_v1  ;;  %v1890_v51 = vpop.f32.mrb[55].mxu0  ;;  %v1931_v52 = vpop.f32.mrb[87].mxu1  ;;  %v3276_v34 = vmul.f32 -1.442695, %v1935_v47 }
 0x95a   :  { %v3275_v53 = vmul.f32 -1.442695, %v1934_v40  ;;  %v5894_v52 = vld [vmem:[#allocation45_spill] sm:$0xff] }
 0x95b   :  { %3630 = vpow2.f32 %v3274_v50  ;;  %v5893_v50 = vld [vmem:[#allocation6_spill] sm:$0xff] }
 0x95c   :  { %3632 = vpow2.f32 %v3275_v53 }
 0x95d   :  { %3634 = vtanh.f32 %v1936_v3 }
 0x95e   :  { %3636 = vpow2.f32 %v3276_v34 }
 0x965   :  { %v3631_v22 = vpop.eup %3630 }
 0x966   :  { %v1946_v23 = vadd.f32 1.0, %v3631_v22  ;;  %v3633_v35 = vpop.eup %3632 }
 0x967   :  { %v1947_v0 = vadd.f32 1.0, %v3633_v35  ;;  %v3635_v15 = vpop.eup %3634 }
 0x968   :  { %3638 = vrcp.f32 %v1946_v23  ;;  %v3637_v21 = vpop.eup %3636 }
 0x969   :  { %3640 = vrcp.f32 %v1947_v0  ;;  %v1948_v54 = vadd.f32 1.0, %v3637_v21 }
 0x96b   :  { %3642 = vrcp.f32 %v1948_v54 }
 0x972   :  { %v3639_v43 = vpop.eup %3638 }
 0x973   :  { %v1957_v44 = vmul.f32 %v3639_v43, %v3635_v15  ;;  %v3641_v45 = vpop.eup %3640 }
 0x974   :  { %v1956_v46 = vmul.f32 %v3641_v45, %v5133_v18 }
 0x975   :  { %v3643_v1 = vpop.eup %3642 }
 0x976   :  { %v5175_v4 = vadd.f32 %v1957_v44, %v1956_v46 }
 0x978   :  { %3644 = vtanh.f32 %v5175_v4 }
 0x982   :  { %v3645_v59 = vpop.eup %3644 }
 0x983   :  { %v5178_v47 = vmul.f32 %v3645_v59, %v3643_v1 }
 0x985   :  { %v1962_v39 = vpack.c.bf16 %v5178_v47, %v5178_v47 }
 0x987   :  { %1996 = vmatmul.mubr.bf16.vlgmr.msra.gmra.mrb[56].mxu0 %v1962_v39  ;;  %2037 = vmatmul.mubr.bf16.vlgmr.msra.gmra.mrb[88].mxu1 %v1962_v39 }
 0x988   :  { %2076 = vmatpush1.bf16.msra.mxu0 %v4948_v28  ;;  %2117 = vmatpush1.bf16.msra.mxu1 %v4953_v36 }
 0x989   :  { %2077 = vmatprep.subr.bf16.mxu0 %v4961_v30  ;;  %2118 = vmatprep.subr.bf16.mxu1 %v4966_v6 }
 0x98a   :  { %2107 = vmatprep.mubr.bf16.mxu0 %v5867_v9  ;;  %2148 = vmatprep.mubr.bf16.mxu1 %v5867_v9 }
 0x98c   :  { %2078 = vmatpush1.bf16.msra.mxu0 %v4971_v32  ;;  %2119 = vmatpush1.bf16.msra.mxu1 %v4976_v37 }
 0x98d   :  { %2079 = vmatprep.subr.bf16.mxu0 %v4985_v14  ;;  %2120 = vmatprep.subr.bf16.mxu1 %v4990_v48 }
 0x990   :  { %2080 = vmatpush1.bf16.msra.mxu0 %v4995_v63  ;;  %2121 = vmatpush1.bf16.msra.mxu1 %v5000_v58 }
 0x991   :  { %2081 = vmatprep.subr.bf16.mxu0 %v5009_v8  ;;  %2122 = vmatprep.subr.bf16.mxu1 %v5014_v7 }
 0x994   :  { %2082 = vmatpush1.bf16.msra.mxu0 %v5019_v42  ;;  %2123 = vmatpush1.bf16.msra.mxu1 %v5024_v20 }
 0x995   :  { %2083 = vmatprep.subr.bf16.mxu0 %v5033_v13  ;;  %2124 = vmatprep.subr.bf16.mxu1 %v5038_v33 }
 0x998   :  { %2084 = vmatpush1.bf16.msra.mxu0 %v5043_v62  ;;  %2125 = vmatpush1.bf16.msra.mxu1 %v5048_v41 }
 0x999   :  { %2085 = vmatprep.subr.bf16.mxu0 %v5055_v29  ;;  %2126 = vmatprep.subr.bf16.mxu1 %v5060_v55 }
 0x99c   :  { %2086 = vmatpush1.bf16.msra.mxu0 %v5067_v56  ;;  %2127 = vmatpush1.bf16.msra.mxu1 %v5072_v25 }
 0x99d   :  { %2087 = vmatprep.subr.bf16.mxu0 %v5079_v31  ;;  %2128 = vmatprep.subr.bf16.mxu1 %v5084_v57 }
 0x9a0   :  { %2088 = vmatpush1.bf16.msra.mxu0 %v5091_v2  ;;  %2129 = vmatpush1.bf16.msra.mxu1 %v5096_v38 }
 0x9a1   :  { %2089 = vmatprep.subr.bf16.mxu0 %v5103_v19  ;;  %2130 = vmatprep.subr.bf16.mxu1 %v5108_v12 }
 0x9a4   :  { %2090 = vmatpush1.bf16.msra.mxu0 %v5115_v5  ;;  %2131 = vmatpush1.bf16.msra.mxu1 %v5120_v17 }
 0x9a5   :  { %2187 = vmatprep.subr.bf16.mxu0 %v4937_v24  ;;  %2228 = vmatprep.subr.bf16.mxu1 %v4942_v27 }
 0xa5a   :  { %v1997_v18 = vpop.f32.mrb[56].mxu0  ;;  %v2038_v16 = vpop.f32.mrb[88].mxu1 }
 0xa5b   :  { %v2045_v40 = vadd.f32 %v1997_v18, %v5891_v26  ;;  %v2047_v3 = vadd.f32 %v2038_v16, %v5892_v61  ;;  %v1999_v10 = vpop.f32.mrb[57].mxu0  ;;  %v2040_v49 = vpop.f32.mrb[89].mxu1 }
 0xa5c   :  { %v2046_v51 = vadd.f32 %v1999_v10, %v5893_v50  ;;  %v2048_v53 = vadd.f32 %v2040_v49, %v5894_v52  ;;  %v2001_v34 = vpop.f32.mrb[58].mxu0  ;;  %v2042_v22 = vpop.f32.mrb[90].mxu1 }
 0xa5d   :  { %v3277_v23 = vmul.f32 -1.442695, %v2045_v40  ;;  %v2002_v35 = vpop.f32.mrb[59].mxu0  ;;  %v2043_v0 = vpop.f32.mrb[91].mxu1  ;;  %v3279_v21 = vmul.f32 -1.442695, %v2047_v3 }
 0xa5e   :  { %v3278_v15 = vmul.f32 -1.442695, %v2046_v51  ;;  %v5895_v51 = vld [vmem:[#allocation7_spill] sm:$0xff]  ;;  %v5897_v35 = vld [vmem:[#allocation8_spill] sm:$0xff] }
 0xa5f   :  { %3646 = vpow2.f32 %v3277_v23 }
 0xa60   :  { %3648 = vpow2.f32 %v3278_v15  ;;  %v5898_v15 = vld [vmem:[#allocation47_spill] sm:$0xff] }
 0xa61   :  { %3650 = vtanh.f32 %v2048_v53  ;;  %v5896_v53 = vld [vmem:[#allocation46_spill] sm:$0xff] }
 0xa62   :  { %3652 = vpow2.f32 %v3279_v21 }
 0xa69   :  { %v3647_v43 = vpop.eup %3646 }
 0xa6a   :  { %v2058_v44 = vadd.f32 1.0, %v3647_v43  ;;  %v3649_v45 = vpop.eup %3648 }
 0xa6b   :  { %v2059_v54 = vadd.f32 1.0, %v3649_v45  ;;  %v3651_v46 = vpop.eup %3650 }
 0xa6c   :  { %3654 = vrcp.f32 %v2058_v44  ;;  %v3653_v1 = vpop.eup %3652 }
 0xa6d   :  { %3656 = vrcp.f32 %v2059_v54  ;;  %v2060_v16 = vadd.f32 1.0, %v3653_v1 }
 0xa6f   :  { %3658 = vrcp.f32 %v2060_v16 }
 0xa76   :  { %v3655_v59 = vpop.eup %3654 }
 0xa77   :  { %v2069_v39 = vmul.f32 %v3655_v59, %v3651_v46  ;;  %v3657_v18 = vpop.eup %3656 }
 0xa78   :  { %v2068_v26 = vmul.f32 %v3657_v18, %v5175_v4 }
 0xa79   :  { %v3659_v61 = vpop.eup %3658 }
 0xa7a   :  { %v5221_v40 = vadd.f32 %v2069_v39, %v2068_v26 }
 0xa7c   :  { %3660 = vtanh.f32 %v5221_v40 }
 0xa86   :  { %v3661_v3 = vpop.eup %3660 }
 0xa87   :  { %v5224_v10 = vmul.f32 %v3661_v3, %v3659_v61 }
 0xa89   :  { %v2074_v49 = vpack.c.bf16 %v5224_v10, %v5224_v10 }
 0xa8b   :  { %2108 = vmatmul.mubr.bf16.vlgmr.msra.gmra.mrb[60].mxu0 %v2074_v49  ;;  %2149 = vmatmul.mubr.bf16.vlgmr.msra.gmra.mrb[92].mxu1 %v2074_v49 }
 0xa8c   :  { %2188 = vmatpush1.bf16.msra.mxu0 %v4948_v28  ;;  %2229 = vmatpush1.bf16.msra.mxu1 %v4953_v36 }
 0xa8d   :  { %2189 = vmatprep.subr.bf16.mxu0 %v4961_v30  ;;  %2230 = vmatprep.subr.bf16.mxu1 %v4966_v6 }
 0xa8e   :  { %2219 = vmatprep.mubr.bf16.mxu0 %v5867_v9  ;;  %2260 = vmatprep.mubr.bf16.mxu1 %v5867_v9 }
 0xa90   :  { %2190 = vmatpush1.bf16.msra.mxu0 %v4971_v32  ;;  %2231 = vmatpush1.bf16.msra.mxu1 %v4976_v37 }
 0xa91   :  { %2191 = vmatprep.subr.bf16.mxu0 %v4985_v14  ;;  %2232 = vmatprep.subr.bf16.mxu1 %v4990_v48 }
 0xa94   :  { %2192 = vmatpush1.bf16.msra.mxu0 %v4995_v63  ;;  %2233 = vmatpush1.bf16.msra.mxu1 %v5000_v58 }
 0xa95   :  { %2193 = vmatprep.subr.bf16.mxu0 %v5009_v8  ;;  %2234 = vmatprep.subr.bf16.mxu1 %v5014_v7 }
 0xa98   :  { %2194 = vmatpush1.bf16.msra.mxu0 %v5019_v42  ;;  %2235 = vmatpush1.bf16.msra.mxu1 %v5024_v20 }
 0xa99   :  { %2195 = vmatprep.subr.bf16.mxu0 %v5033_v13  ;;  %2236 = vmatprep.subr.bf16.mxu1 %v5038_v33 }
 0xa9c   :  { %2196 = vmatpush1.bf16.msra.mxu0 %v5043_v62  ;;  %2237 = vmatpush1.bf16.msra.mxu1 %v5048_v41 }
 0xa9d   :  { %2197 = vmatprep.subr.bf16.mxu0 %v5055_v29  ;;  %2238 = vmatprep.subr.bf16.mxu1 %v5060_v55 }
 0xaa0   :  { %2198 = vmatpush1.bf16.msra.mxu0 %v5067_v56  ;;  %2239 = vmatpush1.bf16.msra.mxu1 %v5072_v25 }
 0xaa1   :  { %2199 = vmatprep.subr.bf16.mxu0 %v5079_v31  ;;  %2240 = vmatprep.subr.bf16.mxu1 %v5084_v57 }
 0xaa4   :  { %2200 = vmatpush1.bf16.msra.mxu0 %v5091_v2  ;;  %2241 = vmatpush1.bf16.msra.mxu1 %v5096_v38 }
 0xaa5   :  { %2201 = vmatprep.subr.bf16.mxu0 %v5103_v19  ;;  %2242 = vmatprep.subr.bf16.mxu1 %v5108_v12 }
 0xaa8   :  { %2202 = vmatpush1.bf16.msra.mxu0 %v5115_v5  ;;  %2243 = vmatpush1.bf16.msra.mxu1 %v5120_v17 }
 0xaa9   :  { %2299 = vmatprep.subr.bf16.mxu0 %v4937_v24  ;;  %2340 = vmatprep.subr.bf16.mxu1 %v4942_v27 }
 0xb5e   :  { %v2109_v4 = vpop.f32.mrb[60].mxu0  ;;  %v2150_v50 = vpop.f32.mrb[92].mxu1 }
 0xb5f   :  { %v2157_v52 = vadd.f32 %v2109_v4, %v5895_v51  ;;  %v2159_v34 = vadd.f32 %v2150_v50, %v5896_v53  ;;  %v2111_v22 = vpop.f32.mrb[61].mxu0  ;;  %v2152_v23 = vpop.f32.mrb[93].mxu1 }
 0xb60   :  { %v2158_v0 = vadd.f32 %v2111_v22, %v5897_v35  ;;  %v2160_v21 = vadd.f32 %v2152_v23, %v5898_v15  ;;  %v2113_v43 = vpop.f32.mrb[62].mxu0  ;;  %v2154_v44 = vpop.f32.mrb[94].mxu1  ;;  %v5899_v15 = vld [vmem:[#allocation9_spill] sm:$0xff] }
 0xb61   :  { %v3280_v45 = vmul.f32 -1.442695, %v2157_v52  ;;  %v2114_v54 = vpop.f32.mrb[63].mxu0  ;;  %v2155_v46 = vpop.f32.mrb[95].mxu1  ;;  %v3282_v59 = vmul.f32 -1.442695, %v2159_v34 }
 0xb62   :  { %v3281_v1 = vmul.f32 -1.442695, %v2158_v0  ;;  %v5900_v54 = vld [vmem:[#allocation11_spill] sm:$0xff] }
 0xb63   :  { %3662 = vpow2.f32 %v3280_v45 }
 0xb64   :  { %3664 = vpow2.f32 %v3281_v1  ;;  %v5901_v1 = vld [vmem:[#allocation48_spill] sm:$0xff] }
 0xb65   :  { %3666 = vtanh.f32 %v2160_v21 }
 0xb66   :  { %3668 = vpow2.f32 %v3282_v59 }
 0xb6d   :  { %v3663_v39 = vpop.eup %3662 }
 0xb6e   :  { %v2170_v18 = vadd.f32 1.0, %v3663_v39  ;;  %v3665_v16 = vpop.eup %3664 }
 0xb6f   :  { %v2171_v26 = vadd.f32 1.0, %v3665_v16  ;;  %v3667_v61 = vpop.eup %3666 }
 0xb70   :  { %3670 = vrcp.f32 %v2170_v18  ;;  %v3669_v3 = vpop.eup %3668 }
 0xb71   :  { %3672 = vrcp.f32 %v2171_v26  ;;  %v2172_v51 = vadd.f32 1.0, %v3669_v3 }
 0xb73   :  { %3674 = vrcp.f32 %v2172_v51 }
 0xb7a   :  { %v3671_v49 = vpop.eup %3670 }
 0xb7b   :  { %v2181_v4 = vmul.f32 %v3671_v49, %v3667_v61  ;;  %v3673_v50 = vpop.eup %3672 }
 0xb7c   :  { %v2180_v52 = vmul.f32 %v3673_v50, %v5221_v40 }
 0xb7d   :  { %v3675_v34 = vpop.eup %3674 }
 0xb7e   :  { %v5267_v53 = vadd.f32 %v2181_v4, %v2180_v52 }
 0xb80   :  { %3676 = vtanh.f32 %v5267_v53 }
 0xb8a   :  { %v3677_v22 = vpop.eup %3676 }
 0xb8b   :  { %v5270_v23 = vmul.f32 %v3677_v22, %v3675_v34 }
 0xb8d   :  { %v2186_v35 = vpack.c.bf16 %v5270_v23, %v5270_v23 }
 0xb8f   :  { %2220 = vmatmul.mubr.bf16.vlgmr.msra.gmra.mrb[64].mxu0 %v2186_v35  ;;  %2261 = vmatmul.mubr.bf16.vlgmr.msra.gmra.mrb[96].mxu1 %v2186_v35 }
 0xb90   :  { %2300 = vmatpush1.bf16.msra.mxu0 %v4948_v28  ;;  %2341 = vmatpush1.bf16.msra.mxu1 %v4953_v36 }
 0xb91   :  { %2301 = vmatprep.subr.bf16.mxu0 %v4961_v30  ;;  %2342 = vmatprep.subr.bf16.mxu1 %v4966_v6 }
 0xb92   :  { %2331 = vmatprep.mubr.bf16.mxu0 %v5867_v9  ;;  %2372 = vmatprep.mubr.bf16.mxu1 %v5867_v9 }
 0xb94   :  { %2302 = vmatpush1.bf16.msra.mxu0 %v4971_v32  ;;  %2343 = vmatpush1.bf16.msra.mxu1 %v4976_v37 }
 0xb95   :  { %2303 = vmatprep.subr.bf16.mxu0 %v4985_v14  ;;  %2344 = vmatprep.subr.bf16.mxu1 %v4990_v48 }
 0xb98   :  { %2304 = vmatpush1.bf16.msra.mxu0 %v4995_v63  ;;  %2345 = vmatpush1.bf16.msra.mxu1 %v5000_v58 }
 0xb99   :  { %2305 = vmatprep.subr.bf16.mxu0 %v5009_v8  ;;  %2346 = vmatprep.subr.bf16.mxu1 %v5014_v7 }
 0xb9c   :  { %2306 = vmatpush1.bf16.msra.mxu0 %v5019_v42  ;;  %2347 = vmatpush1.bf16.msra.mxu1 %v5024_v20 }
 0xb9d   :  { %2307 = vmatprep.subr.bf16.mxu0 %v5033_v13  ;;  %2348 = vmatprep.subr.bf16.mxu1 %v5038_v33 }
 0xba0   :  { %2308 = vmatpush1.bf16.msra.mxu0 %v5043_v62  ;;  %2349 = vmatpush1.bf16.msra.mxu1 %v5048_v41 }
 0xba1   :  { %2309 = vmatprep.subr.bf16.mxu0 %v5055_v29  ;;  %2350 = vmatprep.subr.bf16.mxu1 %v5060_v55 }
 0xba4   :  { %2310 = vmatpush1.bf16.msra.mxu0 %v5067_v56  ;;  %2351 = vmatpush1.bf16.msra.mxu1 %v5072_v25 }
 0xba5   :  { %2311 = vmatprep.subr.bf16.mxu0 %v5079_v31  ;;  %2352 = vmatprep.subr.bf16.mxu1 %v5084_v57 }
 0xba8   :  { %2312 = vmatpush1.bf16.msra.mxu0 %v5091_v2  ;;  %2353 = vmatpush1.bf16.msra.mxu1 %v5096_v38 }
 0xba9   :  { %2313 = vmatprep.subr.bf16.mxu0 %v5103_v19  ;;  %2354 = vmatprep.subr.bf16.mxu1 %v5108_v12 }
 0xbac   :  { %2314 = vmatpush1.bf16.msra.mxu0 %v5115_v5  ;;  %2355 = vmatpush1.bf16.msra.mxu1 %v5120_v17 }
 0xbad   :  { %2411 = vmatprep.subr.bf16.mxu0 %v4937_v24  ;;  %2452 = vmatprep.subr.bf16.mxu1 %v4942_v27 }
 0xc62   :  { %v2221_v40 = vpop.f32.mrb[64].mxu0  ;;  %v2262_v0 = vpop.f32.mrb[96].mxu1 }
 0xc63   :  { %v2269_v21 = vadd.f32 %v2221_v40, %v5899_v15  ;;  %v2271_v43 = vadd.f32 %v2262_v0, %v4487_v60  ;;  %v2223_v44 = vpop.f32.mrb[65].mxu0  ;;  %v2264_v45 = vpop.f32.mrb[97].mxu1 }
 0xc64   :  { %v2270_v46 = vadd.f32 %v2223_v44, %v5900_v54  ;;  %v2272_v59 = vadd.f32 %v2264_v45, %v5901_v1  ;;  %v2225_v39 = vpop.f32.mrb[66].mxu0  ;;  %v2266_v18 = vpop.f32.mrb[98].mxu1  ;;  %v5902_v1 = vld [vmem:[#allocation13_spill] sm:$0xff] }
 0xc65   :  { %v3283_v16 = vmul.f32 -1.442695, %v2269_v21  ;;  %v2226_v26 = vpop.f32.mrb[67].mxu0  ;;  %v2267_v61 = vpop.f32.mrb[99].mxu1  ;;  %v3285_v49 = vmul.f32 -1.442695, %v2271_v43 }
 0xc66   :  { %v3284_v3 = vmul.f32 -1.442695, %v2270_v46  ;;  %v5903_v39 = vld [vmem:[#allocation49_spill] sm:$0xff]  ;;  %v5904_v61 = vld [vmem:[#allocation15_spill] sm:$0xff] }
 0xc67   :  { %3678 = vpow2.f32 %v3283_v16 }
 0xc68   :  { %3680 = vpow2.f32 %v3284_v3 }
 0xc69   :  { %3682 = vtanh.f32 %v2272_v59 }
 0xc6a   :  { %3684 = vpow2.f32 %v3285_v49  ;;  %v5905_v49 = vld [vmem:[#allocation50_spill] sm:$0xff] }
 0xc71   :  { %v3679_v4 = vpop.eup %3678 }
 0xc72   :  { %v2282_v50 = vadd.f32 1.0, %v3679_v4  ;;  %v3681_v51 = vpop.eup %3680 }
 0xc73   :  { %v2283_v60 = vadd.f32 1.0, %v3681_v51  ;;  %v3683_v52 = vpop.eup %3682 }
 0xc74   :  { %3686 = vrcp.f32 %v2282_v50  ;;  %v3685_v34 = vpop.eup %3684 }
 0xc75   :  { %3688 = vrcp.f32 %v2283_v60  ;;  %v2284_v0 = vadd.f32 1.0, %v3685_v34 }
 0xc77   :  { %3690 = vrcp.f32 %v2284_v0 }
 0xc7e   :  { %v3687_v22 = vpop.eup %3686 }
 0xc7f   :  { %v2293_v35 = vmul.f32 %v3687_v22, %v3683_v52  ;;  %v3689_v40 = vpop.eup %3688 }
 0xc80   :  { %v2292_v15 = vmul.f32 %v3689_v40, %v5267_v53 }
 0xc81   :  { %v3691_v43 = vpop.eup %3690 }
 0xc82   :  { %v5313_v21 = vadd.f32 %v2293_v35, %v2292_v15 }
 0xc84   :  { %3692 = vtanh.f32 %v5313_v21 }
 0xc8e   :  { %v3693_v44 = vpop.eup %3692 }
 0xc8f   :  { %v5316_v45 = vmul.f32 %v3693_v44, %v3691_v43 }
 0xc91   :  { %v2298_v54 = vpack.c.bf16 %v5316_v45, %v5316_v45 }
 0xc93   :  { %2332 = vmatmul.mubr.bf16.vlgmr.msra.gmra.mrb[68].mxu0 %v2298_v54  ;;  %2373 = vmatmul.mubr.bf16.vlgmr.msra.gmra.mrb[100].mxu1 %v2298_v54 }
 0xc94   :  { %2412 = vmatpush1.bf16.msra.mxu0 %v4948_v28  ;;  %2453 = vmatpush1.bf16.msra.mxu1 %v4953_v36 }
 0xc95   :  { %2413 = vmatprep.subr.bf16.mxu0 %v4961_v30  ;;  %2454 = vmatprep.subr.bf16.mxu1 %v4966_v6 }
 0xc96   :  { %2443 = vmatprep.mubr.bf16.mxu0 %v5867_v9  ;;  %2484 = vmatprep.mubr.bf16.mxu1 %v5867_v9 }
 0xc98   :  { %2414 = vmatpush1.bf16.msra.mxu0 %v4971_v32  ;;  %2455 = vmatpush1.bf16.msra.mxu1 %v4976_v37 }
 0xc99   :  { %2415 = vmatprep.subr.bf16.mxu0 %v4985_v14  ;;  %2456 = vmatprep.subr.bf16.mxu1 %v4990_v48 }
 0xc9c   :  { %2416 = vmatpush1.bf16.msra.mxu0 %v4995_v63  ;;  %2457 = vmatpush1.bf16.msra.mxu1 %v5000_v58 }
 0xc9d   :  { %2417 = vmatprep.subr.bf16.mxu0 %v5009_v8  ;;  %2458 = vmatprep.subr.bf16.mxu1 %v5014_v7 }
 0xca0   :  { %2418 = vmatpush1.bf16.msra.mxu0 %v5019_v42  ;;  %2459 = vmatpush1.bf16.msra.mxu1 %v5024_v20 }
 0xca1   :  { %2419 = vmatprep.subr.bf16.mxu0 %v5033_v13  ;;  %2460 = vmatprep.subr.bf16.mxu1 %v5038_v33 }
 0xca4   :  { %2420 = vmatpush1.bf16.msra.mxu0 %v5043_v62  ;;  %2461 = vmatpush1.bf16.msra.mxu1 %v5048_v41 }
 0xca5   :  { %2421 = vmatprep.subr.bf16.mxu0 %v5055_v29  ;;  %2462 = vmatprep.subr.bf16.mxu1 %v5060_v55 }
 0xca8   :  { %2422 = vmatpush1.bf16.msra.mxu0 %v5067_v56  ;;  %2463 = vmatpush1.bf16.msra.mxu1 %v5072_v25 }
 0xca9   :  { %2423 = vmatprep.subr.bf16.mxu0 %v5079_v31  ;;  %2464 = vmatprep.subr.bf16.mxu1 %v5084_v57 }
 0xcac   :  { %2424 = vmatpush1.bf16.msra.mxu0 %v5091_v2  ;;  %2465 = vmatpush1.bf16.msra.mxu1 %v5096_v38 }
 0xcad   :  { %2425 = vmatprep.subr.bf16.mxu0 %v5103_v19  ;;  %2466 = vmatprep.subr.bf16.mxu1 %v5108_v12 }
 0xcb0   :  { %2426 = vmatpush1.bf16.msra.mxu0 %v5115_v5  ;;  %2467 = vmatpush1.bf16.msra.mxu1 %v5120_v17 }
 0xcb1   :  { %2523 = vmatprep.subr.bf16.mxu0 %v4937_v24  ;;  %2564 = vmatprep.subr.bf16.mxu1 %v4942_v27 }
 0xd66   :  { %v2333_v53 = vpop.f32.mrb[68].mxu0  ;;  %v2374_v46 = vpop.f32.mrb[100].mxu1 }
 0xd67   :  { %v2381_v59 = vadd.f32 %v2333_v53, %v5902_v1  ;;  %v2383_v18 = vadd.f32 %v2374_v46, %v5903_v39  ;;  %v2335_v16 = vpop.f32.mrb[69].mxu0  ;;  %v2376_v26 = vpop.f32.mrb[101].mxu1 }
 0xd68   :  { %v2382_v3 = vadd.f32 %v2335_v16, %v5904_v61  ;;  %v2384_v4 = vadd.f32 %v2376_v26, %v5905_v49  ;;  %v2337_v50 = vpop.f32.mrb[70].mxu0  ;;  %v2378_v51 = vpop.f32.mrb[102].mxu1 }
 0xd69   :  { %v3286_v60 = vmul.f32 -1.442695, %v2381_v59  ;;  %v2338_v52 = vpop.f32.mrb[71].mxu0  ;;  %v2379_v34 = vpop.f32.mrb[103].mxu1  ;;  %v3288_v27 = vmul.f32 -1.442695, %v2383_v18 }
 0xd6a   :  { %v3287_v24 = vmul.f32 -1.442695, %v2382_v3  ;;  %v5425_v50 = vld [vmem:[%s5804_s6] ss:$16 sps:$4 sm:$0xff]   ;;  %v5431_v51 = vld [vmem:[%s5804_s6 + $0x8] ss:$16 sps:$4 sm:$0xff]  }
 0xd6b   :  { %3694 = vpow2.f32 %v3286_v60  ;;  %v5437_v60 = vld [vmem:[%s5804_s6 + $0x24] ss:$16 sps:$4 sm:$0xff]   ;;  %v5443_v52 = vld [vmem:[%s5804_s6 + $0x2c] ss:$16 sps:$4 sm:$0xff]   ;;  %v5451_v34 = vld [vmem:[%s5804_s6 + $0x20] ss:$16 sps:$4 sm:$0xff]  }
 0xd6c   :  { %3696 = vpow2.f32 %v3287_v24  ;;  %v5457_v24 = vld [vmem:[%s5804_s6 + $0x28] ss:$16 sps:$4 sm:$0xff]  }
 0xd6d   :  { %3698 = vtanh.f32 %v2384_v4 }
 0xd6e   :  { %3700 = vpow2.f32 %v3288_v27  ;;  %v5463_v27 = vld [vmem:[%s5804_s6 + $0x44] ss:$16 sps:$4 sm:$0xff]  }
 0xd75   :  { %v3695_v22 = vpop.eup %3694 }
 0xd76   :  { %v2394_v35 = vadd.f32 1.0, %v3695_v22  ;;  %v3697_v40 = vpop.eup %3696  ;;  %v5469_v22 = vld [vmem:[%s5804_s6 + $0x4c] ss:$16 sps:$4 sm:$0xff]  }
 0xd77   :  { %v2395_v0 = vadd.f32 1.0, %v3697_v40  ;;  %v3699_v15 = vpop.eup %3698  ;;  %v5481_v40 = vld [vmem:[%s5804_s6 + $0x48] ss:$16 sps:$4 sm:$0xff]  }
 0xd78   :  { %3702 = vrcp.f32 %v2394_v35  ;;  %v3701_v43 = vpop.eup %3700  ;;  %v5475_v35 = vld [vmem:[%s5804_s6 + $0x40] ss:$16 sps:$4 sm:$0xff]  }
 0xd79   :  { %3704 = vrcp.f32 %v2395_v0  ;;  %v2396_v46 = vadd.f32 1.0, %v3701_v43  ;;  %v5487_v0 = vld [vmem:[%s5804_s6 + $0x64] ss:$16 sps:$4 sm:$0xff]   ;;  %v5499_v43 = vld [vmem:[%s5804_s6 + $0x60] ss:$16 sps:$4 sm:$0xff]  }
 0xd7b   :  { %3706 = vrcp.f32 %v2396_v46  ;;  %v5523_v46 = vld [vmem:[%s5804_s6 + $0x80] ss:$16 sps:$4 sm:$0xff]  }
 0xd82   :  { %v3703_v44 = vpop.eup %3702 }
 0xd83   :  { %v2405_v54 = vmul.f32 %v3703_v44, %v3699_v15  ;;  %v3705_v53 = vpop.eup %3704  ;;  %v5493_v15 = vld [vmem:[%s5804_s6 + $0x6c] ss:$16 sps:$4 sm:$0xff]   ;;  %v5505_v44 = vld [vmem:[%s5804_s6 + $0x68] ss:$16 sps:$4 sm:$0xff]  }
 0xd84   :  { %v2404_v1 = vmul.f32 %v3705_v53, %v5313_v21  ;;  %v5517_v53 = vld [vmem:[%s5804_s6 + $0x8c] ss:$16 sps:$4 sm:$0xff]  }
 0xd85   :  { %v3707_v39 = vpop.eup %3706 }
 0xd86   :  { %v5359_v59 = vadd.f32 %v2405_v54, %v2404_v1  ;;  %v5511_v54 = vld [vmem:[%s5804_s6 + $0x84] ss:$16 sps:$4 sm:$0xff]   ;;  %v5529_v1 = vld [vmem:[%s5804_s6 + $0x88] ss:$16 sps:$4 sm:$0xff]  }
 0xd88   :  { %3708 = vtanh.f32 %v5359_v59 }
 0xd92   :  { %v3709_v18 = vpop.eup %3708 }
 0xd93   :  { %v5362_v16 = vmul.f32 %v3709_v18, %v3707_v39  ;;  %v5541_v39 = vld [vmem:[%s5804_s6 + $0xac] ss:$16 sps:$4 sm:$0xff]   ;;  %v5547_v18 = vld [vmem:[%s5804_s6 + $0xa0] ss:$16 sps:$4 sm:$0xff]  }
 0xd95   :  { %v2410_v26 = vpack.c.bf16 %v5362_v16, %v5362_v16 }
 0xd97   :  { %2444 = vmatmul.mubr.bf16.vlgmr.msra.gmra.mrb[72].mxu0 %v2410_v26  ;;  %2485 = vmatmul.mubr.bf16.vlgmr.msra.gmra.mrb[104].mxu1 %v2410_v26  ;;  %v5553_v26 = vld [vmem:[%s5804_s6 + $0xa8] ss:$16 sps:$4 sm:$0xff]  }
 0xd98   :  { %2524 = vmatpush1.bf16.msra.mxu0 %v4948_v28  ;;  %2565 = vmatpush1.bf16.msra.mxu1 %v4953_v36  ;;  %v5401_v28 = vld [vmem:[%s5804_s6 + $0x4] ss:$16 sps:$4 sm:$0xff]   ;;  %v5407_v36 = vld [vmem:[%s5804_s6 + $0xc] ss:$16 sps:$4 sm:$0xff]  }
 0xd99   :  { %2525 = vmatprep.subr.bf16.mxu0 %v4961_v30  ;;  %2566 = vmatprep.subr.bf16.mxu1 %v4966_v6 }
 0xd9a   :  { %2555 = vmatprep.mubr.bf16.mxu0 %v5867_v9  ;;  %2596 = vmatprep.mubr.bf16.mxu1 %v5867_v9 }
 0xd9c   :  { %2526 = vmatpush1.bf16.msra.mxu0 %v4971_v32  ;;  %2567 = vmatpush1.bf16.msra.mxu1 %v4976_v37  ;;  %v5906_v32 = vld [vmem:[#allocation17_spill] sm:$0xff] }
 0xd9d   :  { %2527 = vmatprep.subr.bf16.mxu0 %v4985_v14  ;;  %2568 = vmatprep.subr.bf16.mxu1 %v4990_v48  ;;  %v5907_v14 = vld [vmem:[#allocation51_spill] sm:$0xff] }
 0xda0   :  { %2528 = vmatpush1.bf16.msra.mxu0 %v4995_v63  ;;  %2569 = vmatpush1.bf16.msra.mxu1 %v5000_v58 }
 0xda1   :  { %2529 = vmatprep.subr.bf16.mxu0 %v5009_v8  ;;  %2570 = vmatprep.subr.bf16.mxu1 %v5014_v7  ;;  %v5908_v8 = vld [vmem:[#allocation19_spill] sm:$0xff] }
 0xda4   :  { %2530 = vmatpush1.bf16.msra.mxu0 %v5019_v42  ;;  %2571 = vmatpush1.bf16.msra.mxu1 %v5024_v20 }
 0xda5   :  { %2531 = vmatprep.subr.bf16.mxu0 %v5033_v13  ;;  %2572 = vmatprep.subr.bf16.mxu1 %v5038_v33 }
 0xda8   :  { %2532 = vmatpush1.bf16.msra.mxu0 %v5043_v62  ;;  %2573 = vmatpush1.bf16.msra.mxu1 %v5048_v41 }
 0xda9   :  { %2533 = vmatprep.subr.bf16.mxu0 %v5055_v29  ;;  %2574 = vmatprep.subr.bf16.mxu1 %v5060_v55 }
 0xdac   :  { %2534 = vmatpush1.bf16.msra.mxu0 %v5067_v56  ;;  %2575 = vmatpush1.bf16.msra.mxu1 %v5072_v25 }
 0xdad   :  { %2535 = vmatprep.subr.bf16.mxu0 %v5079_v31  ;;  %2576 = vmatprep.subr.bf16.mxu1 %v5084_v57 }
 0xdb0   :  { %2536 = vmatpush1.bf16.msra.mxu0 %v5091_v2  ;;  %2577 = vmatpush1.bf16.msra.mxu1 %v5096_v38 }
 0xdb1   :  { %2537 = vmatprep.subr.bf16.mxu0 %v5103_v19  ;;  %2578 = vmatprep.subr.bf16.mxu1 %v5108_v12 }
 0xdb4   :  { %2538 = vmatpush1.bf16.msra.mxu0 %v5115_v5  ;;  %2579 = vmatpush1.bf16.msra.mxu1 %v5120_v17 }
 0xdb5   :  { %2635 = vmatprep.subr.bf16.mxu0 %v5401_v28  ;;  %2676 = vmatprep.subr.bf16.mxu1 %v5407_v36 }
 0xe6a   :  { %v2445_v30 = vpop.f32.mrb[72].mxu0  ;;  %v2486_v6 = vpop.f32.mrb[104].mxu1 }
 0xe6b   :  { %v2493_v37 = vadd.f32 %v2445_v30, %v5906_v32  ;;  %v2495_v48 = vadd.f32 %v2486_v6, %v5907_v14  ;;  %v2447_v63 = vpop.f32.mrb[73].mxu0  ;;  %v2488_v58 = vpop.f32.mrb[105].mxu1  ;;  %v5559_v30 = vld [vmem:[%s5804_s6 + $0xc4] ss:$16 sps:$4 sm:$0xff]   ;;  %v5565_v6 = vld [vmem:[%s5804_s6 + $0xcc] ss:$16 sps:$4 sm:$0xff]  }
 0xe6c   :  { %v2494_v7 = vadd.f32 %v2447_v63, %v5908_v8  ;;  %v2496_v42 = vadd.f32 %v2488_v58, %v4497_v11  ;;  %v2449_v20 = vpop.f32.mrb[74].mxu0  ;;  %v2490_v13 = vpop.f32.mrb[106].mxu1  ;;  %v5571_v32 = vld [vmem:[%s5804_s6 + $0xc0] ss:$16 sps:$4 sm:$0xff]   ;;  %v5583_v14 = vld [vmem:[%s5804_s6 + $0xe4] ss:$16 sps:$4 sm:$0xff]  }
 0xe6d   :  { %v3289_v33 = vmul.f32 -1.442695, %v2493_v37  ;;  %v2450_v62 = vpop.f32.mrb[75].mxu0  ;;  %v2491_v41 = vpop.f32.mrb[107].mxu1  ;;  %v3291_v55 = vmul.f32 -1.442695, %v2495_v48 }
 0xe6e   :  { %v3290_v29 = vmul.f32 -1.442695, %v2494_v7  ;;  %v5577_v37 = vld [vmem:[%s5804_s6 + $0xc8] ss:$16 sps:$4 sm:$0xff]   ;;  %v5589_v48 = vld [vmem:[%s5804_s6 + $0xec] ss:$16 sps:$4 sm:$0xff]  }
 0xe6f   :  { %3710 = vpow2.f32 %v3289_v33  ;;  %v5595_v63 = vld [vmem:[%s5804_s6 + $0xe0] ss:$16 sps:$4 sm:$0xff]   ;;  %v5601_v58 = vld [vmem:[%s5804_s6 + $0xe8] ss:$16 sps:$4 sm:$0xff]  }
 0xe70   :  { %3712 = vpow2.f32 %v3290_v29  ;;  %v5910_v13 = vld [vmem:[#allocation52_spill] sm:$0xff]  ;;  %v5911_v29 = vld [vmem:[#allocation23_spill] sm:$0xff] }
 0xe71   :  { %3714 = vtanh.f32 %v2496_v42  ;;  %v5909_v42 = vld [vmem:[#allocation21_spill] sm:$0xff] }
 0xe72   :  { %3716 = vpow2.f32 %v3291_v55 }
 0xe79   :  { %v3711_v56 = vpop.eup %3710 }
 0xe7a   :  { %v2506_v25 = vadd.f32 1.0, %v3711_v56  ;;  %v3713_v31 = vpop.eup %3712  ;;  %v5912_v56 = vld [vmem:[#allocation53_spill] sm:$0xff] }
 0xe7b   :  { %v2507_v57 = vadd.f32 1.0, %v3713_v31  ;;  %v3715_v2 = vpop.eup %3714 }
 0xe7c   :  { %3718 = vrcp.f32 %v2506_v25  ;;  %v3717_v38 = vpop.eup %3716 }
 0xe7d   :  { %3720 = vrcp.f32 %v2507_v57  ;;  %v2508_v5 = vadd.f32 1.0, %v3717_v38 }
 0xe7f   :  { %3722 = vrcp.f32 %v2508_v5 }
 0xe86   :  { %v3719_v11 = vpop.eup %3718 }
 0xe87   :  { %v2517_v19 = vmul.f32 %v3719_v11, %v3715_v2  ;;  %v3721_v12 = vpop.eup %3720 }
 0xe88   :  { %v2516_v17 = vmul.f32 %v3721_v12, %v5359_v59  ;;  %v5535_v59 = vld [vmem:[%s5804_s6 + $0xa4] ss:$16 sps:$4 sm:$0xff]  }
 0xe89   :  { %v3723_v61 = vpop.eup %3722 }
 0xe8a   :  { %v5415_v21 = vadd.f32 %v2517_v19, %v2516_v17 }
 0xe8c   :  { %3724 = vtanh.f32 %v5415_v21 }
 0xe96   :  { %v3725_v3 = vpop.eup %3724 }
 0xe97   :  { %v5418_v49 = vmul.f32 %v3725_v3, %v3723_v61 }
 0xe99   :  { %v2522_v4 = vpack.c.bf16 %v5418_v49, %v5418_v49 }
 0xe9b   :  { %2556 = vmatmul.mubr.bf16.vlgmr.msra.gmra.mrb[76].mxu0 %v2522_v4  ;;  %2597 = vmatmul.mubr.bf16.vlgmr.msra.gmra.mrb[108].mxu1 %v2522_v4 }
 0xe9c   :  { %2636 = vmatpush1.bf16.msra.mxu0 %v5425_v50  ;;  %2677 = vmatpush1.bf16.msra.mxu1 %v5431_v51 }
 0xe9d   :  { %2637 = vmatprep.subr.bf16.mxu0 %v5437_v60  ;;  %2678 = vmatprep.subr.bf16.mxu1 %v5443_v52 }
 0xe9e   :  { %2667 = vmatprep.mubr.bf16.mxu0 %v5867_v9  ;;  %2708 = vmatprep.mubr.bf16.mxu1 %v5867_v9 }
 0xea0   :  { %2638 = vmatpush1.bf16.msra.mxu0 %v5451_v34  ;;  %2679 = vmatpush1.bf16.msra.mxu1 %v5457_v24 }
 0xea1   :  { %2639 = vmatprep.subr.bf16.mxu0 %v5463_v27  ;;  %2680 = vmatprep.subr.bf16.mxu1 %v5469_v22 }
 0xea4   :  { %2640 = vmatpush1.bf16.msra.mxu0 %v5475_v35  ;;  %2681 = vmatpush1.bf16.msra.mxu1 %v5481_v40 }
 0xea5   :  { %2641 = vmatprep.subr.bf16.mxu0 %v5487_v0  ;;  %2682 = vmatprep.subr.bf16.mxu1 %v5493_v15 }
 0xea8   :  { %2642 = vmatpush1.bf16.msra.mxu0 %v5499_v43  ;;  %2683 = vmatpush1.bf16.msra.mxu1 %v5505_v44 }
 0xea9   :  { %2643 = vmatprep.subr.bf16.mxu0 %v5511_v54  ;;  %2684 = vmatprep.subr.bf16.mxu1 %v5517_v53 }
 0xeac   :  { %2644 = vmatpush1.bf16.msra.mxu0 %v5523_v46  ;;  %2685 = vmatpush1.bf16.msra.mxu1 %v5529_v1 }
 0xead   :  { %2645 = vmatprep.subr.bf16.mxu0 %v5535_v59  ;;  %2686 = vmatprep.subr.bf16.mxu1 %v5541_v39 }
 0xeb0   :  { %2646 = vmatpush1.bf16.msra.mxu0 %v5547_v18  ;;  %2687 = vmatpush1.bf16.msra.mxu1 %v5553_v26 }
 0xeb1   :  { %2647 = vmatprep.subr.bf16.mxu0 %v5559_v30  ;;  %2688 = vmatprep.subr.bf16.mxu1 %v5565_v6 }
 0xeb4   :  { %2648 = vmatpush1.bf16.msra.mxu0 %v5571_v32  ;;  %2689 = vmatpush1.bf16.msra.mxu1 %v5577_v37 }
 0xeb5   :  { %2649 = vmatprep.subr.bf16.mxu0 %v5583_v14  ;;  %2690 = vmatprep.subr.bf16.mxu1 %v5589_v48 }
 0xeb8   :  { %2650 = vmatpush1.bf16.msra.mxu0 %v5595_v63  ;;  %2691 = vmatpush1.bf16.msra.mxu1 %v5601_v58 }
 0xeb9   :  { %2747 = vmatprep.subr.bf16.mxu0 %v5401_v28  ;;  %2788 = vmatprep.subr.bf16.mxu1 %v5407_v36 }
 0xf6e   :  { %v2557_v8 = vpop.f32.mrb[76].mxu0  ;;  %v2598_v7 = vpop.f32.mrb[108].mxu1 }
 0xf6f   :  { %v2605_v20 = vadd.f32 %v2557_v8, %v5909_v42  ;;  %v2607_v33 = vadd.f32 %v2598_v7, %v5910_v13  ;;  %v2559_v62 = vpop.f32.mrb[77].mxu0  ;;  %v2600_v41 = vpop.f32.mrb[109].mxu1 }
 0xf70   :  { %v2606_v55 = vadd.f32 %v2559_v62, %v5911_v29  ;;  %v2608_v25 = vadd.f32 %v2600_v41, %v5912_v56  ;;  %v2561_v31 = vpop.f32.mrb[78].mxu0  ;;  %v2602_v57 = vpop.f32.mrb[110].mxu1 }
 0xf71   :  { %v3292_v2 = vmul.f32 -1.442695, %v2605_v20  ;;  %v2562_v38 = vpop.f32.mrb[79].mxu0  ;;  %v2603_v11 = vpop.f32.mrb[111].mxu1  ;;  %v3294_v12 = vmul.f32 -1.442695, %v2607_v33 }
 0xf72   :  { %v3293_v19 = vmul.f32 -1.442695, %v2606_v55  ;;  %v5913_v31 = vld [vmem:[#allocation25_spill] sm:$0xff] }
 0xf73   :  { %3726 = vpow2.f32 %v3292_v2  ;;  %v5914_v2 = vld [vmem:[#allocation54_spill] sm:$0xff] }
 0xf74   :  { %3728 = vpow2.f32 %v3293_v19 }
 0xf75   :  { %3730 = vtanh.f32 %v2608_v25 }
 0xf76   :  { %3732 = vpow2.f32 %v3294_v12  ;;  %v5915_v12 = vld [vmem:[#allocation27_spill] sm:$0xff] }
 0xf7d   :  { %v3727_v5 = vpop.eup %3726 }
 0xf7e   :  { %v2618_v17 = vadd.f32 1.0, %v3727_v5  ;;  %v3729_v61 = vpop.eup %3728 }
 0xf7f   :  { %v2619_v3 = vadd.f32 1.0, %v3729_v61  ;;  %v3731_v4 = vpop.eup %3730 }
 0xf80   :  { %3734 = vrcp.f32 %v2618_v17  ;;  %v3733_v8 = vpop.eup %3732  ;;  %v5916_v17 = vld [vmem:[#allocation55_spill] sm:$0xff] }
 0xf81   :  { %3736 = vrcp.f32 %v2619_v3  ;;  %v2620_v20 = vadd.f32 1.0, %v3733_v8 }
 0xf83   :  { %3738 = vrcp.f32 %v2620_v20 }
 0xf8a   :  { %v3735_v7 = vpop.eup %3734 }
 0xf8b   :  { %v2629_v42 = vmul.f32 %v3735_v7, %v3731_v4  ;;  %v3737_v13 = vpop.eup %3736 }
 0xf8c   :  { %v2628_v62 = vmul.f32 %v3737_v13, %v5415_v21 }
 0xf8d   :  { %v3739_v33 = vpop.eup %3738 }
 0xf8e   :  { %v5611_v41 = vadd.f32 %v2629_v42, %v2628_v62 }
 0xf90   :  { %3740 = vtanh.f32 %v5611_v41 }
 0xf9a   :  { %v3741_v29 = vpop.eup %3740 }
 0xf9b   :  { %v5614_v55 = vmul.f32 %v3741_v29, %v3739_v33 }
 0xf9d   :  { %v2634_v56 = vpack.c.bf16 %v5614_v55, %v5614_v55 }
 0xf9f   :  { %2668 = vmatmul.mubr.bf16.vlgmr.msra.gmra.mrb[80].mxu0 %v2634_v56  ;;  %2709 = vmatmul.mubr.bf16.vlgmr.msra.gmra.mrb[112].mxu1 %v2634_v56 }
 0xfa0   :  { %2748 = vmatpush1.bf16.msra.mxu0 %v5425_v50  ;;  %2789 = vmatpush1.bf16.msra.mxu1 %v5431_v51 }
 0xfa1   :  { %2749 = vmatprep.subr.bf16.mxu0 %v5437_v60  ;;  %2790 = vmatprep.subr.bf16.mxu1 %v5443_v52 }
 0xfa2   :  { %2779 = vmatprep.mubr.bf16.mxu0 %v5867_v9  ;;  %2820 = vmatprep.mubr.bf16.mxu1 %v5867_v9 }
 0xfa4   :  { %2750 = vmatpush1.bf16.msra.mxu0 %v5451_v34  ;;  %2791 = vmatpush1.bf16.msra.mxu1 %v5457_v24 }
 0xfa5   :  { %2751 = vmatprep.subr.bf16.mxu0 %v5463_v27  ;;  %2792 = vmatprep.subr.bf16.mxu1 %v5469_v22 }
 0xfa8   :  { %2752 = vmatpush1.bf16.msra.mxu0 %v5475_v35  ;;  %2793 = vmatpush1.bf16.msra.mxu1 %v5481_v40 }
 0xfa9   :  { %2753 = vmatprep.subr.bf16.mxu0 %v5487_v0  ;;  %2794 = vmatprep.subr.bf16.mxu1 %v5493_v15 }
 0xfac   :  { %2754 = vmatpush1.bf16.msra.mxu0 %v5499_v43  ;;  %2795 = vmatpush1.bf16.msra.mxu1 %v5505_v44 }
 0xfad   :  { %2755 = vmatprep.subr.bf16.mxu0 %v5511_v54  ;;  %2796 = vmatprep.subr.bf16.mxu1 %v5517_v53 }
 0xfb0   :  { %2756 = vmatpush1.bf16.msra.mxu0 %v5523_v46  ;;  %2797 = vmatpush1.bf16.msra.mxu1 %v5529_v1 }
 0xfb1   :  { %2757 = vmatprep.subr.bf16.mxu0 %v5535_v59  ;;  %2798 = vmatprep.subr.bf16.mxu1 %v5541_v39 }
 0xfb4   :  { %2758 = vmatpush1.bf16.msra.mxu0 %v5547_v18  ;;  %2799 = vmatpush1.bf16.msra.mxu1 %v5553_v26 }
 0xfb5   :  { %2759 = vmatprep.subr.bf16.mxu0 %v5559_v30  ;;  %2800 = vmatprep.subr.bf16.mxu1 %v5565_v6 }
 0xfb8   :  { %2760 = vmatpush1.bf16.msra.mxu0 %v5571_v32  ;;  %2801 = vmatpush1.bf16.msra.mxu1 %v5577_v37 }
 0xfb9   :  { %2761 = vmatprep.subr.bf16.mxu0 %v5583_v14  ;;  %2802 = vmatprep.subr.bf16.mxu1 %v5589_v48 }
 0xfbc   :  { %2762 = vmatpush1.bf16.msra.mxu0 %v5595_v63  ;;  %2803 = vmatpush1.bf16.msra.mxu1 %v5601_v58 }
 0xfbd   :  { %2859 = vmatprep.subr.bf16.mxu0 %v5401_v28  ;;  %2900 = vmatprep.subr.bf16.mxu1 %v5407_v36 }
0x1072   :  { %v2669_v21 = vpop.f32.mrb[80].mxu0  ;;  %v2710_v25 = vpop.f32.mrb[112].mxu1 }
0x1073   :  { %v2717_v57 = vadd.f32 %v2669_v21, %v5913_v31  ;;  %v2719_v38 = vadd.f32 %v2710_v25, %v5914_v2  ;;  %v2671_v11 = vpop.f32.mrb[81].mxu0  ;;  %v2712_v19 = vpop.f32.mrb[113].mxu1 }
0x1074   :  { %v2718_v5 = vadd.f32 %v2671_v11, %v5915_v12  ;;  %v2720_v61 = vadd.f32 %v2712_v19, %v5916_v17  ;;  %v2673_v3 = vpop.f32.mrb[82].mxu0  ;;  %v2714_v4 = vpop.f32.mrb[114].mxu1 }
0x1075   :  { %v3295_v8 = vmul.f32 -1.442695, %v2717_v57  ;;  %v2674_v7 = vpop.f32.mrb[83].mxu0  ;;  %v2715_v42 = vpop.f32.mrb[115].mxu1  ;;  %v3297_v36 = vmul.f32 -1.442695, %v2719_v38 }
0x1076   :  { %v3296_v28 = vmul.f32 -1.442695, %v2718_v5  ;;  %v3494_v4 = vld [vmem:[%s5805_s8] sm:$0xff]   ;;  %v3495_v7 = vld [vmem:[%s5805_s8 + $0x8] sm:$0xff]   ;;  %v3496_v42 = vld [vmem:[%s5805_s8 + $0x10] sm:$0xff]  }
0x1077   :  { %3742 = vpow2.f32 %v3295_v8 }
0x1078   :  { %3744 = vpow2.f32 %v3296_v28  ;;  %v3497_v28 = vld [vmem:[%s5805_s8 + $0x18] sm:$0xff]  }
0x1079   :  { %3746 = vtanh.f32 %v2720_v61 }
0x107a   :  { %3748 = vpow2.f32 %v3297_v36  ;;  %v3498_v36 = vld [vmem:[%s5805_s8 + $0x20] sm:$0xff]  }
0x1081   :  { %v3743_v13 = vpop.eup %3742 }
0x1082   :  { %v2730_v20 = vadd.f32 1.0, %v3743_v13  ;;  %v3745_v62 = vpop.eup %3744  ;;  %v3499_v13 = vld [vmem:[%s5805_s8 + $0x28] sm:$0xff]  }
0x1083   :  { %v2731_v33 = vadd.f32 1.0, %v3745_v62  ;;  %v3747_v29 = vpop.eup %3746  ;;  %v3501_v62 = vld [vmem:[%s5805_s8 + $0x38] sm:$0xff]  }
0x1084   :  { %3750 = vrcp.f32 %v2730_v20  ;;  %v3749_v56 = vpop.eup %3748  ;;  %v3500_v20 = vld [vmem:[%s5805_s8 + $0x30] sm:$0xff]  }
0x1085   :  { %3752 = vrcp.f32 %v2731_v33  ;;  %v2732_v57 = vadd.f32 1.0, %v3749_v56  ;;  %v2980_v33 = vpack.c.bf16 %v5224_v10, %v5178_v47  ;;  %v2982_v56 = vpack.c.bf16 %v5418_v49, %v5362_v16  ;;  %v5923_v16 = vld [vmem:[#allocation31_spill] sm:$0xff] }
0x1087   :  { %3754 = vrcp.f32 %v2732_v57 }
0x108e   :  { %v3751_v21 = vpop.eup %3750 }
0x108f   :  { %v2741_v25 = vmul.f32 %v3751_v21, %v3747_v29  ;;  %v3753_v31 = vpop.eup %3752  ;;  %v2981_v29 = vpack.c.bf16 %v5316_v45, %v5270_v23  ;;  %v5921_v45 = vld [vmem:[#allocation30_spill] sm:$0xff] }
0x1090   :  { %v2740_v2 = vmul.f32 %v3753_v31, %v5611_v41 }
0x1091   :  { %v3755_v38 = vpop.eup %3754 }
0x1092   :  { %v5657_v11 = vadd.f32 %v2741_v25, %v2740_v2  ;;  %v5922_v25 = vld [vmem:[#allocation58_spill] sm:$0xff] }
0x1094   :  { %3756 = vtanh.f32 %v5657_v11 }
0x109e   :  { %v3757_v19 = vpop.eup %3756 }
0x109f   :  { %v5660_v12 = vmul.f32 %v3757_v19, %v3755_v38 }
0x10a1   :  { %v2746_v5 = vpack.c.bf16 %v5660_v12, %v5660_v12  ;;  %v2983_v47 = vpack.c.bf16 %v5660_v12, %v5614_v55 }
0x10a3   :  { %2780 = vmatmul.mubr.bf16.vlgmr.msra.gmra.mrb[84].mxu0 %v2746_v5  ;;  %2821 = vmatmul.mubr.bf16.vlgmr.msra.gmra.mrb[116].mxu1 %v2746_v5 }
0x10a4   :  { %2860 = vmatpush1.bf16.msra.mxu0 %v5425_v50  ;;  %2901 = vmatpush1.bf16.msra.mxu1 %v5431_v51 }
0x10a5   :  { %2861 = vmatprep.subr.bf16.mxu0 %v5437_v60  ;;  %2902 = vmatprep.subr.bf16.mxu1 %v5443_v52  ;;  %v5917_v60 = vld [vmem:[#allocation28_spill] sm:$0xff] }
0x10a6   :  { %2891 = vmatprep.mubr.bf16.mxu0 %v5867_v9  ;;  %2932 = vmatprep.mubr.bf16.mxu1 %v5867_v9  ;;  %v3855_v9 = vmov 0.0  }
0x10a8   :  { %2862 = vmatpush1.bf16.msra.mxu0 %v5451_v34  ;;  %2903 = vmatpush1.bf16.msra.mxu1 %v5457_v24  ;;  %v5918_v34 = vld [vmem:[#allocation56_spill] sm:$0xff] }
0x10a9   :  { %2863 = vmatprep.subr.bf16.mxu0 %v5463_v27  ;;  %2904 = vmatprep.subr.bf16.mxu1 %v5469_v22 }
0x10ac   :  { %2864 = vmatpush1.bf16.msra.mxu0 %v5475_v35  ;;  %2905 = vmatpush1.bf16.msra.mxu1 %v5481_v40  ;;  %v5919_v35 = vld [vmem:[#allocation29_spill] sm:$0xff] }
0x10ad   :  { %2865 = vmatprep.subr.bf16.mxu0 %v5487_v0  ;;  %2906 = vmatprep.subr.bf16.mxu1 %v5493_v15  ;;  %v5920_v0 = vld [vmem:[#allocation57_spill] sm:$0xff] }
0x10b0   :  { %2866 = vmatpush1.bf16.msra.mxu0 %v5499_v43  ;;  %2907 = vmatpush1.bf16.msra.mxu1 %v5505_v44 }
0x10b1   :  { %2867 = vmatprep.subr.bf16.mxu0 %v5511_v54  ;;  %2908 = vmatprep.subr.bf16.mxu1 %v5517_v53 }
0x10b4   :  { %2868 = vmatpush1.bf16.msra.mxu0 %v5523_v46  ;;  %2909 = vmatpush1.bf16.msra.mxu1 %v5529_v1 }
0x10b5   :  { %2869 = vmatprep.subr.bf16.mxu0 %v5535_v59  ;;  %2910 = vmatprep.subr.bf16.mxu1 %v5541_v39 }
0x10b8   :  { %2870 = vmatpush1.bf16.msra.mxu0 %v5547_v18  ;;  %2911 = vmatpush1.bf16.msra.mxu1 %v5553_v26 }
0x10b9   :  { %2871 = vmatprep.subr.bf16.mxu0 %v5559_v30  ;;  %2912 = vmatprep.subr.bf16.mxu1 %v5565_v6 }
0x10bc   :  { %2872 = vmatpush1.bf16.msra.mxu0 %v5571_v32  ;;  %2913 = vmatpush1.bf16.msra.mxu1 %v5577_v37 }
0x10bd   :  { %2873 = vmatprep.subr.bf16.mxu0 %v5583_v14  ;;  %2914 = vmatprep.subr.bf16.mxu1 %v5589_v48 }
0x10c0   :  { %2874 = vmatpush1.bf16.msra.mxu0 %v5595_v63  ;;  %2915 = vmatpush1.bf16.msra.mxu1 %v5601_v58 }
0x10c1   :  { %3326 = vmatprep.subr.bf16.mxu0 %v3855_v9 }
0x1176   :  { %v2781_v50 = vpop.f32.mrb[84].mxu0  ;;  %v2822_v51 = vpop.f32.mrb[116].mxu1 }
0x1177   :  { %v2829_v52 = vadd.f32 %v2781_v50, %v5917_v60  ;;  %v2831_v24 = vadd.f32 %v2822_v51, %v5918_v34  ;;  %v2783_v27 = vpop.f32.mrb[85].mxu0  ;;  %v2824_v22 = vpop.f32.mrb[117].mxu1 }
0x1178   :  { %v2830_v40 = vadd.f32 %v2783_v27, %v5919_v35  ;;  %v2832_v15 = vadd.f32 %v2824_v22, %v5920_v0  ;;  %v2785_v43 = vpop.f32.mrb[86].mxu0  ;;  %v2826_v44 = vpop.f32.mrb[118].mxu1 }
0x1179   :  { %v3298_v54 = vmul.f32 -1.442695, %v2829_v52  ;;  %v2786_v53 = vpop.f32.mrb[87].mxu0  ;;  %v2827_v46 = vpop.f32.mrb[119].mxu1  ;;  %v3300_v59 = vmul.f32 -1.442695, %v2831_v24 }
0x117a   :  { %v3299_v1 = vmul.f32 -1.442695, %v2830_v40  ;;  %v3304_v43 = vld [vmem:[%s5806_s9] ss:$0 sm:$0xff] }
0x117b   :  { %3758 = vpow2.f32 %v3298_v54 }
0x117c   :  { %3760 = vpow2.f32 %v3299_v1 }
0x117d   :  { %3762 = vtanh.f32 %v2832_v15 }
0x117e   :  { %3764 = vpow2.f32 %v3300_v59 }
0x1185   :  { %v3759_v39 = vpop.eup %3758 }
0x1186   :  { %v2842_v18 = vadd.f32 1.0, %v3759_v39  ;;  %v3761_v26 = vpop.eup %3760 }
0x1187   :  { %v2843_v30 = vadd.f32 1.0, %v3761_v26  ;;  %v3763_v6 = vpop.eup %3762 }
0x1188   :  { %3766 = vrcp.f32 %v2842_v18  ;;  %v3765_v32 = vpop.eup %3764 }
0x1189   :  { %3768 = vrcp.f32 %v2843_v30  ;;  %v2844_v63 = vadd.f32 1.0, %v3765_v32 }
0x118b   :  { %3770 = vrcp.f32 %v2844_v63 }
0x1192   :  { %v3767_v37 = vpop.eup %3766 }
0x1193   :  { %v2853_v14 = vmul.f32 %v3767_v37, %v3763_v6  ;;  %v3769_v48 = vpop.eup %3768 }
0x1194   :  { %v2852_v58 = vmul.f32 %v3769_v48, %v5657_v11  ;;  %v5924_v11 = vld [vmem:[#allocation59_spill] sm:$0xff] }
0x1195   :  { %v3771_v17 = vpop.eup %3770 }
0x1196   :  { %v5702_v41 = vadd.f32 %v2853_v14, %v2852_v58 }
0x1198   :  { %3772 = vtanh.f32 %v5702_v41 }
0x11a2   :  { %v3773_v61 = vpop.eup %3772 }
0x11a3   :  { %v5705_v3 = vmul.f32 %v3773_v61, %v3771_v17 }
0x11a5   :  { %v2858_v8 = vpack.c.bf16 %v5705_v3, %v5705_v3 }
0x11a7   :  { %2892 = vmatmul.mubr.bf16.vlgmr.msra.gmra.mrb[88].mxu0 %v2858_v8  ;;  %2933 = vmatmul.mubr.bf16.vlgmr.msra.gmra.mrb[120].mxu1 %v2858_v8 }
0x11a8   :  { %3327 = vmatpush3.bf16.msra.mxu0 %v3494_v4  ;;  %3342 = vmatprep.mubr.msk.bf16.mxu0 %vm3856_vm1, %v3855_v9 }
0x11a9   :  { %3328 = vmatprep.subr.bf16.mxu0 %v3855_v9 }
0x11ac   :  { %3329 = vmatpush3.bf16.msra.mxu0 %v3495_v7 }
0x11ad   :  { %3330 = vmatprep.subr.bf16.mxu0 %v3855_v9 }
0x11b0   :  { %3331 = vmatpush3.bf16.msra.mxu0 %v3496_v42 }
0x11b1   :  { %3332 = vmatprep.subr.bf16.mxu0 %v3855_v9 }
0x11b4   :  { %3333 = vmatpush3.bf16.msra.mxu0 %v3497_v28 }
0x11b5   :  { %3334 = vmatprep.subr.bf16.mxu0 %v3855_v9 }
0x11b8   :  { %3335 = vmatpush3.bf16.msra.mxu0 %v3498_v36 }
0x11b9   :  { %3336 = vmatprep.subr.bf16.mxu0 %v3855_v9 }
0x11bc   :  { %3337 = vmatpush3.bf16.msra.mxu0 %v3499_v13 }
0x11bd   :  { %3338 = vmatprep.subr.bf16.mxu0 %v3855_v9 }
0x11c0   :  { %3339 = vmatpush3.bf16.msra.mxu0 %v3500_v20 }
0x11c1   :  { %3340 = vmatprep.subr.bf16.mxu0 %v3855_v9 }
0x11c4   :  { %3341 = vmatpush3.bf16.msra.mxu0 %v3501_v62 }
0x11c7   :  { %3343 = vmatmul.mubr.bf16.vlgmr.msra.gmra.mrb[92].mxu0 %v2980_v33 }
0x11c8   :  { %3346 = vmatprep.mubr.msk.bf16.mxu0 %vm3856_vm1, %v3855_v9 }
0x11cf   :  { %3347 = vmatmul.mubr.bf16.gmra.mrb[96].mxu0 %v2981_v29 }
0x11d0   :  { %3350 = vmatprep.mubr.msk.bf16.mxu0 %vm3856_vm1, %v3855_v9 }
0x11d7   :  { %3351 = vmatmul.mubr.bf16.gmra.mrb[100].mxu0 %v2982_v56 }
0x11d8   :  { %3354 = vmatprep.mubr.msk.bf16.mxu0 %vm3856_vm1, %v3855_v9 }
0x11df   :  { %3355 = vmatmul.mubr.bf16.gmra.mrb[104].mxu0 %v2983_v47 }
0x11e0   :  { %3358 = vmatprep.mubr.msk.bf16.mxu0 %vm3856_vm1, %v3855_v9 }
0x127a   :  { %v2893_v10 = vpop.f32.mrb[88].mxu0  ;;  %v2934_v23 = vpop.f32.mrb[120].mxu1 }
0x127b   :  { %v2941_v21 = vadd.f32 %v2893_v10, %v5921_v45  ;;  %v2943_v31 = vadd.f32 %v2934_v23, %v5922_v25  ;;  %v2895_v57 = vpop.f32.mrb[89].mxu0  ;;  %v2936_v2 = vpop.f32.mrb[121].mxu1 }
0x127c   :  { %v2942_v49 = vadd.f32 %v2895_v57, %v5923_v16  ;;  %v2944_v38 = vadd.f32 %v2936_v2, %v5924_v11  ;;  %v2897_v19 = vpop.f32.mrb[90].mxu0  ;;  %v2938_v5 = vpop.f32.mrb[122].mxu1 }
0x127d   :  { %v3301_v50 = vmul.f32 -1.442695, %v2941_v21  ;;  %v2898_v55 = vpop.f32.mrb[91].mxu0  ;;  %v2939_v12 = vpop.f32.mrb[123].mxu1  ;;  %v3303_v9 = vmul.f32 -1.442695, %v2943_v31 }
0x127e   :  { %v3302_v51 = vmul.f32 -1.442695, %v2942_v49 }
0x127f   :  { %3774 = vpow2.f32 %v3301_v50 }
0x1280   :  { %3776 = vpow2.f32 %v3302_v51 }
0x1281   :  { %3778 = vtanh.f32 %v2944_v38 }
0x1282   :  { %3780 = vpow2.f32 %v3303_v9 }
0x1289   :  { %v3775_v60 = vpop.eup %3774 }
0x128a   :  { %v2954_v52 = vadd.f32 1.0, %v3775_v60  ;;  %v3777_v34 = vpop.eup %3776 }
0x128b   :  { %v2955_v24 = vadd.f32 1.0, %v3777_v34  ;;  %v3779_v27 = vpop.eup %3778 }
0x128c   :  { %3782 = vrcp.f32 %v2954_v52  ;;  %v3781_v22 = vpop.eup %3780 }
0x128d   :  { %3784 = vrcp.f32 %v2955_v24  ;;  %v2956_v15 = vadd.f32 1.0, %v3781_v22 }
0x128f   :  { %3786 = vrcp.f32 %v2956_v15 }
0x1296   :  { %v3783_v35 = vpop.eup %3782 }
0x1297   :  { %v2965_v40 = vmul.f32 %v3783_v35, %v3779_v27  ;;  %v3785_v0 = vpop.eup %3784 }
0x1298   :  { %v2964_v44 = vmul.f32 %v3785_v0, %v5702_v41 }
0x1299   :  { %v3787_v48 = vpop.eup %3786 }
0x129a   :  { %v3090_v54 = vpop.f32.mrb[92].mxu0  ;;  %v2966_v53 = vadd.f32 %v2965_v40, %v2964_v44 }
0x129b   :  { %v3091_v46 = vadd.f32 %v3304_v43, %v3090_v54  ;;  %v3344_v1 = vpop.f32.mrb[93].mxu0 }
0x129c   :  { %v3093_v59 = vpop.f32.mrb[94].mxu0  ;;  %3788 = vtanh.f32 %v2966_v53 }
0x129d   :  { %3129 = vst [vmem:[%s5807_s10] sm:$0xff] %v3091_v46  ;;  %v3094_v39 = vadd.f32 %v3304_v43, %v3093_v59  ;;  %v3345_v18 = vpop.f32.mrb[95].mxu0 }
0x129f   :  { %3130 = vst [vmem:[%s5807_s10 + $0x8] sm:$0xff] %v3094_v39 }
0x12a2   :  { %v3098_v26 = vpop.f32.mrb[96].mxu0 }
0x12a3   :  { %v3099_v30 = vadd.f32 %v3304_v43, %v3098_v26  ;;  %v3348_v6 = vpop.f32.mrb[97].mxu0 }
0x12a4   :  { %v3101_v32 = vpop.f32.mrb[98].mxu0 }
0x12a5   :  { %3131 = vst [vmem:[%s5807_s10 + $0x10] sm:$0xff] %v3099_v30  ;;  %v3102_v37 = vadd.f32 %v3304_v43, %v3101_v32  ;;  %v3349_v14 = vpop.f32.mrb[99].mxu0 }
0x12a6   :  { %v3789_v63 = vpop.eup %3788 }
0x12a7   :  { %3132 = vst [vmem:[%s5807_s10 + $0x18] sm:$0xff] %v3102_v37  ;;  %v2968_v58 = vmul.f32 %v3789_v63, %v3787_v48 }
0x12a9   :  { %v2984_v17 = vpack.c.bf16 %v2968_v58, %v5705_v3 }
0x12aa   :  { %v3106_v41 = vpop.f32.mrb[100].mxu0 }
0x12ab   :  { %v3107_v61 = vadd.f32 %v3304_v43, %v3106_v41  ;;  %v3352_v4 = vpop.f32.mrb[101].mxu0  ;;  %3359 = vmatmul.mubr.bf16.gmra.mrb[108].mxu0 %v2984_v17 }
0x12ac   :  { %v3109_v8 = vpop.f32.mrb[102].mxu0 }
0x12ad   :  { %3133 = vst [vmem:[%s5807_s10 + $0x20] sm:$0xff] %v3107_v61  ;;  %v3110_v7 = vadd.f32 %v3304_v43, %v3109_v8  ;;  %v3353_v42 = vpop.f32.mrb[103].mxu0 }
0x12af   :  { %3134 = vst [vmem:[%s5807_s10 + $0x28] sm:$0xff] %v3110_v7 }
0x12b2   :  { %v3114_v28 = vpop.f32.mrb[104].mxu0 }
0x12b3   :  { %v3115_v36 = vadd.f32 %v3304_v43, %v3114_v28  ;;  %v3356_v13 = vpop.f32.mrb[105].mxu0 }
0x12b4   :  { %v3117_v20 = vpop.f32.mrb[106].mxu0 }
0x12b5   :  { %3135 = vst [vmem:[%s5807_s10 + $0x30] sm:$0xff] %v3115_v36  ;;  %v3118_v3 = vadd.f32 %v3304_v43, %v3117_v20  ;;  %v3357_v62 = vpop.f32.mrb[107].mxu0 }
0x12b7   :  { %3136 = vst [vmem:[%s5807_s10 + $0x38] sm:$0xff] %v3118_v3 }
0x137e   :  { %v3122_v33 = vpop.f32.mrb[108].mxu0 }
0x137f   :  { %v3123_v29 = vadd.f32 %v3304_v43, %v3122_v33  ;;  %v3360_v56 = vpop.f32.mrb[109].mxu0 }
0x1380   :  { %v3125_v47 = vpop.f32.mrb[110].mxu0 }
0x1381   :  { %3137 = vst [vmem:[%s5807_s10 + $0x40] sm:$0xff] %v3123_v29  ;;  %v3126_v10 = vadd.f32 %v3304_v43, %v3125_v47  ;;  %v3361_v23 = vpop.f32.mrb[111].mxu0 }
0x1383   :  { %3138 = vst [vmem:[%s5807_s10 + $0x48] sm:$0xff] %v3126_v10 }

</bundles_post_ra>
